<compile_context>
chip_gen: v7x
topology: tpu7x:2x2x1
jax: 0.10.0
libtpu: 0.0.40
codegen_flags: <defaults>
</compile_context>

<pallas_src>
import jax
import jax.numpy as jnp
from jax.experimental import pallas as pl
from jax.experimental.pallas import tpu as pltpu


def _round_up(x, m):
    return ((x + m - 1) // m) * m


def _pick_row_tile(h, w_out, cin, cout, s, budget_bytes=12 * 1024 * 1024):
    """Largest input-row tile (multiple of 8, divides h) whose double-buffered VMEM
    working set fits the budget; prefer >=2 tiles for pipelining / megacore sharding."""
    wp_pad = _round_up(w_out + 2, 128)
    wo_pad = _round_up(s * w_out, 128)

    def footprint(ti):
        return 4 * (2 * cin * ti * wp_pad          # main input block (double buffered)
                    + 2 * cin * 8 * wp_pad         # bottom-halo block
                    + 2 * cout * ti * wo_pad       # output block
                    + cin * (ti + 8) * wp_pad)     # stitch scratch

    divisors = [t for t in range(8, h + 1, 8) if h % t == 0]
    fitting = [t for t in divisors if footprint(t) <= budget_bytes]
    if not fitting:
        return 8
    multi = [t for t in fitting if 2 * t <= h]
    return max(multi) if multi else max(fitting)


def _make_seg_head_kernel(cin, cout, s, ti, w_out):
    n_chunks = ti // 8
    # Static phase bookkeeping: output H-phase py reads input rows iy + dy with
    # dy = floor((py + kh - 1)/s); kernel taps sharing (py, dy) get their weights merged.
    dys_per_py = [sorted({(py + kh - 1) // s for kh in range(3)}) for py in range(s)]
    all_dys = sorted({d for dys in dys_per_py for d in dys})
    khs_for = {(py, dy): [kh for kh in range(3) if (py + kh - 1) // s == dy]
               for py in range(s) for dy in dys_per_py[py]}

    def widx(kh, kw, ci, co):                      # flattened HWIO weight index
        return ((kh * 3 + kw) * cin + ci) * cout + co

    def kernel(w_ref, b_ref, xm_ref, xh_ref, o_ref, xbuf_ref):
        # Stitch the row tile (its first row is the 1-row top halo) and the 8-row
        # bottom-halo block into one padded-rows VMEM buffer.
        for ci in range(cin):
            xbuf_ref[ci, 0:ti, :] = xm_ref[0, ci].astype(jnp.float32)
            xbuf_ref[ci, ti:ti + 8, :] = xh_ref[0, ci].astype(jnp.float32)

        def compute_rows(row0):
            for co in range(cout):
                accs = [jnp.zeros((8, w_out), jnp.float32) for _ in range(s)]
                for ci in range(cin):
                    for dy in all_dys:
                        pys = [py for py in range(s) if dy in dys_per_py[py]]
                        for kw in range(3):
                            # (8, w_out) slab: rows shifted by dy, lanes shifted by kw
                            slab = xbuf_ref[ci, pl.ds(row0 + 1 + dy, 8),
                                            kw:kw + w_out]
                            for py in pys:
                                wv = None
                                for kh in khs_for[(py, dy)]:
                                    v = w_ref[widx(kh, kw, ci, co)]
                                    wv = v if wv is None else wv + v
                                accs[py] = accs[py] + wv * slab
                row = accs[0] if s == 1 else jnp.concatenate(accs, axis=-1)
                row = row + b_ref[co]
                # Full-extent, lane-dense store of 8 output row-groups.
                o_ref[0, co, pl.ds(row0, 8), :] = row.astype(o_ref.dtype)

        if n_chunks == 1:
            compute_rows(0)
        else:
            def body(c, carry):
                compute_rows(pl.multiple_of(c * 8, 8))
                return carry
            jax.lax.fori_loop(0, n_chunks, body, 0)

    return kernel


def segmentation_head_forward(x_nchw, w_hwio, bias, upsampling):
    """SegmentationHead forward (upsampling_type='Upsample', nearest), NCHW in/out."""
    s = int(upsampling)
    assert s >= 1
    n, cin, h_in, w_in = x_nchw.shape
    cout = w_hwio.shape[-1]
    h_out, w_out = h_in * s, w_in * s

    # Pad H up to a multiple of 8 (extra zero rows do not change the first h_out output
    # rows of a 'same' 3x3 conv on the nearest-upsampled image); sliced off at the end.
    h_work = _round_up(h_in, 8)
    if h_work != h_in:
        x_nchw = jnp.pad(x_nchw, ((0, 0), (0, 0), (0, h_work - h_in), (0, 0)))

    # Single pre-upsample-sized prologue pass: nearest repeat along W + 1px halo pad.
    hp = h_work + 8                                   # +1 top halo, +7 bottom slack
    wp = w_out + 2
    x_w = jnp.repeat(x_nchw, s, axis=3)               # (n, cin, h_work, w_out)
    xp = jnp.pad(x_w, ((0, 0), (0, 0), (1, hp - h_work - 1), (1, 1)))

    ti = _pick_row_tile(h_work, w_out, cin, cout, s)
    n_t = h_work // ti
    halo_stride = ti // 8

    w_flat = w_hwio.astype(jnp.float32).reshape(-1)    # HWIO, flattened, lives in SMEM
    b_vec = bias.astype(jnp.float32).reshape(cout)

    kernel = _make_seg_head_kernel(cin, cout, s, ti, w_out)

    out4 = pl.pallas_call(
        kernel,
        out_shape=jax.ShapeDtypeStruct((n, cout, h_work, s * w_out), x_nchw.dtype),
        grid_spec=pltpu.PrefetchScalarGridSpec(
            num_scalar_prefetch=0,
            grid=(n, n_t),
            in_specs=[
                pl.BlockSpec(memory_space=pltpu.MemorySpace.SMEM),   # weights (scalars)
                pl.BlockSpec(memory_space=pltpu.MemorySpace.SMEM),   # bias (scalars)
                # main row tile: padded rows [t*TI, t*TI+TI) = input rows t*TI-1 .. t*TI+TI-2
                pl.BlockSpec((1, cin, ti, wp), lambda b, t: (b, 0, t, 0)),
                # bottom halo: 8 rows starting at padded row (t+1)*TI
                pl.BlockSpec((1, cin, 8, wp),
                             lambda b, t: (b, 0, (t + 1) * halo_stride, 0)),
            ],
            out_specs=pl.BlockSpec((1, cout, ti, s * w_out),
                                   lambda b, t: (b, 0, t, 0)),
            scratch_shapes=[pltpu.VMEM((cin, ti + 8, wp), jnp.float32)],
        ),
        compiler_params=pltpu.CompilerParams(
            dimension_semantics=("parallel", "parallel")),
    )(w_flat, b_vec, xp, xp)

    # (n, cout, h_work, s*w_out) -> (n, cout, h_work*s, w_out) is a free adjacent-dim
    # reshape: final row h*s + py is phase py of kernel row h.
    y = out4.reshape(n, cout, h_work * s, w_out)
    if h_work != h_in:
        y = y[:, :, :h_out, :]
    return y


if __name__ == "__main__":
    # Small, deterministic example config
    batch, in_channels, out_channels = 2, 4, 3
    spatial, upsampling = 16, 2                 # input 16x16 -> upsampled 32x32

    key = jax.random.PRNGKey(0)
    kx, kw, kb = jax.random.split(key, 3)

    x = jax.random.normal(kx, (batch, in_channels, spatial, spatial), jnp.float32)

    # Conv2d(in_channels, out_channels, k=3, s=1, p=1) params, stored in HWIO layout.
    fan_in = in_channels * 3 * 3
    bound = 1.0 / (fan_in ** 0.5)
    w_hwio = jax.random.uniform(kw, (3, 3, in_channels, out_channels),
                                jnp.float32, -bound, bound)
    bias = jax.random.uniform(kb, (out_channels,), jnp.float32, -bound, bound)

    fwd = jax.jit(segmentation_head_forward, static_argnums=3)
    y = fwd(x, w_hwio, bias, upsampling)
    y = jax.block_until_ready(y)

    # Reference: nearest upsample + SAME 3x3 conv (same math as nn.Upsample + Conv2d p=1)
    x_up = jnp.repeat(jnp.repeat(x, upsampling, axis=2), upsampling, axis=3)
    y_ref = jax.lax.conv_general_dilated(
        jnp.transpose(x_up, (0, 2, 3, 1)), w_hwio, window_strides=(1, 1),
        padding="SAME", dimension_numbers=("NHWC", "HWIO", "NHWC"))
    y_ref = jnp.transpose(y_ref + bias[None, None, None, :], (0, 3, 1, 2))

    assert y.shape == (batch, out_channels, spatial * upsampling, spatial * upsampling)
    assert jnp.allclose(y, y_ref, atol=1e-5, rtol=1e-5)
    print("KERNEL_OK")
</pallas_src>

<mosaic_0001>
module attributes {stable_mosaic.version = 11 : i64} {
  func.func @kernel(%arg0: i32, %arg1: i32, %arg2: memref<108xf32, #tpu.memory_space<smem>>, %arg3: memref<3xf32, #tpu.memory_space<smem>>, %arg4: memref<1x4x8x34xf32, #tpu.memory_space<vmem>>, %arg5: memref<1x4x8x34xf32, #tpu.memory_space<vmem>>, %arg6: memref<1x3x8x64xf32, #tpu.memory_space<vmem>>, %arg7: memref<4x16x34xf32, #tpu.memory_space<vmem>>) attributes {dimension_semantics = [#tpu.dimension_semantics<parallel>, #tpu.dimension_semantics<parallel>], iteration_bounds = array<i64: 2, 2>, scalar_prefetch = 0 : i64, scratch_operands = 1 : i64, tpu.core_type = #tpu.core_type<tc>, window_params = [{transform_indices = @transform_0, window_bounds = array<i64: 108>}, {transform_indices = @transform_1, window_bounds = array<i64: 3>}, {transform_indices = @transform_2, window_bounds = array<i64: 1, 4, 8, 34>}, {transform_indices = @transform_3, window_bounds = array<i64: 1, 4, 8, 34>}, {transform_indices = @transform_4, window_bounds = array<i64: 1, 3, 8, 64>}]} {
    %c0 = arith.constant 0 : index
    %c0_0 = arith.constant 0 : index
    %c0_1 = arith.constant 0 : index
    %c0_2 = arith.constant 0 : index
    %0 = vector.load %arg4[%c0, %c0_0, %c0_1, %c0_2] : memref<1x4x8x34xf32, #tpu.memory_space<vmem>>, vector<1x1x8x34xf32>
    %1 = vector.shape_cast %0 : vector<1x1x8x34xf32> to vector<8x34xf32>
    %c0_3 = arith.constant 0 : index
    %c0_4 = arith.constant 0 : index
    %c0_5 = arith.constant 0 : index
    %2 = vector.load %arg7[%c0_3, %c0_4, %c0_5] : memref<4x16x34xf32, #tpu.memory_space<vmem>>, vector<1x8x34xf32>
    %3 = vector.shape_cast %2 : vector<1x8x34xf32> to vector<8x34xf32>
    %4 = vector.shape_cast %1 : vector<8x34xf32> to vector<1x8x34xf32>
    tpu.vector_store %arg7[%c0_3, %c0_4, %c0_5], %4 {strides = array<i32>} : memref<4x16x34xf32, #tpu.memory_space<vmem>>, vector<1x8x34xf32>,
    %c0_6 = arith.constant 0 : index
    %c0_7 = arith.constant 0 : index
    %c0_8 = arith.constant 0 : index
    %c0_9 = arith.constant 0 : index
    %5 = vector.load %arg5[%c0_6, %c0_7, %c0_8, %c0_9] : memref<1x4x8x34xf32, #tpu.memory_space<vmem>>, vector<1x1x8x34xf32>
    %6 = vector.shape_cast %5 : vector<1x1x8x34xf32> to vector<8x34xf32>
    %c0_10 = arith.constant 0 : index
    %c8 = arith.constant 8 : index
    %c0_11 = arith.constant 0 : index
    %7 = vector.load %arg7[%c0_10, %c8, %c0_11] : memref<4x16x34xf32, #tpu.memory_space<vmem>>, vector<1x8x34xf32>
    %8 = vector.shape_cast %7 : vector<1x8x34xf32> to vector<8x34xf32>
    %9 = vector.shape_cast %6 : vector<8x34xf32> to vector<1x8x34xf32>
    tpu.vector_store %arg7[%c0_10, %c8, %c0_11], %9 {strides = array<i32>} : memref<4x16x34xf32, #tpu.memory_space<vmem>>, vector<1x8x34xf32>,
    %c0_12 = arith.constant 0 : index
    %c1 = arith.constant 1 : index
    %c0_13 = arith.constant 0 : index
    %c0_14 = arith.constant 0 : index
    %10 = vector.load %arg4[%c0_12, %c1, %c0_13, %c0_14] : memref<1x4x8x34xf32, #tpu.memory_space<vmem>>, vector<1x1x8x34xf32>
    %11 = vector.shape_cast %10 : vector<1x1x8x34xf32> to vector<8x34xf32>
    %c1_15 = arith.constant 1 : index
    %c0_16 = arith.constant 0 : index
    %c0_17 = arith.constant 0 : index
    %12 = vector.load %arg7[%c1_15, %c0_16, %c0_17] : memref<4x16x34xf32, #tpu.memory_space<vmem>>, vector<1x8x34xf32>
    %13 = vector.shape_cast %12 : vector<1x8x34xf32> to vector<8x34xf32>
    %14 = vector.shape_cast %11 : vector<8x34xf32> to vector<1x8x34xf32>
    tpu.vector_store %arg7[%c1_15, %c0_16, %c0_17], %14 {strides = array<i32>} : memref<4x16x34xf32, #tpu.memory_space<vmem>>, vector<1x8x34xf32>,
    %c0_18 = arith.constant 0 : index
    %c1_19 = arith.constant 1 : index
    %c0_20 = arith.constant 0 : index
    %c0_21 = arith.constant 0 : index
    %15 = vector.load %arg5[%c0_18, %c1_19, %c0_20, %c0_21] : memref<1x4x8x34xf32, #tpu.memory_space<vmem>>, vector<1x1x8x34xf32>
    %16 = vector.shape_cast %15 : vector<1x1x8x34xf32> to vector<8x34xf32>
    %c1_22 = arith.constant 1 : index
    %c8_23 = arith.constant 8 : index
    %c0_24 = arith.constant 0 : index
    %17 = vector.load %arg7[%c1_22, %c8_23, %c0_24] : memref<4x16x34xf32, #tpu.memory_space<vmem>>, vector<1x8x34xf32>
    %18 = vector.shape_cast %17 : vector<1x8x34xf32> to vector<8x34xf32>
    %19 = vector.shape_cast %16 : vector<8x34xf32> to vector<1x8x34xf32>
    tpu.vector_store %arg7[%c1_22, %c8_23, %c0_24], %19 {strides = array<i32>} : memref<4x16x34xf32, #tpu.memory_space<vmem>>, vector<1x8x34xf32>,
    %c0_25 = arith.constant 0 : index
    %c2 = arith.constant 2 : index
    %c0_26 = arith.constant 0 : index
    %c0_27 = arith.constant 0 : index
    %20 = vector.load %arg4[%c0_25, %c2, %c0_26, %c0_27] : memref<1x4x8x34xf32, #tpu.memory_space<vmem>>, vector<1x1x8x34xf32>
    %21 = vector.shape_cast %20 : vector<1x1x8x34xf32> to vector<8x34xf32>
    %c2_28 = arith.constant 2 : index
    %c0_29 = arith.constant 0 : index
    %c0_30 = arith.constant 0 : index
    %22 = vector.load %arg7[%c2_28, %c0_29, %c0_30] : memref<4x16x34xf32, #tpu.memory_space<vmem>>, vector<1x8x34xf32>
    %23 = vector.shape_cast %22 : vector<1x8x34xf32> to vector<8x34xf32>
    %24 = vector.shape_cast %21 : vector<8x34xf32> to vector<1x8x34xf32>
    tpu.vector_store %arg7[%c2_28, %c0_29, %c0_30], %24 {strides = array<i32>} : memref<4x16x34xf32, #tpu.memory_space<vmem>>, vector<1x8x34xf32>,
    %c0_31 = arith.constant 0 : index
    %c2_32 = arith.constant 2 : index
    %c0_33 = arith.constant 0 : index
    %c0_34 = arith.constant 0 : index
    %25 = vector.load %arg5[%c0_31, %c2_32, %c0_33, %c0_34] : memref<1x4x8x34xf32, #tpu.memory_space<vmem>>, vector<1x1x8x34xf32>
    %26 = vector.shape_cast %25 : vector<1x1x8x34xf32> to vector<8x34xf32>
    %c2_35 = arith.constant 2 : index
    %c8_36 = arith.constant 8 : index
    %c0_37 = arith.constant 0 : index
    %27 = vector.load %arg7[%c2_35, %c8_36, %c0_37] : memref<4x16x34xf32, #tpu.memory_space<vmem>>, vector<1x8x34xf32>
    %28 = vector.shape_cast %27 : vector<1x8x34xf32> to vector<8x34xf32>
    %29 = vector.shape_cast %26 : vector<8x34xf32> to vector<1x8x34xf32>
    tpu.vector_store %arg7[%c2_35, %c8_36, %c0_37], %29 {strides = array<i32>} : memref<4x16x34xf32, #tpu.memory_space<vmem>>, vector<1x8x34xf32>,
    %c0_38 = arith.constant 0 : index
    %c3 = arith.constant 3 : index
    %c0_39 = arith.constant 0 : index
    %c0_40 = arith.constant 0 : index
    %30 = vector.load %arg4[%c0_38, %c3, %c0_39, %c0_40] : memref<1x4x8x34xf32, #tpu.memory_space<vmem>>, vector<1x1x8x34xf32>
    %31 = vector.shape_cast %30 : vector<1x1x8x34xf32> to vector<8x34xf32>
    %c3_41 = arith.constant 3 : index
    %c0_42 = arith.constant 0 : index
    %c0_43 = arith.constant 0 : index
    %32 = vector.load %arg7[%c3_41, %c0_42, %c0_43] : memref<4x16x34xf32, #tpu.memory_space<vmem>>, vector<1x8x34xf32>
    %33 = vector.shape_cast %32 : vector<1x8x34xf32> to vector<8x34xf32>
    %34 = vector.shape_cast %31 : vector<8x34xf32> to vector<1x8x34xf32>
    tpu.vector_store %arg7[%c3_41, %c0_42, %c0_43], %34 {strides = array<i32>} : memref<4x16x34xf32, #tpu.memory_space<vmem>>, vector<1x8x34xf32>,
    %c0_44 = arith.constant 0 : index
    %c3_45 = arith.constant 3 : index
    %c0_46 = arith.constant 0 : index
    %c0_47 = arith.constant 0 : index
    %35 = vector.load %arg5[%c0_44, %c3_45, %c0_46, %c0_47] : memref<1x4x8x34xf32, #tpu.memory_space<vmem>>, vector<1x1x8x34xf32>
    %36 = vector.shape_cast %35 : vector<1x1x8x34xf32> to vector<8x34xf32>
    %c3_48 = arith.constant 3 : index
    %c8_49 = arith.constant 8 : index
    %c0_50 = arith.constant 0 : index
    %37 = vector.load %arg7[%c3_48, %c8_49, %c0_50] : memref<4x16x34xf32, #tpu.memory_space<vmem>>, vector<1x8x34xf32>
    %38 = vector.shape_cast %37 : vector<1x8x34xf32> to vector<8x34xf32>
    %39 = vector.shape_cast %36 : vector<8x34xf32> to vector<1x8x34xf32>
    tpu.vector_store %arg7[%c3_48, %c8_49, %c0_50], %39 {strides = array<i32>} : memref<4x16x34xf32, #tpu.memory_space<vmem>>, vector<1x8x34xf32>,
    %cst = arith.constant 0.000000e+00 : f32
    %40 = vector.broadcast %cst : f32 to vector<8x32xf32>
    %cst_51 = arith.constant 0.000000e+00 : f32
    %41 = vector.broadcast %cst_51 : f32 to vector<8x32xf32>
    %c0_52 = arith.constant 0 : index
    %c0_53 = arith.constant 0 : index
    %c0_54 = arith.constant 0 : index
    %42 = vector.load %arg7[%c0_52, %c0_53, %c0_54] : memref<4x16x34xf32, #tpu.memory_space<vmem>>, vector<1x8x32xf32>
    %43 = vector.shape_cast %42 : vector<1x8x32xf32> to vector<8x32xf32>
    %c0_55 = arith.constant 0 : index
    %44 = memref.load %arg2[%c0_55] : memref<108xf32, #tpu.memory_space<smem>>
    %45 = vector.broadcast %44 : f32 to vector<8x32xf32>
    %46 = arith.mulf %45, %43 : vector<8x32xf32>
    %47 = arith.addf %40, %46 : vector<8x32xf32>
    %c0_56 = arith.constant 0 : index
    %c0_57 = arith.constant 0 : index
    %c1_58 = arith.constant 1 : index
    %48 = vector.load %arg7[%c0_56, %c0_57, %c1_58] : memref<4x16x34xf32, #tpu.memory_space<vmem>>, vector<1x8x32xf32>
    %49 = vector.shape_cast %48 : vector<1x8x32xf32> to vector<8x32xf32>
    %c12 = arith.constant 12 : index
    %50 = memref.load %arg2[%c12] : memref<108xf32, #tpu.memory_space<smem>>
    %51 = vector.broadcast %50 : f32 to vector<8x32xf32>
    %52 = arith.mulf %51, %49 : vector<8x32xf32>
    %53 = arith.addf %47, %52 : vector<8x32xf32>
    %c0_59 = arith.constant 0 : index
    %c0_60 = arith.constant 0 : index
    %c2_61 = arith.constant 2 : index
    %54 = vector.load %arg7[%c0_59, %c0_60, %c2_61] : memref<4x16x34xf32, #tpu.memory_space<vmem>>, vector<1x8x32xf32>
    %55 = vector.shape_cast %54 : vector<1x8x32xf32> to vector<8x32xf32>
    %c24 = arith.constant 24 : index
    %56 = memref.load %arg2[%c24] : memref<108xf32, #tpu.memory_space<smem>>
    %57 = vector.broadcast %56 : f32 to vector<8x32xf32>
    %58 = arith.mulf %57, %55 : vector<8x32xf32>
    %59 = arith.addf %53, %58 : vector<8x32xf32>
    %c0_62 = arith.constant 0 : index
    %c1_63 = arith.constant 1 : index
    %c0_64 = arith.constant 0 : index
    %60 = vector.load %arg7[%c0_62, %c1_63, %c0_64] : memref<4x16x34xf32, #tpu.memory_space<vmem>>, vector<1x8x32xf32>
    %61 = vector.shape_cast %60 : vector<1x8x32xf32> to vector<8x32xf32>
    %c36 = arith.constant 36 : index
    %62 = memref.load %arg2[%c36] : memref<108xf32, #tpu.memory_space<smem>>
    %c72 = arith.constant 72 : index
    %63 = memref.load %arg2[%c72] : memref<108xf32, #tpu.memory_space<smem>>
    %64 = arith.addf %62, %63 : f32
    %65 = vector.broadcast %64 : f32 to vector<8x32xf32>
    %66 = arith.mulf %65, %61 : vector<8x32xf32>
    %67 = arith.addf %59, %66 : vector<8x32xf32>
    %c0_65 = arith.constant 0 : index
    %68 = memref.load %arg2[%c0_65] : memref<108xf32, #tpu.memory_space<smem>>
    %c36_66 = arith.constant 36 : index
    %69 = memref.load %arg2[%c36_66] : memref<108xf32, #tpu.memory_space<smem>>
    %70 = arith.addf %68, %69 : f32
    %71 = vector.broadcast %70 : f32 to vector<8x32xf32>
    %72 = arith.mulf %71, %61 : vector<8x32xf32>
    %73 = arith.addf %41, %72 : vector<8x32xf32>
    %c0_67 = arith.constant 0 : index
    %c1_68 = arith.constant 1 : index
    %c1_69 = arith.constant 1 : index
    %74 = vector.load %arg7[%c0_67, %c1_68, %c1_69] : memref<4x16x34xf32, #tpu.memory_space<vmem>>, vector<1x8x32xf32>
    %75 = vector.shape_cast %74 : vector<1x8x32xf32> to vector<8x32xf32>
    %c48 = arith.constant 48 : index
    %76 = memref.load %arg2[%c48] : memref<108xf32, #tpu.memory_space<smem>>
    %c84 = arith.constant 84 : index
    %77 = memref.load %arg2[%c84] : memref<108xf32, #tpu.memory_space<smem>>
    %78 = arith.addf %76, %77 : f32
    %79 = vector.broadcast %78 : f32 to vector<8x32xf32>
    %80 = arith.mulf %79, %75 : vector<8x32xf32>
    %81 = arith.addf %67, %80 : vector<8x32xf32>
    %c12_70 = arith.constant 12 : index
    %82 = memref.load %arg2[%c12_70] : memref<108xf32, #tpu.memory_space<smem>>
    %c48_71 = arith.constant 48 : index
    %83 = memref.load %arg2[%c48_71] : memref<108xf32, #tpu.memory_space<smem>>
    %84 = arith.addf %82, %83 : f32
    %85 = vector.broadcast %84 : f32 to vector<8x32xf32>
    %86 = arith.mulf %85, %75 : vector<8x32xf32>
    %87 = arith.addf %73, %86 : vector<8x32xf32>
    %c0_72 = arith.constant 0 : index
    %c1_73 = arith.constant 1 : index
    %c2_74 = arith.constant 2 : index
    %88 = vector.load %arg7[%c0_72, %c1_73, %c2_74] : memref<4x16x34xf32, #tpu.memory_space<vmem>>, vector<1x8x32xf32>
    %89 = vector.shape_cast %88 : vector<1x8x32xf32> to vector<8x32xf32>
    %c60 = arith.constant 60 : index
    %90 = memref.load %arg2[%c60] : memref<108xf32, #tpu.memory_space<smem>>
    %c96 = arith.constant 96 : index
    %91 = memref.load %arg2[%c96] : memref<108xf32, #tpu.memory_space<smem>>
    %92 = arith.addf %90, %91 : f32
    %93 = vector.broadcast %92 : f32 to vector<8x32xf32>
    %94 = arith.mulf %93, %89 : vector<8x32xf32>
    %95 = arith.addf %81, %94 : vector<8x32xf32>
    %c24_75 = arith.constant 24 : index
    %96 = memref.load %arg2[%c24_75] : memref<108xf32, #tpu.memory_space<smem>>
    %c60_76 = arith.constant 60 : index
    %97 = memref.load %arg2[%c60_76] : memref<108xf32, #tpu.memory_space<smem>>
    %98 = arith.addf %96, %97 : f32
    %99 = vector.broadcast %98 : f32 to vector<8x32xf32>
    %100 = arith.mulf %99, %89 : vector<8x32xf32>
    %101 = arith.addf %87, %100 : vector<8x32xf32>
    %c0_77 = arith.constant 0 : index
    %c2_78 = arith.constant 2 : index
    %c0_79 = arith.constant 0 : index
    %102 = vector.load %arg7[%c0_77, %c2_78, %c0_79] : memref<4x16x34xf32, #tpu.memory_space<vmem>>, vector<1x8x32xf32>
    %103 = vector.shape_cast %102 : vector<1x8x32xf32> to vector<8x32xf32>
    %c72_80 = arith.constant 72 : index
    %104 = memref.load %arg2[%c72_80] : memref<108xf32, #tpu.memory_space<smem>>
    %105 = vector.broadcast %104 : f32 to vector<8x32xf32>
    %106 = arith.mulf %105, %103 : vector<8x32xf32>
    %107 = arith.addf %101, %106 : vector<8x32xf32>
    %c0_81 = arith.constant 0 : index
    %c2_82 = arith.constant 2 : index
    %c1_83 = arith.constant 1 : index
    %108 = vector.load %arg7[%c0_81, %c2_82, %c1_83] : memref<4x16x34xf32, #tpu.memory_space<vmem>>, vector<1x8x32xf32>
    %109 = vector.shape_cast %108 : vector<1x8x32xf32> to vector<8x32xf32>
    %c84_84 = arith.constant 84 : index
    %110 = memref.load %arg2[%c84_84] : memref<108xf32, #tpu.memory_space<smem>>
    %111 = vector.broadcast %110 : f32 to vector<8x32xf32>
    %112 = arith.mulf %111, %109 : vector<8x32xf32>
    %113 = arith.addf %107, %112 : vector<8x32xf32>
    %c0_85 = arith.constant 0 : index
    %c2_86 = arith.constant 2 : index
    %c2_87 = arith.constant 2 : index
    %114 = vector.load %arg7[%c0_85, %c2_86, %c2_87] : memref<4x16x34xf32, #tpu.memory_space<vmem>>, vector<1x8x32xf32>
    %115 = vector.shape_cast %114 : vector<1x8x32xf32> to vector<8x32xf32>
    %c96_88 = arith.constant 96 : index
    %116 = memref.load %arg2[%c96_88] : memref<108xf32, #tpu.memory_space<smem>>
    %117 = vector.broadcast %116 : f32 to vector<8x32xf32>
    %118 = arith.mulf %117, %115 : vector<8x32xf32>
    %119 = arith.addf %113, %118 : vector<8x32xf32>
    %c1_89 = arith.constant 1 : index
    %c0_90 = arith.constant 0 : index
    %c0_91 = arith.constant 0 : index
    %120 = vector.load %arg7[%c1_89, %c0_90, %c0_91] : memref<4x16x34xf32, #tpu.memory_space<vmem>>, vector<1x8x32xf32>
    %121 = vector.shape_cast %120 : vector<1x8x32xf32> to vector<8x32xf32>
    %c3_92 = arith.constant 3 : index
    %122 = memref.load %arg2[%c3_92] : memref<108xf32, #tpu.memory_space<smem>>
    %123 = vector.broadcast %122 : f32 to vector<8x32xf32>
    %124 = arith.mulf %123, %121 : vector<8x32xf32>
    %125 = arith.addf %95, %124 : vector<8x32xf32>
    %c1_93 = arith.constant 1 : index
    %c0_94 = arith.constant 0 : index
    %c1_95 = arith.constant 1 : index
    %126 = vector.load %arg7[%c1_93, %c0_94, %c1_95] : memref<4x16x34xf32, #tpu.memory_space<vmem>>, vector<1x8x32xf32>
    %127 = vector.shape_cast %126 : vector<1x8x32xf32> to vector<8x32xf32>
    %c15 = arith.constant 15 : index
    %128 = memref.load %arg2[%c15] : memref<108xf32, #tpu.memory_space<smem>>
    %129 = vector.broadcast %128 : f32 to vector<8x32xf32>
    %130 = arith.mulf %129, %127 : vector<8x32xf32>
    %131 = arith.addf %125, %130 : vector<8x32xf32>
    %c1_96 = arith.constant 1 : index
    %c0_97 = arith.constant 0 : index
    %c2_98 = arith.constant 2 : index
    %132 = vector.load %arg7[%c1_96, %c0_97, %c2_98] : memref<4x16x34xf32, #tpu.memory_space<vmem>>, vector<1x8x32xf32>
    %133 = vector.shape_cast %132 : vector<1x8x32xf32> to vector<8x32xf32>
    %c27 = arith.constant 27 : index
    %134 = memref.load %arg2[%c27] : memref<108xf32, #tpu.memory_space<smem>>
    %135 = vector.broadcast %134 : f32 to vector<8x32xf32>
    %136 = arith.mulf %135, %133 : vector<8x32xf32>
    %137 = arith.addf %131, %136 : vector<8x32xf32>
    %c1_99 = arith.constant 1 : index
    %c1_100 = arith.constant 1 : index
    %c0_101 = arith.constant 0 : index
    %138 = vector.load %arg7[%c1_99, %c1_100, %c0_101] : memref<4x16x34xf32, #tpu.memory_space<vmem>>, vector<1x8x32xf32>
    %139 = vector.shape_cast %138 : vector<1x8x32xf32> to vector<8x32xf32>
    %c39 = arith.constant 39 : index
    %140 = memref.load %arg2[%c39] : memref<108xf32, #tpu.memory_space<smem>>
    %c75 = arith.constant 75 : index
    %141 = memref.load %arg2[%c75] : memref<108xf32, #tpu.memory_space<smem>>
    %142 = arith.addf %140, %141 : f32
    %143 = vector.broadcast %142 : f32 to vector<8x32xf32>
    %144 = arith.mulf %143, %139 : vector<8x32xf32>
    %145 = arith.addf %137, %144 : vector<8x32xf32>
    %c3_102 = arith.constant 3 : index
    %146 = memref.load %arg2[%c3_102] : memref<108xf32, #tpu.memory_space<smem>>
    %c39_103 = arith.constant 39 : index
    %147 = memref.load %arg2[%c39_103] : memref<108xf32, #tpu.memory_space<smem>>
    %148 = arith.addf %146, %147 : f32
    %149 = vector.broadcast %148 : f32 to vector<8x32xf32>
    %150 = arith.mulf %149, %139 : vector<8x32xf32>
    %151 = arith.addf %119, %150 : vector<8x32xf32>
    %c1_104 = arith.constant 1 : index
    %c1_105 = arith.constant 1 : index
    %c1_106 = arith.constant 1 : index
    %152 = vector.load %arg7[%c1_104, %c1_105, %c1_106] : memref<4x16x34xf32, #tpu.memory_space<vmem>>, vector<1x8x32xf32>
    %153 = vector.shape_cast %152 : vector<1x8x32xf32> to vector<8x32xf32>
    %c51 = arith.constant 51 : index
    %154 = memref.load %arg2[%c51] : memref<108xf32, #tpu.memory_space<smem>>
    %c87 = arith.constant 87 : index
    %155 = memref.load %arg2[%c87] : memref<108xf32, #tpu.memory_space<smem>>
    %156 = arith.addf %154, %155 : f32
    %157 = vector.broadcast %156 : f32 to vector<8x32xf32>
    %158 = arith.mulf %157, %153 : vector<8x32xf32>
    %159 = arith.addf %145, %158 : vector<8x32xf32>
    %c15_107 = arith.constant 15 : index
    %160 = memref.load %arg2[%c15_107] : memref<108xf32, #tpu.memory_space<smem>>
    %c51_108 = arith.constant 51 : index
    %161 = memref.load %arg2[%c51_108] : memref<108xf32, #tpu.memory_space<smem>>
    %162 = arith.addf %160, %161 : f32
    %163 = vector.broadcast %162 : f32 to vector<8x32xf32>
    %164 = arith.mulf %163, %153 : vector<8x32xf32>
    %165 = arith.addf %151, %164 : vector<8x32xf32>
    %c1_109 = arith.constant 1 : index
    %c1_110 = arith.constant 1 : index
    %c2_111 = arith.constant 2 : index
    %166 = vector.load %arg7[%c1_109, %c1_110, %c2_111] : memref<4x16x34xf32, #tpu.memory_space<vmem>>, vector<1x8x32xf32>
    %167 = vector.shape_cast %166 : vector<1x8x32xf32> to vector<8x32xf32>
    %c63 = arith.constant 63 : index
    %168 = memref.load %arg2[%c63] : memref<108xf32, #tpu.memory_space<smem>>
    %c99 = arith.constant 99 : index
    %169 = memref.load %arg2[%c99] : memref<108xf32, #tpu.memory_space<smem>>
    %170 = arith.addf %168, %169 : f32
    %171 = vector.broadcast %170 : f32 to vector<8x32xf32>
    %172 = arith.mulf %171, %167 : vector<8x32xf32>
    %173 = arith.addf %159, %172 : vector<8x32xf32>
    %c27_112 = arith.constant 27 : index
    %174 = memref.load %arg2[%c27_112] : memref<108xf32, #tpu.memory_space<smem>>
    %c63_113 = arith.constant 63 : index
    %175 = memref.load %arg2[%c63_113] : memref<108xf32, #tpu.memory_space<smem>>
    %176 = arith.addf %174, %175 : f32
    %177 = vector.broadcast %176 : f32 to vector<8x32xf32>
    %178 = arith.mulf %177, %167 : vector<8x32xf32>
    %179 = arith.addf %165, %178 : vector<8x32xf32>
    %c1_114 = arith.constant 1 : index
    %c2_115 = arith.constant 2 : index
    %c0_116 = arith.constant 0 : index
    %180 = vector.load %arg7[%c1_114, %c2_115, %c0_116] : memref<4x16x34xf32, #tpu.memory_space<vmem>>, vector<1x8x32xf32>
    %181 = vector.shape_cast %180 : vector<1x8x32xf32> to vector<8x32xf32>
    %c75_117 = arith.constant 75 : index
    %182 = memref.load %arg2[%c75_117] : memref<108xf32, #tpu.memory_space<smem>>
    %183 = vector.broadcast %182 : f32 to vector<8x32xf32>
    %184 = arith.mulf %183, %181 : vector<8x32xf32>
    %185 = arith.addf %179, %184 : vector<8x32xf32>
    %c1_118 = arith.constant 1 : index
    %c2_119 = arith.constant 2 : index
    %c1_120 = arith.constant 1 : index
    %186 = vector.load %arg7[%c1_118, %c2_119, %c1_120] : memref<4x16x34xf32, #tpu.memory_space<vmem>>, vector<1x8x32xf32>
    %187 = vector.shape_cast %186 : vector<1x8x32xf32> to vector<8x32xf32>
    %c87_121 = arith.constant 87 : index
    %188 = memref.load %arg2[%c87_121] : memref<108xf32, #tpu.memory_space<smem>>
    %189 = vector.broadcast %188 : f32 to vector<8x32xf32>
    %190 = arith.mulf %189, %187 : vector<8x32xf32>
    %191 = arith.addf %185, %190 : vector<8x32xf32>
    %c1_122 = arith.constant 1 : index
    %c2_123 = arith.constant 2 : index
    %c2_124 = arith.constant 2 : index
    %192 = vector.load %arg7[%c1_122, %c2_123, %c2_124] : memref<4x16x34xf32, #tpu.memory_space<vmem>>, vector<1x8x32xf32>
    %193 = vector.shape_cast %192 : vector<1x8x32xf32> to vector<8x32xf32>
    %c99_125 = arith.constant 99 : index
    %194 = memref.load %arg2[%c99_125] : memref<108xf32, #tpu.memory_space<smem>>
    %195 = vector.broadcast %194 : f32 to vector<8x32xf32>
    %196 = arith.mulf %195, %193 : vector<8x32xf32>
    %197 = arith.addf %191, %196 : vector<8x32xf32>
    %c2_126 = arith.constant 2 : index
    %c0_127 = arith.constant 0 : index
    %c0_128 = arith.constant 0 : index
    %198 = vector.load %arg7[%c2_126, %c0_127, %c0_128] : memref<4x16x34xf32, #tpu.memory_space<vmem>>, vector<1x8x32xf32>
    %199 = vector.shape_cast %198 : vector<1x8x32xf32> to vector<8x32xf32>
    %c6 = arith.constant 6 : index
    %200 = memref.load %arg2[%c6] : memref<108xf32, #tpu.memory_space<smem>>
    %201 = vector.broadcast %200 : f32 to vector<8x32xf32>
    %202 = arith.mulf %201, %199 : vector<8x32xf32>
    %203 = arith.addf %173, %202 : vector<8x32xf32>
    %c2_129 = arith.constant 2 : index
    %c0_130 = arith.constant 0 : index
    %c1_131 = arith.constant 1 : index
    %204 = vector.load %arg7[%c2_129, %c0_130, %c1_131] : memref<4x16x34xf32, #tpu.memory_space<vmem>>, vector<1x8x32xf32>
    %205 = vector.shape_cast %204 : vector<1x8x32xf32> to vector<8x32xf32>
    %c18 = arith.constant 18 : index
    %206 = memref.load %arg2[%c18] : memref<108xf32, #tpu.memory_space<smem>>
    %207 = vector.broadcast %206 : f32 to vector<8x32xf32>
    %208 = arith.mulf %207, %205 : vector<8x32xf32>
    %209 = arith.addf %203, %208 : vector<8x32xf32>
    %c2_132 = arith.constant 2 : index
    %c0_133 = arith.constant 0 : index
    %c2_134 = arith.constant 2 : index
    %210 = vector.load %arg7[%c2_132, %c0_133, %c2_134] : memref<4x16x34xf32, #tpu.memory_space<vmem>>, vector<1x8x32xf32>
    %211 = vector.shape_cast %210 : vector<1x8x32xf32> to vector<8x32xf32>
    %c30 = arith.constant 30 : index
    %212 = memref.load %arg2[%c30] : memref<108xf32, #tpu.memory_space<smem>>
    %213 = vector.broadcast %212 : f32 to vector<8x32xf32>
    %214 = arith.mulf %213, %211 : vector<8x32xf32>
    %215 = arith.addf %209, %214 : vector<8x32xf32>
    %c2_135 = arith.constant 2 : index
    %c1_136 = arith.constant 1 : index
    %c0_137 = arith.constant 0 : index
    %216 = vector.load %arg7[%c2_135, %c1_136, %c0_137] : memref<4x16x34xf32, #tpu.memory_space<vmem>>, vector<1x8x32xf32>
    %217 = vector.shape_cast %216 : vector<1x8x32xf32> to vector<8x32xf32>
    %c42 = arith.constant 42 : index
    %218 = memref.load %arg2[%c42] : memref<108xf32, #tpu.memory_space<smem>>
    %c78 = arith.constant 78 : index
    %219 = memref.load %arg2[%c78] : memref<108xf32, #tpu.memory_space<smem>>
    %220 = arith.addf %218, %219 : f32
    %221 = vector.broadcast %220 : f32 to vector<8x32xf32>
    %222 = arith.mulf %221, %217 : vector<8x32xf32>
    %223 = arith.addf %215, %222 : vector<8x32xf32>
    %c6_138 = arith.constant 6 : index
    %224 = memref.load %arg2[%c6_138] : memref<108xf32, #tpu.memory_space<smem>>
    %c42_139 = arith.constant 42 : index
    %225 = memref.load %arg2[%c42_139] : memref<108xf32, #tpu.memory_space<smem>>
    %226 = arith.addf %224, %225 : f32
    %227 = vector.broadcast %226 : f32 to vector<8x32xf32>
    %228 = arith.mulf %227, %217 : vector<8x32xf32>
    %229 = arith.addf %197, %228 : vector<8x32xf32>
    %c2_140 = arith.constant 2 : index
    %c1_141 = arith.constant 1 : index
    %c1_142 = arith.constant 1 : index
    %230 = vector.load %arg7[%c2_140, %c1_141, %c1_142] : memref<4x16x34xf32, #tpu.memory_space<vmem>>, vector<1x8x32xf32>
    %231 = vector.shape_cast %230 : vector<1x8x32xf32> to vector<8x32xf32>
    %c54 = arith.constant 54 : index
    %232 = memref.load %arg2[%c54] : memref<108xf32, #tpu.memory_space<smem>>
    %c90 = arith.constant 90 : index
    %233 = memref.load %arg2[%c90] : memref<108xf32, #tpu.memory_space<smem>>
    %234 = arith.addf %232, %233 : f32
    %235 = vector.broadcast %234 : f32 to vector<8x32xf32>
    %236 = arith.mulf %235, %231 : vector<8x32xf32>
    %237 = arith.addf %223, %236 : vector<8x32xf32>
    %c18_143 = arith.constant 18 : index
    %238 = memref.load %arg2[%c18_143] : memref<108xf32, #tpu.memory_space<smem>>
    %c54_144 = arith.constant 54 : index
    %239 = memref.load %arg2[%c54_144] : memref<108xf32, #tpu.memory_space<smem>>
    %240 = arith.addf %238, %239 : f32
    %241 = vector.broadcast %240 : f32 to vector<8x32xf32>
    %242 = arith.mulf %241, %231 : vector<8x32xf32>
    %243 = arith.addf %229, %242 : vector<8x32xf32>
    %c2_145 = arith.constant 2 : index
    %c1_146 = arith.constant 1 : index
    %c2_147 = arith.constant 2 : index
    %244 = vector.load %arg7[%c2_145, %c1_146, %c2_147] : memref<4x16x34xf32, #tpu.memory_space<vmem>>, vector<1x8x32xf32>
    %245 = vector.shape_cast %244 : vector<1x8x32xf32> to vector<8x32xf32>
    %c66 = arith.constant 66 : index
    %246 = memref.load %arg2[%c66] : memref<108xf32, #tpu.memory_space<smem>>
    %c102 = arith.constant 102 : index
    %247 = memref.load %arg2[%c102] : memref<108xf32, #tpu.memory_space<smem>>
    %248 = arith.addf %246, %247 : f32
    %249 = vector.broadcast %248 : f32 to vector<8x32xf32>
    %250 = arith.mulf %249, %245 : vector<8x32xf32>
    %251 = arith.addf %237, %250 : vector<8x32xf32>
    %c30_148 = arith.constant 30 : index
    %252 = memref.load %arg2[%c30_148] : memref<108xf32, #tpu.memory_space<smem>>
    %c66_149 = arith.constant 66 : index
    %253 = memref.load %arg2[%c66_149] : memref<108xf32, #tpu.memory_space<smem>>
    %254 = arith.addf %252, %253 : f32
    %255 = vector.broadcast %254 : f32 to vector<8x32xf32>
    %256 = arith.mulf %255, %245 : vector<8x32xf32>
    %257 = arith.addf %243, %256 : vector<8x32xf32>
    %c2_150 = arith.constant 2 : index
    %c2_151 = arith.constant 2 : index
    %c0_152 = arith.constant 0 : index
    %258 = vector.load %arg7[%c2_150, %c2_151, %c0_152] : memref<4x16x34xf32, #tpu.memory_space<vmem>>, vector<1x8x32xf32>
    %259 = vector.shape_cast %258 : vector<1x8x32xf32> to vector<8x32xf32>
    %c78_153 = arith.constant 78 : index
    %260 = memref.load %arg2[%c78_153] : memref<108xf32, #tpu.memory_space<smem>>
    %261 = vector.broadcast %260 : f32 to vector<8x32xf32>
    %262 = arith.mulf %261, %259 : vector<8x32xf32>
    %263 = arith.addf %257, %262 : vector<8x32xf32>
    %c2_154 = arith.constant 2 : index
    %c2_155 = arith.constant 2 : index
    %c1_156 = arith.constant 1 : index
    %264 = vector.load %arg7[%c2_154, %c2_155, %c1_156] : memref<4x16x34xf32, #tpu.memory_space<vmem>>, vector<1x8x32xf32>
    %265 = vector.shape_cast %264 : vector<1x8x32xf32> to vector<8x32xf32>
    %c90_157 = arith.constant 90 : index
    %266 = memref.load %arg2[%c90_157] : memref<108xf32, #tpu.memory_space<smem>>
    %267 = vector.broadcast %266 : f32 to vector<8x32xf32>
    %268 = arith.mulf %267, %265 : vector<8x32xf32>
    %269 = arith.addf %263, %268 : vector<8x32xf32>
    %c2_158 = arith.constant 2 : index
    %c2_159 = arith.constant 2 : index
    %c2_160 = arith.constant 2 : index
    %270 = vector.load %arg7[%c2_158, %c2_159, %c2_160] : memref<4x16x34xf32, #tpu.memory_space<vmem>>, vector<1x8x32xf32>
    %271 = vector.shape_cast %270 : vector<1x8x32xf32> to vector<8x32xf32>
    %c102_161 = arith.constant 102 : index
    %272 = memref.load %arg2[%c102_161] : memref<108xf32, #tpu.memory_space<smem>>
    %273 = vector.broadcast %272 : f32 to vector<8x32xf32>
    %274 = arith.mulf %273, %271 : vector<8x32xf32>
    %275 = arith.addf %269, %274 : vector<8x32xf32>
    %c3_162 = arith.constant 3 : index
    %c0_163 = arith.constant 0 : index
    %c0_164 = arith.constant 0 : index
    %276 = vector.load %arg7[%c3_162, %c0_163, %c0_164] : memref<4x16x34xf32, #tpu.memory_space<vmem>>, vector<1x8x32xf32>
    %277 = vector.shape_cast %276 : vector<1x8x32xf32> to vector<8x32xf32>
    %c9 = arith.constant 9 : index
    %278 = memref.load %arg2[%c9] : memref<108xf32, #tpu.memory_space<smem>>
    %279 = vector.broadcast %278 : f32 to vector<8x32xf32>
    %280 = arith.mulf %279, %277 : vector<8x32xf32>
    %281 = arith.addf %251, %280 : vector<8x32xf32>
    %c3_165 = arith.constant 3 : index
    %c0_166 = arith.constant 0 : index
    %c1_167 = arith.constant 1 : index
    %282 = vector.load %arg7[%c3_165, %c0_166, %c1_167] : memref<4x16x34xf32, #tpu.memory_space<vmem>>, vector<1x8x32xf32>
    %283 = vector.shape_cast %282 : vector<1x8x32xf32> to vector<8x32xf32>
    %c21 = arith.constant 21 : index
    %284 = memref.load %arg2[%c21] : memref<108xf32, #tpu.memory_space<smem>>
    %285 = vector.broadcast %284 : f32 to vector<8x32xf32>
    %286 = arith.mulf %285, %283 : vector<8x32xf32>
    %287 = arith.addf %281, %286 : vector<8x32xf32>
    %c3_168 = arith.constant 3 : index
    %c0_169 = arith.constant 0 : index
    %c2_170 = arith.constant 2 : index
    %288 = vector.load %arg7[%c3_168, %c0_169, %c2_170] : memref<4x16x34xf32, #tpu.memory_space<vmem>>, vector<1x8x32xf32>
    %289 = vector.shape_cast %288 : vector<1x8x32xf32> to vector<8x32xf32>
    %c33 = arith.constant 33 : index
    %290 = memref.load %arg2[%c33] : memref<108xf32, #tpu.memory_space<smem>>
    %291 = vector.broadcast %290 : f32 to vector<8x32xf32>
    %292 = arith.mulf %291, %289 : vector<8x32xf32>
    %293 = arith.addf %287, %292 : vector<8x32xf32>
    %c3_171 = arith.constant 3 : index
    %c1_172 = arith.constant 1 : index
    %c0_173 = arith.constant 0 : index
    %294 = vector.load %arg7[%c3_171, %c1_172, %c0_173] : memref<4x16x34xf32, #tpu.memory_space<vmem>>, vector<1x8x32xf32>
    %295 = vector.shape_cast %294 : vector<1x8x32xf32> to vector<8x32xf32>
    %c45 = arith.constant 45 : index
    %296 = memref.load %arg2[%c45] : memref<108xf32, #tpu.memory_space<smem>>
    %c81 = arith.constant 81 : index
    %297 = memref.load %arg2[%c81] : memref<108xf32, #tpu.memory_space<smem>>
    %298 = arith.addf %296, %297 : f32
    %299 = vector.broadcast %298 : f32 to vector<8x32xf32>
    %300 = arith.mulf %299, %295 : vector<8x32xf32>
    %301 = arith.addf %293, %300 : vector<8x32xf32>
    %c9_174 = arith.constant 9 : index
    %302 = memref.load %arg2[%c9_174] : memref<108xf32, #tpu.memory_space<smem>>
    %c45_175 = arith.constant 45 : index
    %303 = memref.load %arg2[%c45_175] : memref<108xf32, #tpu.memory_space<smem>>
    %304 = arith.addf %302, %303 : f32
    %305 = vector.broadcast %304 : f32 to vector<8x32xf32>
    %306 = arith.mulf %305, %295 : vector<8x32xf32>
    %307 = arith.addf %275, %306 : vector<8x32xf32>
    %c3_176 = arith.constant 3 : index
    %c1_177 = arith.constant 1 : index
    %c1_178 = arith.constant 1 : index
    %308 = vector.load %arg7[%c3_176, %c1_177, %c1_178] : memref<4x16x34xf32, #tpu.memory_space<vmem>>, vector<1x8x32xf32>
    %309 = vector.shape_cast %308 : vector<1x8x32xf32> to vector<8x32xf32>
    %c57 = arith.constant 57 : index
    %310 = memref.load %arg2[%c57] : memref<108xf32, #tpu.memory_space<smem>>
    %c93 = arith.constant 93 : index
    %311 = memref.load %arg2[%c93] : memref<108xf32, #tpu.memory_space<smem>>
    %312 = arith.addf %310, %311 : f32
    %313 = vector.broadcast %312 : f32 to vector<8x32xf32>
    %314 = arith.mulf %313, %309 : vector<8x32xf32>
    %315 = arith.addf %301, %314 : vector<8x32xf32>
    %c21_179 = arith.constant 21 : index
    %316 = memref.load %arg2[%c21_179] : memref<108xf32, #tpu.memory_space<smem>>
    %c57_180 = arith.constant 57 : index
    %317 = memref.load %arg2[%c57_180] : memref<108xf32, #tpu.memory_space<smem>>
    %318 = arith.addf %316, %317 : f32
    %319 = vector.broadcast %318 : f32 to vector<8x32xf32>
    %320 = arith.mulf %319, %309 : vector<8x32xf32>
    %321 = arith.addf %307, %320 : vector<8x32xf32>
    %c3_181 = arith.constant 3 : index
    %c1_182 = arith.constant 1 : index
    %c2_183 = arith.constant 2 : index
    %322 = vector.load %arg7[%c3_181, %c1_182, %c2_183] : memref<4x16x34xf32, #tpu.memory_space<vmem>>, vector<1x8x32xf32>
    %323 = vector.shape_cast %322 : vector<1x8x32xf32> to vector<8x32xf32>
    %c69 = arith.constant 69 : index
    %324 = memref.load %arg2[%c69] : memref<108xf32, #tpu.memory_space<smem>>
    %c105 = arith.constant 105 : index
    %325 = memref.load %arg2[%c105] : memref<108xf32, #tpu.memory_space<smem>>
    %326 = arith.addf %324, %325 : f32
    %327 = vector.broadcast %326 : f32 to vector<8x32xf32>
    %328 = arith.mulf %327, %323 : vector<8x32xf32>
    %329 = arith.addf %315, %328 : vector<8x32xf32>
    %c33_184 = arith.constant 33 : index
    %330 = memref.load %arg2[%c33_184] : memref<108xf32, #tpu.memory_space<smem>>
    %c69_185 = arith.constant 69 : index
    %331 = memref.load %arg2[%c69_185] : memref<108xf32, #tpu.memory_space<smem>>
    %332 = arith.addf %330, %331 : f32
    %333 = vector.broadcast %332 : f32 to vector<8x32xf32>
    %334 = arith.mulf %333, %323 : vector<8x32xf32>
    %335 = arith.addf %321, %334 : vector<8x32xf32>
    %c3_186 = arith.constant 3 : index
    %c2_187 = arith.constant 2 : index
    %c0_188 = arith.constant 0 : index
    %336 = vector.load %arg7[%c3_186, %c2_187, %c0_188] : memref<4x16x34xf32, #tpu.memory_space<vmem>>, vector<1x8x32xf32>
    %337 = vector.shape_cast %336 : vector<1x8x32xf32> to vector<8x32xf32>
    %c81_189 = arith.constant 81 : index
    %338 = memref.load %arg2[%c81_189] : memref<108xf32, #tpu.memory_space<smem>>
    %339 = vector.broadcast %338 : f32 to vector<8x32xf32>
    %340 = arith.mulf %339, %337 : vector<8x32xf32>
    %341 = arith.addf %335, %340 : vector<8x32xf32>
    %c3_190 = arith.constant 3 : index
    %c2_191 = arith.constant 2 : index
    %c1_192 = arith.constant 1 : index
    %342 = vector.load %arg7[%c3_190, %c2_191, %c1_192] : memref<4x16x34xf32, #tpu.memory_space<vmem>>, vector<1x8x32xf32>
    %343 = vector.shape_cast %342 : vector<1x8x32xf32> to vector<8x32xf32>
    %c93_193 = arith.constant 93 : index
    %344 = memref.load %arg2[%c93_193] : memref<108xf32, #tpu.memory_space<smem>>
    %345 = vector.broadcast %344 : f32 to vector<8x32xf32>
    %346 = arith.mulf %345, %343 : vector<8x32xf32>
    %347 = arith.addf %341, %346 : vector<8x32xf32>
    %c3_194 = arith.constant 3 : index
    %c2_195 = arith.constant 2 : index
    %c2_196 = arith.constant 2 : index
    %348 = vector.load %arg7[%c3_194, %c2_195, %c2_196] : memref<4x16x34xf32, #tpu.memory_space<vmem>>, vector<1x8x32xf32>
    %349 = vector.shape_cast %348 : vector<1x8x32xf32> to vector<8x32xf32>
    %c105_197 = arith.constant 105 : index
    %350 = memref.load %arg2[%c105_197] : memref<108xf32, #tpu.memory_space<smem>>
    %351 = vector.broadcast %350 : f32 to vector<8x32xf32>
    %352 = arith.mulf %351, %349 : vector<8x32xf32>
    %353 = arith.addf %347, %352 : vector<8x32xf32>
    %354 = tpu.concatenate %329, %353 in 1 : vector<8x32xf32>, vector<8x32xf32> -> vector<8x64xf32>
    %c0_198 = arith.constant 0 : index
    %355 = memref.load %arg3[%c0_198] : memref<3xf32, #tpu.memory_space<smem>>
    %356 = vector.broadcast %355 : f32 to vector<8x64xf32>
    %357 = arith.addf %354, %356 : vector<8x64xf32>
    %c0_199 = arith.constant 0 : index
    %c0_200 = arith.constant 0 : index
    %c0_201 = arith.constant 0 : index
    %c0_202 = arith.constant 0 : index
    %358 = vector.load %arg6[%c0_199, %c0_200, %c0_201, %c0_202] : memref<1x3x8x64xf32, #tpu.memory_space<vmem>>, vector<1x1x8x64xf32>
    %359 = vector.shape_cast %358 : vector<1x1x8x64xf32> to vector<8x64xf32>
    %360 = vector.shape_cast %357 : vector<8x64xf32> to vector<1x1x8x64xf32>
    tpu.vector_store %arg6[%c0_199, %c0_200, %c0_201, %c0_202], %360 {strides = array<i32>} : memref<1x3x8x64xf32, #tpu.memory_space<vmem>>, vector<1x1x8x64xf32>,
    %cst_203 = arith.constant 0.000000e+00 : f32
    %361 = vector.broadcast %cst_203 : f32 to vector<8x32xf32>
    %cst_204 = arith.constant 0.000000e+00 : f32
    %362 = vector.broadcast %cst_204 : f32 to vector<8x32xf32>
    %c0_205 = arith.constant 0 : index
    %c0_206 = arith.constant 0 : index
    %c0_207 = arith.constant 0 : index
    %363 = vector.load %arg7[%c0_205, %c0_206, %c0_207] : memref<4x16x34xf32, #tpu.memory_space<vmem>>, vector<1x8x32xf32>
    %364 = vector.shape_cast %363 : vector<1x8x32xf32> to vector<8x32xf32>
    %c1_208 = arith.constant 1 : index
    %365 = memref.load %arg2[%c1_208] : memref<108xf32, #tpu.memory_space<smem>>
    %366 = vector.broadcast %365 : f32 to vector<8x32xf32>
    %367 = arith.mulf %366, %364 : vector<8x32xf32>
    %368 = arith.addf %361, %367 : vector<8x32xf32>
    %c0_209 = arith.constant 0 : index
    %c0_210 = arith.constant 0 : index
    %c1_211 = arith.constant 1 : index
    %369 = vector.load %arg7[%c0_209, %c0_210, %c1_211] : memref<4x16x34xf32, #tpu.memory_space<vmem>>, vector<1x8x32xf32>
    %370 = vector.shape_cast %369 : vector<1x8x32xf32> to vector<8x32xf32>
    %c13 = arith.constant 13 : index
    %371 = memref.load %arg2[%c13] : memref<108xf32, #tpu.memory_space<smem>>
    %372 = vector.broadcast %371 : f32 to vector<8x32xf32>
    %373 = arith.mulf %372, %370 : vector<8x32xf32>
    %374 = arith.addf %368, %373 : vector<8x32xf32>
    %c0_212 = arith.constant 0 : index
    %c0_213 = arith.constant 0 : index
    %c2_214 = arith.constant 2 : index
    %375 = vector.load %arg7[%c0_212, %c0_213, %c2_214] : memref<4x16x34xf32, #tpu.memory_space<vmem>>, vector<1x8x32xf32>
    %376 = vector.shape_cast %375 : vector<1x8x32xf32> to vector<8x32xf32>
    %c25 = arith.constant 25 : index
    %377 = memref.load %arg2[%c25] : memref<108xf32, #tpu.memory_space<smem>>
    %378 = vector.broadcast %377 : f32 to vector<8x32xf32>
    %379 = arith.mulf %378, %376 : vector<8x32xf32>
    %380 = arith.addf %374, %379 : vector<8x32xf32>
    %c0_215 = arith.constant 0 : index
    %c1_216 = arith.constant 1 : index
    %c0_217 = arith.constant 0 : index
    %381 = vector.load %arg7[%c0_215, %c1_216, %c0_217] : memref<4x16x34xf32, #tpu.memory_space<vmem>>, vector<1x8x32xf32>
    %382 = vector.shape_cast %381 : vector<1x8x32xf32> to vector<8x32xf32>
    %c37 = arith.constant 37 : index
    %383 = memref.load %arg2[%c37] : memref<108xf32, #tpu.memory_space<smem>>
    %c73 = arith.constant 73 : index
    %384 = memref.load %arg2[%c73] : memref<108xf32, #tpu.memory_space<smem>>
    %385 = arith.addf %383, %384 : f32
    %386 = vector.broadcast %385 : f32 to vector<8x32xf32>
    %387 = arith.mulf %386, %382 : vector<8x32xf32>
    %388 = arith.addf %380, %387 : vector<8x32xf32>
    %c1_218 = arith.constant 1 : index
    %389 = memref.load %arg2[%c1_218] : memref<108xf32, #tpu.memory_space<smem>>
    %c37_219 = arith.constant 37 : index
    %390 = memref.load %arg2[%c37_219] : memref<108xf32, #tpu.memory_space<smem>>
    %391 = arith.addf %389, %390 : f32
    %392 = vector.broadcast %391 : f32 to vector<8x32xf32>
    %393 = arith.mulf %392, %382 : vector<8x32xf32>
    %394 = arith.addf %362, %393 : vector<8x32xf32>
    %c0_220 = arith.constant 0 : index
    %c1_221 = arith.constant 1 : index
    %c1_222 = arith.constant 1 : index
    %395 = vector.load %arg7[%c0_220, %c1_221, %c1_222] : memref<4x16x34xf32, #tpu.memory_space<vmem>>, vector<1x8x32xf32>
    %396 = vector.shape_cast %395 : vector<1x8x32xf32> to vector<8x32xf32>
    %c49 = arith.constant 49 : index
    %397 = memref.load %arg2[%c49] : memref<108xf32, #tpu.memory_space<smem>>
    %c85 = arith.constant 85 : index
    %398 = memref.load %arg2[%c85] : memref<108xf32, #tpu.memory_space<smem>>
    %399 = arith.addf %397, %398 : f32
    %400 = vector.broadcast %399 : f32 to vector<8x32xf32>
    %401 = arith.mulf %400, %396 : vector<8x32xf32>
    %402 = arith.addf %388, %401 : vector<8x32xf32>
    %c13_223 = arith.constant 13 : index
    %403 = memref.load %arg2[%c13_223] : memref<108xf32, #tpu.memory_space<smem>>
    %c49_224 = arith.constant 49 : index
    %404 = memref.load %arg2[%c49_224] : memref<108xf32, #tpu.memory_space<smem>>
    %405 = arith.addf %403, %404 : f32
    %406 = vector.broadcast %405 : f32 to vector<8x32xf32>
    %407 = arith.mulf %406, %396 : vector<8x32xf32>
    %408 = arith.addf %394, %407 : vector<8x32xf32>
    %c0_225 = arith.constant 0 : index
    %c1_226 = arith.constant 1 : index
    %c2_227 = arith.constant 2 : index
    %409 = vector.load %arg7[%c0_225, %c1_226, %c2_227] : memref<4x16x34xf32, #tpu.memory_space<vmem>>, vector<1x8x32xf32>
    %410 = vector.shape_cast %409 : vector<1x8x32xf32> to vector<8x32xf32>
    %c61 = arith.constant 61 : index
    %411 = memref.load %arg2[%c61] : memref<108xf32, #tpu.memory_space<smem>>
    %c97 = arith.constant 97 : index
    %412 = memref.load %arg2[%c97] : memref<108xf32, #tpu.memory_space<smem>>
    %413 = arith.addf %411, %412 : f32
    %414 = vector.broadcast %413 : f32 to vector<8x32xf32>
    %415 = arith.mulf %414, %410 : vector<8x32xf32>
    %416 = arith.addf %402, %415 : vector<8x32xf32>
    %c25_228 = arith.constant 25 : index
    %417 = memref.load %arg2[%c25_228] : memref<108xf32, #tpu.memory_space<smem>>
    %c61_229 = arith.constant 61 : index
    %418 = memref.load %arg2[%c61_229] : memref<108xf32, #tpu.memory_space<smem>>
    %419 = arith.addf %417, %418 : f32
    %420 = vector.broadcast %419 : f32 to vector<8x32xf32>
    %421 = arith.mulf %420, %410 : vector<8x32xf32>
    %422 = arith.addf %408, %421 : vector<8x32xf32>
    %c0_230 = arith.constant 0 : index
    %c2_231 = arith.constant 2 : index
    %c0_232 = arith.constant 0 : index
    %423 = vector.load %arg7[%c0_230, %c2_231, %c0_232] : memref<4x16x34xf32, #tpu.memory_space<vmem>>, vector<1x8x32xf32>
    %424 = vector.shape_cast %423 : vector<1x8x32xf32> to vector<8x32xf32>
    %c73_233 = arith.constant 73 : index
    %425 = memref.load %arg2[%c73_233] : memref<108xf32, #tpu.memory_space<smem>>
    %426 = vector.broadcast %425 : f32 to vector<8x32xf32>
    %427 = arith.mulf %426, %424 : vector<8x32xf32>
    %428 = arith.addf %422, %427 : vector<8x32xf32>
    %c0_234 = arith.constant 0 : index
    %c2_235 = arith.constant 2 : index
    %c1_236 = arith.constant 1 : index
    %429 = vector.load %arg7[%c0_234, %c2_235, %c1_236] : memref<4x16x34xf32, #tpu.memory_space<vmem>>, vector<1x8x32xf32>
    %430 = vector.shape_cast %429 : vector<1x8x32xf32> to vector<8x32xf32>
    %c85_237 = arith.constant 85 : index
    %431 = memref.load %arg2[%c85_237] : memref<108xf32, #tpu.memory_space<smem>>
    %432 = vector.broadcast %431 : f32 to vector<8x32xf32>
    %433 = arith.mulf %432, %430 : vector<8x32xf32>
    %434 = arith.addf %428, %433 : vector<8x32xf32>
    %c0_238 = arith.constant 0 : index
    %c2_239 = arith.constant 2 : index
    %c2_240 = arith.constant 2 : index
    %435 = vector.load %arg7[%c0_238, %c2_239, %c2_240] : memref<4x16x34xf32, #tpu.memory_space<vmem>>, vector<1x8x32xf32>
    %436 = vector.shape_cast %435 : vector<1x8x32xf32> to vector<8x32xf32>
    %c97_241 = arith.constant 97 : index
    %437 = memref.load %arg2[%c97_241] : memref<108xf32, #tpu.memory_space<smem>>
    %438 = vector.broadcast %437 : f32 to vector<8x32xf32>
    %439 = arith.mulf %438, %436 : vector<8x32xf32>
    %440 = arith.addf %434, %439 : vector<8x32xf32>
    %c1_242 = arith.constant 1 : index
    %c0_243 = arith.constant 0 : index
    %c0_244 = arith.constant 0 : index
    %441 = vector.load %arg7[%c1_242, %c0_243, %c0_244] : memref<4x16x34xf32, #tpu.memory_space<vmem>>, vector<1x8x32xf32>
    %442 = vector.shape_cast %441 : vector<1x8x32xf32> to vector<8x32xf32>
    %c4 = arith.constant 4 : index
    %443 = memref.load %arg2[%c4] : memref<108xf32, #tpu.memory_space<smem>>
    %444 = vector.broadcast %443 : f32 to vector<8x32xf32>
    %445 = arith.mulf %444, %442 : vector<8x32xf32>
    %446 = arith.addf %416, %445 : vector<8x32xf32>
    %c1_245 = arith.constant 1 : index
    %c0_246 = arith.constant 0 : index
    %c1_247 = arith.constant 1 : index
    %447 = vector.load %arg7[%c1_245, %c0_246, %c1_247] : memref<4x16x34xf32, #tpu.memory_space<vmem>>, vector<1x8x32xf32>
    %448 = vector.shape_cast %447 : vector<1x8x32xf32> to vector<8x32xf32>
    %c16 = arith.constant 16 : index
    %449 = memref.load %arg2[%c16] : memref<108xf32, #tpu.memory_space<smem>>
    %450 = vector.broadcast %449 : f32 to vector<8x32xf32>
    %451 = arith.mulf %450, %448 : vector<8x32xf32>
    %452 = arith.addf %446, %451 : vector<8x32xf32>
    %c1_248 = arith.constant 1 : index
    %c0_249 = arith.constant 0 : index
    %c2_250 = arith.constant 2 : index
    %453 = vector.load %arg7[%c1_248, %c0_249, %c2_250] : memref<4x16x34xf32, #tpu.memory_space<vmem>>, vector<1x8x32xf32>
    %454 = vector.shape_cast %453 : vector<1x8x32xf32> to vector<8x32xf32>
    %c28 = arith.constant 28 : index
    %455 = memref.load %arg2[%c28] : memref<108xf32, #tpu.memory_space<smem>>
    %456 = vector.broadcast %455 : f32 to vector<8x32xf32>
    %457 = arith.mulf %456, %454 : vector<8x32xf32>
    %458 = arith.addf %452, %457 : vector<8x32xf32>
    %c1_251 = arith.constant 1 : index
    %c1_252 = arith.constant 1 : index
    %c0_253 = arith.constant 0 : index
    %459 = vector.load %arg7[%c1_251, %c1_252, %c0_253] : memref<4x16x34xf32, #tpu.memory_space<vmem>>, vector<1x8x32xf32>
    %460 = vector.shape_cast %459 : vector<1x8x32xf32> to vector<8x32xf32>
    %c40 = arith.constant 40 : index
    %461 = memref.load %arg2[%c40] : memref<108xf32, #tpu.memory_space<smem>>
    %c76 = arith.constant 76 : index
    %462 = memref.load %arg2[%c76] : memref<108xf32, #tpu.memory_space<smem>>
    %463 = arith.addf %461, %462 : f32
    %464 = vector.broadcast %463 : f32 to vector<8x32xf32>
    %465 = arith.mulf %464, %460 : vector<8x32xf32>
    %466 = arith.addf %458, %465 : vector<8x32xf32>
    %c4_254 = arith.constant 4 : index
    %467 = memref.load %arg2[%c4_254] : memref<108xf32, #tpu.memory_space<smem>>
    %c40_255 = arith.constant 40 : index
    %468 = memref.load %arg2[%c40_255] : memref<108xf32, #tpu.memory_space<smem>>
    %469 = arith.addf %467, %468 : f32
    %470 = vector.broadcast %469 : f32 to vector<8x32xf32>
    %471 = arith.mulf %470, %460 : vector<8x32xf32>
    %472 = arith.addf %440, %471 : vector<8x32xf32>
    %c1_256 = arith.constant 1 : index
    %c1_257 = arith.constant 1 : index
    %c1_258 = arith.constant 1 : index
    %473 = vector.load %arg7[%c1_256, %c1_257, %c1_258] : memref<4x16x34xf32, #tpu.memory_space<vmem>>, vector<1x8x32xf32>
    %474 = vector.shape_cast %473 : vector<1x8x32xf32> to vector<8x32xf32>
    %c52 = arith.constant 52 : index
    %475 = memref.load %arg2[%c52] : memref<108xf32, #tpu.memory_space<smem>>
    %c88 = arith.constant 88 : index
    %476 = memref.load %arg2[%c88] : memref<108xf32, #tpu.memory_space<smem>>
    %477 = arith.addf %475, %476 : f32
    %478 = vector.broadcast %477 : f32 to vector<8x32xf32>
    %479 = arith.mulf %478, %474 : vector<8x32xf32>
    %480 = arith.addf %466, %479 : vector<8x32xf32>
    %c16_259 = arith.constant 16 : index
    %481 = memref.load %arg2[%c16_259] : memref<108xf32, #tpu.memory_space<smem>>
    %c52_260 = arith.constant 52 : index
    %482 = memref.load %arg2[%c52_260] : memref<108xf32, #tpu.memory_space<smem>>
    %483 = arith.addf %481, %482 : f32
    %484 = vector.broadcast %483 : f32 to vector<8x32xf32>
    %485 = arith.mulf %484, %474 : vector<8x32xf32>
    %486 = arith.addf %472, %485 : vector<8x32xf32>
    %c1_261 = arith.constant 1 : index
    %c1_262 = arith.constant 1 : index
    %c2_263 = arith.constant 2 : index
    %487 = vector.load %arg7[%c1_261, %c1_262, %c2_263] : memref<4x16x34xf32, #tpu.memory_space<vmem>>, vector<1x8x32xf32>
    %488 = vector.shape_cast %487 : vector<1x8x32xf32> to vector<8x32xf32>
    %c64 = arith.constant 64 : index
    %489 = memref.load %arg2[%c64] : memref<108xf32, #tpu.memory_space<smem>>
    %c100 = arith.constant 100 : index
    %490 = memref.load %arg2[%c100] : memref<108xf32, #tpu.memory_space<smem>>
    %491 = arith.addf %489, %490 : f32
    %492 = vector.broadcast %491 : f32 to vector<8x32xf32>
    %493 = arith.mulf %492, %488 : vector<8x32xf32>
    %494 = arith.addf %480, %493 : vector<8x32xf32>
    %c28_264 = arith.constant 28 : index
    %495 = memref.load %arg2[%c28_264] : memref<108xf32, #tpu.memory_space<smem>>
    %c64_265 = arith.constant 64 : index
    %496 = memref.load %arg2[%c64_265] : memref<108xf32, #tpu.memory_space<smem>>
    %497 = arith.addf %495, %496 : f32
    %498 = vector.broadcast %497 : f32 to vector<8x32xf32>
    %499 = arith.mulf %498, %488 : vector<8x32xf32>
    %500 = arith.addf %486, %499 : vector<8x32xf32>
    %c1_266 = arith.constant 1 : index
    %c2_267 = arith.constant 2 : index
    %c0_268 = arith.constant 0 : index
    %501 = vector.load %arg7[%c1_266, %c2_267, %c0_268] : memref<4x16x34xf32, #tpu.memory_space<vmem>>, vector<1x8x32xf32>
    %502 = vector.shape_cast %501 : vector<1x8x32xf32> to vector<8x32xf32>
    %c76_269 = arith.constant 76 : index
    %503 = memref.load %arg2[%c76_269] : memref<108xf32, #tpu.memory_space<smem>>
    %504 = vector.broadcast %503 : f32 to vector<8x32xf32>
    %505 = arith.mulf %504, %502 : vector<8x32xf32>
    %506 = arith.addf %500, %505 : vector<8x32xf32>
    %c1_270 = arith.constant 1 : index
    %c2_271 = arith.constant 2 : index
    %c1_272 = arith.constant 1 : index
    %507 = vector.load %arg7[%c1_270, %c2_271, %c1_272] : memref<4x16x34xf32, #tpu.memory_space<vmem>>, vector<1x8x32xf32>
    %508 = vector.shape_cast %507 : vector<1x8x32xf32> to vector<8x32xf32>
    %c88_273 = arith.constant 88 : index
    %509 = memref.load %arg2[%c88_273] : memref<108xf32, #tpu.memory_space<smem>>
    %510 = vector.broadcast %509 : f32 to vector<8x32xf32>
    %511 = arith.mulf %510, %508 : vector<8x32xf32>
    %512 = arith.addf %506, %511 : vector<8x32xf32>
    %c1_274 = arith.constant 1 : index
    %c2_275 = arith.constant 2 : index
    %c2_276 = arith.constant 2 : index
    %513 = vector.load %arg7[%c1_274, %c2_275, %c2_276] : memref<4x16x34xf32, #tpu.memory_space<vmem>>, vector<1x8x32xf32>
    %514 = vector.shape_cast %513 : vector<1x8x32xf32> to vector<8x32xf32>
    %c100_277 = arith.constant 100 : index
    %515 = memref.load %arg2[%c100_277] : memref<108xf32, #tpu.memory_space<smem>>
    %516 = vector.broadcast %515 : f32 to vector<8x32xf32>
    %517 = arith.mulf %516, %514 : vector<8x32xf32>
    %518 = arith.addf %512, %517 : vector<8x32xf32>
    %c2_278 = arith.constant 2 : index
    %c0_279 = arith.constant 0 : index
    %c0_280 = arith.constant 0 : index
    %519 = vector.load %arg7[%c2_278, %c0_279, %c0_280] : memref<4x16x34xf32, #tpu.memory_space<vmem>>, vector<1x8x32xf32>
    %520 = vector.shape_cast %519 : vector<1x8x32xf32> to vector<8x32xf32>
    %c7 = arith.constant 7 : index
    %521 = memref.load %arg2[%c7] : memref<108xf32, #tpu.memory_space<smem>>
    %522 = vector.broadcast %521 : f32 to vector<8x32xf32>
    %523 = arith.mulf %522, %520 : vector<8x32xf32>
    %524 = arith.addf %494, %523 : vector<8x32xf32>
    %c2_281 = arith.constant 2 : index
    %c0_282 = arith.constant 0 : index
    %c1_283 = arith.constant 1 : index
    %525 = vector.load %arg7[%c2_281, %c0_282, %c1_283] : memref<4x16x34xf32, #tpu.memory_space<vmem>>, vector<1x8x32xf32>
    %526 = vector.shape_cast %525 : vector<1x8x32xf32> to vector<8x32xf32>
    %c19 = arith.constant 19 : index
    %527 = memref.load %arg2[%c19] : memref<108xf32, #tpu.memory_space<smem>>
    %528 = vector.broadcast %527 : f32 to vector<8x32xf32>
    %529 = arith.mulf %528, %526 : vector<8x32xf32>
    %530 = arith.addf %524, %529 : vector<8x32xf32>
    %c2_284 = arith.constant 2 : index
    %c0_285 = arith.constant 0 : index
    %c2_286 = arith.constant 2 : index
    %531 = vector.load %arg7[%c2_284, %c0_285, %c2_286] : memref<4x16x34xf32, #tpu.memory_space<vmem>>, vector<1x8x32xf32>
    %532 = vector.shape_cast %531 : vector<1x8x32xf32> to vector<8x32xf32>
    %c31 = arith.constant 31 : index
    %533 = memref.load %arg2[%c31] : memref<108xf32, #tpu.memory_space<smem>>
    %534 = vector.broadcast %533 : f32 to vector<8x32xf32>
    %535 = arith.mulf %534, %532 : vector<8x32xf32>
    %536 = arith.addf %530, %535 : vector<8x32xf32>
    %c2_287 = arith.constant 2 : index
    %c1_288 = arith.constant 1 : index
    %c0_289 = arith.constant 0 : index
    %537 = vector.load %arg7[%c2_287, %c1_288, %c0_289] : memref<4x16x34xf32, #tpu.memory_space<vmem>>, vector<1x8x32xf32>
    %538 = vector.shape_cast %537 : vector<1x8x32xf32> to vector<8x32xf32>
    %c43 = arith.constant 43 : index
    %539 = memref.load %arg2[%c43] : memref<108xf32, #tpu.memory_space<smem>>
    %c79 = arith.constant 79 : index
    %540 = memref.load %arg2[%c79] : memref<108xf32, #tpu.memory_space<smem>>
    %541 = arith.addf %539, %540 : f32
    %542 = vector.broadcast %541 : f32 to vector<8x32xf32>
    %543 = arith.mulf %542, %538 : vector<8x32xf32>
    %544 = arith.addf %536, %543 : vector<8x32xf32>
    %c7_290 = arith.constant 7 : index
    %545 = memref.load %arg2[%c7_290] : memref<108xf32, #tpu.memory_space<smem>>
    %c43_291 = arith.constant 43 : index
    %546 = memref.load %arg2[%c43_291] : memref<108xf32, #tpu.memory_space<smem>>
    %547 = arith.addf %545, %546 : f32
    %548 = vector.broadcast %547 : f32 to vector<8x32xf32>
    %549 = arith.mulf %548, %538 : vector<8x32xf32>
    %550 = arith.addf %518, %549 : vector<8x32xf32>
    %c2_292 = arith.constant 2 : index
    %c1_293 = arith.constant 1 : index
    %c1_294 = arith.constant 1 : index
    %551 = vector.load %arg7[%c2_292, %c1_293, %c1_294] : memref<4x16x34xf32, #tpu.memory_space<vmem>>, vector<1x8x32xf32>
    %552 = vector.shape_cast %551 : vector<1x8x32xf32> to vector<8x32xf32>
    %c55 = arith.constant 55 : index
    %553 = memref.load %arg2[%c55] : memref<108xf32, #tpu.memory_space<smem>>
    %c91 = arith.constant 91 : index
    %554 = memref.load %arg2[%c91] : memref<108xf32, #tpu.memory_space<smem>>
    %555 = arith.addf %553, %554 : f32
    %556 = vector.broadcast %555 : f32 to vector<8x32xf32>
    %557 = arith.mulf %556, %552 : vector<8x32xf32>
    %558 = arith.addf %544, %557 : vector<8x32xf32>
    %c19_295 = arith.constant 19 : index
    %559 = memref.load %arg2[%c19_295] : memref<108xf32, #tpu.memory_space<smem>>
    %c55_296 = arith.constant 55 : index
    %560 = memref.load %arg2[%c55_296] : memref<108xf32, #tpu.memory_space<smem>>
    %561 = arith.addf %559, %560 : f32
    %562 = vector.broadcast %561 : f32 to vector<8x32xf32>
    %563 = arith.mulf %562, %552 : vector<8x32xf32>
    %564 = arith.addf %550, %563 : vector<8x32xf32>
    %c2_297 = arith.constant 2 : index
    %c1_298 = arith.constant 1 : index
    %c2_299 = arith.constant 2 : index
    %565 = vector.load %arg7[%c2_297, %c1_298, %c2_299] : memref<4x16x34xf32, #tpu.memory_space<vmem>>, vector<1x8x32xf32>
    %566 = vector.shape_cast %565 : vector<1x8x32xf32> to vector<8x32xf32>
    %c67 = arith.constant 67 : index
    %567 = memref.load %arg2[%c67] : memref<108xf32, #tpu.memory_space<smem>>
    %c103 = arith.constant 103 : index
    %568 = memref.load %arg2[%c103] : memref<108xf32, #tpu.memory_space<smem>>
    %569 = arith.addf %567, %568 : f32
    %570 = vector.broadcast %569 : f32 to vector<8x32xf32>
    %571 = arith.mulf %570, %566 : vector<8x32xf32>
    %572 = arith.addf %558, %571 : vector<8x32xf32>
    %c31_300 = arith.constant 31 : index
    %573 = memref.load %arg2[%c31_300] : memref<108xf32, #tpu.memory_space<smem>>
    %c67_301 = arith.constant 67 : index
    %574 = memref.load %arg2[%c67_301] : memref<108xf32, #tpu.memory_space<smem>>
    %575 = arith.addf %573, %574 : f32
    %576 = vector.broadcast %575 : f32 to vector<8x32xf32>
    %577 = arith.mulf %576, %566 : vector<8x32xf32>
    %578 = arith.addf %564, %577 : vector<8x32xf32>
    %c2_302 = arith.constant 2 : index
    %c2_303 = arith.constant 2 : index
    %c0_304 = arith.constant 0 : index
    %579 = vector.load %arg7[%c2_302, %c2_303, %c0_304] : memref<4x16x34xf32, #tpu.memory_space<vmem>>, vector<1x8x32xf32>
    %580 = vector.shape_cast %579 : vector<1x8x32xf32> to vector<8x32xf32>
    %c79_305 = arith.constant 79 : index
    %581 = memref.load %arg2[%c79_305] : memref<108xf32, #tpu.memory_space<smem>>
    %582 = vector.broadcast %581 : f32 to vector<8x32xf32>
    %583 = arith.mulf %582, %580 : vector<8x32xf32>
    %584 = arith.addf %578, %583 : vector<8x32xf32>
    %c2_306 = arith.constant 2 : index
    %c2_307 = arith.constant 2 : index
    %c1_308 = arith.constant 1 : index
    %585 = vector.load %arg7[%c2_306, %c2_307, %c1_308] : memref<4x16x34xf32, #tpu.memory_space<vmem>>, vector<1x8x32xf32>
    %586 = vector.shape_cast %585 : vector<1x8x32xf32> to vector<8x32xf32>
    %c91_309 = arith.constant 91 : index
    %587 = memref.load %arg2[%c91_309] : memref<108xf32, #tpu.memory_space<smem>>
    %588 = vector.broadcast %587 : f32 to vector<8x32xf32>
    %589 = arith.mulf %588, %586 : vector<8x32xf32>
    %590 = arith.addf %584, %589 : vector<8x32xf32>
    %c2_310 = arith.constant 2 : index
    %c2_311 = arith.constant 2 : index
    %c2_312 = arith.constant 2 : index
    %591 = vector.load %arg7[%c2_310, %c2_311, %c2_312] : memref<4x16x34xf32, #tpu.memory_space<vmem>>, vector<1x8x32xf32>
    %592 = vector.shape_cast %591 : vector<1x8x32xf32> to vector<8x32xf32>
    %c103_313 = arith.constant 103 : index
    %593 = memref.load %arg2[%c103_313] : memref<108xf32, #tpu.memory_space<smem>>
    %594 = vector.broadcast %593 : f32 to vector<8x32xf32>
    %595 = arith.mulf %594, %592 : vector<8x32xf32>
    %596 = arith.addf %590, %595 : vector<8x32xf32>
    %c3_314 = arith.constant 3 : index
    %c0_315 = arith.constant 0 : index
    %c0_316 = arith.constant 0 : index
    %597 = vector.load %arg7[%c3_314, %c0_315, %c0_316] : memref<4x16x34xf32, #tpu.memory_space<vmem>>, vector<1x8x32xf32>
    %598 = vector.shape_cast %597 : vector<1x8x32xf32> to vector<8x32xf32>
    %c10 = arith.constant 10 : index
    %599 = memref.load %arg2[%c10] : memref<108xf32, #tpu.memory_space<smem>>
    %600 = vector.broadcast %599 : f32 to vector<8x32xf32>
    %601 = arith.mulf %600, %598 : vector<8x32xf32>
    %602 = arith.addf %572, %601 : vector<8x32xf32>
    %c3_317 = arith.constant 3 : index
    %c0_318 = arith.constant 0 : index
    %c1_319 = arith.constant 1 : index
    %603 = vector.load %arg7[%c3_317, %c0_318, %c1_319] : memref<4x16x34xf32, #tpu.memory_space<vmem>>, vector<1x8x32xf32>
    %604 = vector.shape_cast %603 : vector<1x8x32xf32> to vector<8x32xf32>
    %c22 = arith.constant 22 : index
    %605 = memref.load %arg2[%c22] : memref<108xf32, #tpu.memory_space<smem>>
    %606 = vector.broadcast %605 : f32 to vector<8x32xf32>
    %607 = arith.mulf %606, %604 : vector<8x32xf32>
    %608 = arith.addf %602, %607 : vector<8x32xf32>
    %c3_320 = arith.constant 3 : index
    %c0_321 = arith.constant 0 : index
    %c2_322 = arith.constant 2 : index
    %609 = vector.load %arg7[%c3_320, %c0_321, %c2_322] : memref<4x16x34xf32, #tpu.memory_space<vmem>>, vector<1x8x32xf32>
    %610 = vector.shape_cast %609 : vector<1x8x32xf32> to vector<8x32xf32>
    %c34 = arith.constant 34 : index
    %611 = memref.load %arg2[%c34] : memref<108xf32, #tpu.memory_space<smem>>
    %612 = vector.broadcast %611 : f32 to vector<8x32xf32>
    %613 = arith.mulf %612, %610 : vector<8x32xf32>
    %614 = arith.addf %608, %613 : vector<8x32xf32>
    %c3_323 = arith.constant 3 : index
    %c1_324 = arith.constant 1 : index
    %c0_325 = arith.constant 0 : index
    %615 = vector.load %arg7[%c3_323, %c1_324, %c0_325] : memref<4x16x34xf32, #tpu.memory_space<vmem>>, vector<1x8x32xf32>
    %616 = vector.shape_cast %615 : vector<1x8x32xf32> to vector<8x32xf32>
    %c46 = arith.constant 46 : index
    %617 = memref.load %arg2[%c46] : memref<108xf32, #tpu.memory_space<smem>>
    %c82 = arith.constant 82 : index
    %618 = memref.load %arg2[%c82] : memref<108xf32, #tpu.memory_space<smem>>
    %619 = arith.addf %617, %618 : f32
    %620 = vector.broadcast %619 : f32 to vector<8x32xf32>
    %621 = arith.mulf %620, %616 : vector<8x32xf32>
    %622 = arith.addf %614, %621 : vector<8x32xf32>
    %c10_326 = arith.constant 10 : index
    %623 = memref.load %arg2[%c10_326] : memref<108xf32, #tpu.memory_space<smem>>
    %c46_327 = arith.constant 46 : index
    %624 = memref.load %arg2[%c46_327] : memref<108xf32, #tpu.memory_space<smem>>
    %625 = arith.addf %623, %624 : f32
    %626 = vector.broadcast %625 : f32 to vector<8x32xf32>
    %627 = arith.mulf %626, %616 : vector<8x32xf32>
    %628 = arith.addf %596, %627 : vector<8x32xf32>
    %c3_328 = arith.constant 3 : index
    %c1_329 = arith.constant 1 : index
    %c1_330 = arith.constant 1 : index
    %629 = vector.load %arg7[%c3_328, %c1_329, %c1_330] : memref<4x16x34xf32, #tpu.memory_space<vmem>>, vector<1x8x32xf32>
    %630 = vector.shape_cast %629 : vector<1x8x32xf32> to vector<8x32xf32>
    %c58 = arith.constant 58 : index
    %631 = memref.load %arg2[%c58] : memref<108xf32, #tpu.memory_space<smem>>
    %c94 = arith.constant 94 : index
    %632 = memref.load %arg2[%c94] : memref<108xf32, #tpu.memory_space<smem>>
    %633 = arith.addf %631, %632 : f32
    %634 = vector.broadcast %633 : f32 to vector<8x32xf32>
    %635 = arith.mulf %634, %630 : vector<8x32xf32>
    %636 = arith.addf %622, %635 : vector<8x32xf32>
    %c22_331 = arith.constant 22 : index
    %637 = memref.load %arg2[%c22_331] : memref<108xf32, #tpu.memory_space<smem>>
    %c58_332 = arith.constant 58 : index
    %638 = memref.load %arg2[%c58_332] : memref<108xf32, #tpu.memory_space<smem>>
    %639 = arith.addf %637, %638 : f32
    %640 = vector.broadcast %639 : f32 to vector<8x32xf32>
    %641 = arith.mulf %640, %630 : vector<8x32xf32>
    %642 = arith.addf %628, %641 : vector<8x32xf32>
    %c3_333 = arith.constant 3 : index
    %c1_334 = arith.constant 1 : index
    %c2_335 = arith.constant 2 : index
    %643 = vector.load %arg7[%c3_333, %c1_334, %c2_335] : memref<4x16x34xf32, #tpu.memory_space<vmem>>, vector<1x8x32xf32>
    %644 = vector.shape_cast %643 : vector<1x8x32xf32> to vector<8x32xf32>
    %c70 = arith.constant 70 : index
    %645 = memref.load %arg2[%c70] : memref<108xf32, #tpu.memory_space<smem>>
    %c106 = arith.constant 106 : index
    %646 = memref.load %arg2[%c106] : memref<108xf32, #tpu.memory_space<smem>>
    %647 = arith.addf %645, %646 : f32
    %648 = vector.broadcast %647 : f32 to vector<8x32xf32>
    %649 = arith.mulf %648, %644 : vector<8x32xf32>
    %650 = arith.addf %636, %649 : vector<8x32xf32>
    %c34_336 = arith.constant 34 : index
    %651 = memref.load %arg2[%c34_336] : memref<108xf32, #tpu.memory_space<smem>>
    %c70_337 = arith.constant 70 : index
    %652 = memref.load %arg2[%c70_337] : memref<108xf32, #tpu.memory_space<smem>>
    %653 = arith.addf %651, %652 : f32
    %654 = vector.broadcast %653 : f32 to vector<8x32xf32>
    %655 = arith.mulf %654, %644 : vector<8x32xf32>
    %656 = arith.addf %642, %655 : vector<8x32xf32>
    %c3_338 = arith.constant 3 : index
    %c2_339 = arith.constant 2 : index
    %c0_340 = arith.constant 0 : index
    %657 = vector.load %arg7[%c3_338, %c2_339, %c0_340] : memref<4x16x34xf32, #tpu.memory_space<vmem>>, vector<1x8x32xf32>
    %658 = vector.shape_cast %657 : vector<1x8x32xf32> to vector<8x32xf32>
    %c82_341 = arith.constant 82 : index
    %659 = memref.load %arg2[%c82_341] : memref<108xf32, #tpu.memory_space<smem>>
    %660 = vector.broadcast %659 : f32 to vector<8x32xf32>
    %661 = arith.mulf %660, %658 : vector<8x32xf32>
    %662 = arith.addf %656, %661 : vector<8x32xf32>
    %c3_342 = arith.constant 3 : index
    %c2_343 = arith.constant 2 : index
    %c1_344 = arith.constant 1 : index
    %663 = vector.load %arg7[%c3_342, %c2_343, %c1_344] : memref<4x16x34xf32, #tpu.memory_space<vmem>>, vector<1x8x32xf32>
    %664 = vector.shape_cast %663 : vector<1x8x32xf32> to vector<8x32xf32>
    %c94_345 = arith.constant 94 : index
    %665 = memref.load %arg2[%c94_345] : memref<108xf32, #tpu.memory_space<smem>>
    %666 = vector.broadcast %665 : f32 to vector<8x32xf32>
    %667 = arith.mulf %666, %664 : vector<8x32xf32>
    %668 = arith.addf %662, %667 : vector<8x32xf32>
    %c3_346 = arith.constant 3 : index
    %c2_347 = arith.constant 2 : index
    %c2_348 = arith.constant 2 : index
    %669 = vector.load %arg7[%c3_346, %c2_347, %c2_348] : memref<4x16x34xf32, #tpu.memory_space<vmem>>, vector<1x8x32xf32>
    %670 = vector.shape_cast %669 : vector<1x8x32xf32> to vector<8x32xf32>
    %c106_349 = arith.constant 106 : index
    %671 = memref.load %arg2[%c106_349] : memref<108xf32, #tpu.memory_space<smem>>
    %672 = vector.broadcast %671 : f32 to vector<8x32xf32>
    %673 = arith.mulf %672, %670 : vector<8x32xf32>
    %674 = arith.addf %668, %673 : vector<8x32xf32>
    %675 = tpu.concatenate %650, %674 in 1 : vector<8x32xf32>, vector<8x32xf32> -> vector<8x64xf32>
    %c1_350 = arith.constant 1 : index
    %676 = memref.load %arg3[%c1_350] : memref<3xf32, #tpu.memory_space<smem>>
    %677 = vector.broadcast %676 : f32 to vector<8x64xf32>
    %678 = arith.addf %675, %677 : vector<8x64xf32>
    %c0_351 = arith.constant 0 : index
    %c1_352 = arith.constant 1 : index
    %c0_353 = arith.constant 0 : index
    %c0_354 = arith.constant 0 : index
    %679 = vector.load %arg6[%c0_351, %c1_352, %c0_353, %c0_354] : memref<1x3x8x64xf32, #tpu.memory_space<vmem>>, vector<1x1x8x64xf32>
    %680 = vector.shape_cast %679 : vector<1x1x8x64xf32> to vector<8x64xf32>
    %681 = vector.shape_cast %678 : vector<8x64xf32> to vector<1x1x8x64xf32>
    tpu.vector_store %arg6[%c0_351, %c1_352, %c0_353, %c0_354], %681 {strides = array<i32>} : memref<1x3x8x64xf32, #tpu.memory_space<vmem>>, vector<1x1x8x64xf32>,
    %cst_355 = arith.constant 0.000000e+00 : f32
    %682 = vector.broadcast %cst_355 : f32 to vector<8x32xf32>
    %cst_356 = arith.constant 0.000000e+00 : f32
    %683 = vector.broadcast %cst_356 : f32 to vector<8x32xf32>
    %c0_357 = arith.constant 0 : index
    %c0_358 = arith.constant 0 : index
    %c0_359 = arith.constant 0 : index
    %684 = vector.load %arg7[%c0_357, %c0_358, %c0_359] : memref<4x16x34xf32, #tpu.memory_space<vmem>>, vector<1x8x32xf32>
    %685 = vector.shape_cast %684 : vector<1x8x32xf32> to vector<8x32xf32>
    %c2_360 = arith.constant 2 : index
    %686 = memref.load %arg2[%c2_360] : memref<108xf32, #tpu.memory_space<smem>>
    %687 = vector.broadcast %686 : f32 to vector<8x32xf32>
    %688 = arith.mulf %687, %685 : vector<8x32xf32>
    %689 = arith.addf %682, %688 : vector<8x32xf32>
    %c0_361 = arith.constant 0 : index
    %c0_362 = arith.constant 0 : index
    %c1_363 = arith.constant 1 : index
    %690 = vector.load %arg7[%c0_361, %c0_362, %c1_363] : memref<4x16x34xf32, #tpu.memory_space<vmem>>, vector<1x8x32xf32>
    %691 = vector.shape_cast %690 : vector<1x8x32xf32> to vector<8x32xf32>
    %c14 = arith.constant 14 : index
    %692 = memref.load %arg2[%c14] : memref<108xf32, #tpu.memory_space<smem>>
    %693 = vector.broadcast %692 : f32 to vector<8x32xf32>
    %694 = arith.mulf %693, %691 : vector<8x32xf32>
    %695 = arith.addf %689, %694 : vector<8x32xf32>
    %c0_364 = arith.constant 0 : index
    %c0_365 = arith.constant 0 : index
    %c2_366 = arith.constant 2 : index
    %696 = vector.load %arg7[%c0_364, %c0_365, %c2_366] : memref<4x16x34xf32, #tpu.memory_space<vmem>>, vector<1x8x32xf32>
    %697 = vector.shape_cast %696 : vector<1x8x32xf32> to vector<8x32xf32>
    %c26 = arith.constant 26 : index
    %698 = memref.load %arg2[%c26] : memref<108xf32, #tpu.memory_space<smem>>
    %699 = vector.broadcast %698 : f32 to vector<8x32xf32>
    %700 = arith.mulf %699, %697 : vector<8x32xf32>
    %701 = arith.addf %695, %700 : vector<8x32xf32>
    %c0_367 = arith.constant 0 : index
    %c1_368 = arith.constant 1 : index
    %c0_369 = arith.constant 0 : index
    %702 = vector.load %arg7[%c0_367, %c1_368, %c0_369] : memref<4x16x34xf32, #tpu.memory_space<vmem>>, vector<1x8x32xf32>
    %703 = vector.shape_cast %702 : vector<1x8x32xf32> to vector<8x32xf32>
    %c38 = arith.constant 38 : index
    %704 = memref.load %arg2[%c38] : memref<108xf32, #tpu.memory_space<smem>>
    %c74 = arith.constant 74 : index
    %705 = memref.load %arg2[%c74] : memref<108xf32, #tpu.memory_space<smem>>
    %706 = arith.addf %704, %705 : f32
    %707 = vector.broadcast %706 : f32 to vector<8x32xf32>
    %708 = arith.mulf %707, %703 : vector<8x32xf32>
    %709 = arith.addf %701, %708 : vector<8x32xf32>
    %c2_370 = arith.constant 2 : index
    %710 = memref.load %arg2[%c2_370] : memref<108xf32, #tpu.memory_space<smem>>
    %c38_371 = arith.constant 38 : index
    %711 = memref.load %arg2[%c38_371] : memref<108xf32, #tpu.memory_space<smem>>
    %712 = arith.addf %710, %711 : f32
    %713 = vector.broadcast %712 : f32 to vector<8x32xf32>
    %714 = arith.mulf %713, %703 : vector<8x32xf32>
    %715 = arith.addf %683, %714 : vector<8x32xf32>
    %c0_372 = arith.constant 0 : index
    %c1_373 = arith.constant 1 : index
    %c1_374 = arith.constant 1 : index
    %716 = vector.load %arg7[%c0_372, %c1_373, %c1_374] : memref<4x16x34xf32, #tpu.memory_space<vmem>>, vector<1x8x32xf32>
    %717 = vector.shape_cast %716 : vector<1x8x32xf32> to vector<8x32xf32>
    %c50 = arith.constant 50 : index
    %718 = memref.load %arg2[%c50] : memref<108xf32, #tpu.memory_space<smem>>
    %c86 = arith.constant 86 : index
    %719 = memref.load %arg2[%c86] : memref<108xf32, #tpu.memory_space<smem>>
    %720 = arith.addf %718, %719 : f32
    %721 = vector.broadcast %720 : f32 to vector<8x32xf32>
    %722 = arith.mulf %721, %717 : vector<8x32xf32>
    %723 = arith.addf %709, %722 : vector<8x32xf32>
    %c14_375 = arith.constant 14 : index
    %724 = memref.load %arg2[%c14_375] : memref<108xf32, #tpu.memory_space<smem>>
    %c50_376 = arith.constant 50 : index
    %725 = memref.load %arg2[%c50_376] : memref<108xf32, #tpu.memory_space<smem>>
    %726 = arith.addf %724, %725 : f32
    %727 = vector.broadcast %726 : f32 to vector<8x32xf32>
    %728 = arith.mulf %727, %717 : vector<8x32xf32>
    %729 = arith.addf %715, %728 : vector<8x32xf32>
    %c0_377 = arith.constant 0 : index
    %c1_378 = arith.constant 1 : index
    %c2_379 = arith.constant 2 : index
    %730 = vector.load %arg7[%c0_377, %c1_378, %c2_379] : memref<4x16x34xf32, #tpu.memory_space<vmem>>, vector<1x8x32xf32>
    %731 = vector.shape_cast %730 : vector<1x8x32xf32> to vector<8x32xf32>
    %c62 = arith.constant 62 : index
    %732 = memref.load %arg2[%c62] : memref<108xf32, #tpu.memory_space<smem>>
    %c98 = arith.constant 98 : index
    %733 = memref.load %arg2[%c98] : memref<108xf32, #tpu.memory_space<smem>>
    %734 = arith.addf %732, %733 : f32
    %735 = vector.broadcast %734 : f32 to vector<8x32xf32>
    %736 = arith.mulf %735, %731 : vector<8x32xf32>
    %737 = arith.addf %723, %736 : vector<8x32xf32>
    %c26_380 = arith.constant 26 : index
    %738 = memref.load %arg2[%c26_380] : memref<108xf32, #tpu.memory_space<smem>>
    %c62_381 = arith.constant 62 : index
    %739 = memref.load %arg2[%c62_381] : memref<108xf32, #tpu.memory_space<smem>>
    %740 = arith.addf %738, %739 : f32
    %741 = vector.broadcast %740 : f32 to vector<8x32xf32>
    %742 = arith.mulf %741, %731 : vector<8x32xf32>
    %743 = arith.addf %729, %742 : vector<8x32xf32>
    %c0_382 = arith.constant 0 : index
    %c2_383 = arith.constant 2 : index
    %c0_384 = arith.constant 0 : index
    %744 = vector.load %arg7[%c0_382, %c2_383, %c0_384] : memref<4x16x34xf32, #tpu.memory_space<vmem>>, vector<1x8x32xf32>
    %745 = vector.shape_cast %744 : vector<1x8x32xf32> to vector<8x32xf32>
    %c74_385 = arith.constant 74 : index
    %746 = memref.load %arg2[%c74_385] : memref<108xf32, #tpu.memory_space<smem>>
    %747 = vector.broadcast %746 : f32 to vector<8x32xf32>
    %748 = arith.mulf %747, %745 : vector<8x32xf32>
    %749 = arith.addf %743, %748 : vector<8x32xf32>
    %c0_386 = arith.constant 0 : index
    %c2_387 = arith.constant 2 : index
    %c1_388 = arith.constant 1 : index
    %750 = vector.load %arg7[%c0_386, %c2_387, %c1_388] : memref<4x16x34xf32, #tpu.memory_space<vmem>>, vector<1x8x32xf32>
    %751 = vector.shape_cast %750 : vector<1x8x32xf32> to vector<8x32xf32>
    %c86_389 = arith.constant 86 : index
    %752 = memref.load %arg2[%c86_389] : memref<108xf32, #tpu.memory_space<smem>>
    %753 = vector.broadcast %752 : f32 to vector<8x32xf32>
    %754 = arith.mulf %753, %751 : vector<8x32xf32>
    %755 = arith.addf %749, %754 : vector<8x32xf32>
    %c0_390 = arith.constant 0 : index
    %c2_391 = arith.constant 2 : index
    %c2_392 = arith.constant 2 : index
    %756 = vector.load %arg7[%c0_390, %c2_391, %c2_392] : memref<4x16x34xf32, #tpu.memory_space<vmem>>, vector<1x8x32xf32>
    %757 = vector.shape_cast %756 : vector<1x8x32xf32> to vector<8x32xf32>
    %c98_393 = arith.constant 98 : index
    %758 = memref.load %arg2[%c98_393] : memref<108xf32, #tpu.memory_space<smem>>
    %759 = vector.broadcast %758 : f32 to vector<8x32xf32>
    %760 = arith.mulf %759, %757 : vector<8x32xf32>
    %761 = arith.addf %755, %760 : vector<8x32xf32>
    %c1_394 = arith.constant 1 : index
    %c0_395 = arith.constant 0 : index
    %c0_396 = arith.constant 0 : index
    %762 = vector.load %arg7[%c1_394, %c0_395, %c0_396] : memref<4x16x34xf32, #tpu.memory_space<vmem>>, vector<1x8x32xf32>
    %763 = vector.shape_cast %762 : vector<1x8x32xf32> to vector<8x32xf32>
    %c5 = arith.constant 5 : index
    %764 = memref.load %arg2[%c5] : memref<108xf32, #tpu.memory_space<smem>>
    %765 = vector.broadcast %764 : f32 to vector<8x32xf32>
    %766 = arith.mulf %765, %763 : vector<8x32xf32>
    %767 = arith.addf %737, %766 : vector<8x32xf32>
    %c1_397 = arith.constant 1 : index
    %c0_398 = arith.constant 0 : index
    %c1_399 = arith.constant 1 : index
    %768 = vector.load %arg7[%c1_397, %c0_398, %c1_399] : memref<4x16x34xf32, #tpu.memory_space<vmem>>, vector<1x8x32xf32>
    %769 = vector.shape_cast %768 : vector<1x8x32xf32> to vector<8x32xf32>
    %c17 = arith.constant 17 : index
    %770 = memref.load %arg2[%c17] : memref<108xf32, #tpu.memory_space<smem>>
    %771 = vector.broadcast %770 : f32 to vector<8x32xf32>
    %772 = arith.mulf %771, %769 : vector<8x32xf32>
    %773 = arith.addf %767, %772 : vector<8x32xf32>
    %c1_400 = arith.constant 1 : index
    %c0_401 = arith.constant 0 : index
    %c2_402 = arith.constant 2 : index
    %774 = vector.load %arg7[%c1_400, %c0_401, %c2_402] : memref<4x16x34xf32, #tpu.memory_space<vmem>>, vector<1x8x32xf32>
    %775 = vector.shape_cast %774 : vector<1x8x32xf32> to vector<8x32xf32>
    %c29 = arith.constant 29 : index
    %776 = memref.load %arg2[%c29] : memref<108xf32, #tpu.memory_space<smem>>
    %777 = vector.broadcast %776 : f32 to vector<8x32xf32>
    %778 = arith.mulf %777, %775 : vector<8x32xf32>
    %779 = arith.addf %773, %778 : vector<8x32xf32>
    %c1_403 = arith.constant 1 : index
    %c1_404 = arith.constant 1 : index
    %c0_405 = arith.constant 0 : index
    %780 = vector.load %arg7[%c1_403, %c1_404, %c0_405] : memref<4x16x34xf32, #tpu.memory_space<vmem>>, vector<1x8x32xf32>
    %781 = vector.shape_cast %780 : vector<1x8x32xf32> to vector<8x32xf32>
    %c41 = arith.constant 41 : index
    %782 = memref.load %arg2[%c41] : memref<108xf32, #tpu.memory_space<smem>>
    %c77 = arith.constant 77 : index
    %783 = memref.load %arg2[%c77] : memref<108xf32, #tpu.memory_space<smem>>
    %784 = arith.addf %782, %783 : f32
    %785 = vector.broadcast %784 : f32 to vector<8x32xf32>
    %786 = arith.mulf %785, %781 : vector<8x32xf32>
    %787 = arith.addf %779, %786 : vector<8x32xf32>
    %c5_406 = arith.constant 5 : index
    %788 = memref.load %arg2[%c5_406] : memref<108xf32, #tpu.memory_space<smem>>
    %c41_407 = arith.constant 41 : index
    %789 = memref.load %arg2[%c41_407] : memref<108xf32, #tpu.memory_space<smem>>
    %790 = arith.addf %788, %789 : f32
    %791 = vector.broadcast %790 : f32 to vector<8x32xf32>
    %792 = arith.mulf %791, %781 : vector<8x32xf32>
    %793 = arith.addf %761, %792 : vector<8x32xf32>
    %c1_408 = arith.constant 1 : index
    %c1_409 = arith.constant 1 : index
    %c1_410 = arith.constant 1 : index
    %794 = vector.load %arg7[%c1_408, %c1_409, %c1_410] : memref<4x16x34xf32, #tpu.memory_space<vmem>>, vector<1x8x32xf32>
    %795 = vector.shape_cast %794 : vector<1x8x32xf32> to vector<8x32xf32>
    %c53 = arith.constant 53 : index
    %796 = memref.load %arg2[%c53] : memref<108xf32, #tpu.memory_space<smem>>
    %c89 = arith.constant 89 : index
    %797 = memref.load %arg2[%c89] : memref<108xf32, #tpu.memory_space<smem>>
    %798 = arith.addf %796, %797 : f32
    %799 = vector.broadcast %798 : f32 to vector<8x32xf32>
    %800 = arith.mulf %799, %795 : vector<8x32xf32>
    %801 = arith.addf %787, %800 : vector<8x32xf32>
    %c17_411 = arith.constant 17 : index
    %802 = memref.load %arg2[%c17_411] : memref<108xf32, #tpu.memory_space<smem>>
    %c53_412 = arith.constant 53 : index
    %803 = memref.load %arg2[%c53_412] : memref<108xf32, #tpu.memory_space<smem>>
    %804 = arith.addf %802, %803 : f32
    %805 = vector.broadcast %804 : f32 to vector<8x32xf32>
    %806 = arith.mulf %805, %795 : vector<8x32xf32>
    %807 = arith.addf %793, %806 : vector<8x32xf32>
    %c1_413 = arith.constant 1 : index
    %c1_414 = arith.constant 1 : index
    %c2_415 = arith.constant 2 : index
    %808 = vector.load %arg7[%c1_413, %c1_414, %c2_415] : memref<4x16x34xf32, #tpu.memory_space<vmem>>, vector<1x8x32xf32>
    %809 = vector.shape_cast %808 : vector<1x8x32xf32> to vector<8x32xf32>
    %c65 = arith.constant 65 : index
    %810 = memref.load %arg2[%c65] : memref<108xf32, #tpu.memory_space<smem>>
    %c101 = arith.constant 101 : index
    %811 = memref.load %arg2[%c101] : memref<108xf32, #tpu.memory_space<smem>>
    %812 = arith.addf %810, %811 : f32
    %813 = vector.broadcast %812 : f32 to vector<8x32xf32>
    %814 = arith.mulf %813, %809 : vector<8x32xf32>
    %815 = arith.addf %801, %814 : vector<8x32xf32>
    %c29_416 = arith.constant 29 : index
    %816 = memref.load %arg2[%c29_416] : memref<108xf32, #tpu.memory_space<smem>>
    %c65_417 = arith.constant 65 : index
    %817 = memref.load %arg2[%c65_417] : memref<108xf32, #tpu.memory_space<smem>>
    %818 = arith.addf %816, %817 : f32
    %819 = vector.broadcast %818 : f32 to vector<8x32xf32>
    %820 = arith.mulf %819, %809 : vector<8x32xf32>
    %821 = arith.addf %807, %820 : vector<8x32xf32>
    %c1_418 = arith.constant 1 : index
    %c2_419 = arith.constant 2 : index
    %c0_420 = arith.constant 0 : index
    %822 = vector.load %arg7[%c1_418, %c2_419, %c0_420] : memref<4x16x34xf32, #tpu.memory_space<vmem>>, vector<1x8x32xf32>
    %823 = vector.shape_cast %822 : vector<1x8x32xf32> to vector<8x32xf32>
    %c77_421 = arith.constant 77 : index
    %824 = memref.load %arg2[%c77_421] : memref<108xf32, #tpu.memory_space<smem>>
    %825 = vector.broadcast %824 : f32 to vector<8x32xf32>
    %826 = arith.mulf %825, %823 : vector<8x32xf32>
    %827 = arith.addf %821, %826 : vector<8x32xf32>
    %c1_422 = arith.constant 1 : index
    %c2_423 = arith.constant 2 : index
    %c1_424 = arith.constant 1 : index
    %828 = vector.load %arg7[%c1_422, %c2_423, %c1_424] : memref<4x16x34xf32, #tpu.memory_space<vmem>>, vector<1x8x32xf32>
    %829 = vector.shape_cast %828 : vector<1x8x32xf32> to vector<8x32xf32>
    %c89_425 = arith.constant 89 : index
    %830 = memref.load %arg2[%c89_425] : memref<108xf32, #tpu.memory_space<smem>>
    %831 = vector.broadcast %830 : f32 to vector<8x32xf32>
    %832 = arith.mulf %831, %829 : vector<8x32xf32>
    %833 = arith.addf %827, %832 : vector<8x32xf32>
    %c1_426 = arith.constant 1 : index
    %c2_427 = arith.constant 2 : index
    %c2_428 = arith.constant 2 : index
    %834 = vector.load %arg7[%c1_426, %c2_427, %c2_428] : memref<4x16x34xf32, #tpu.memory_space<vmem>>, vector<1x8x32xf32>
    %835 = vector.shape_cast %834 : vector<1x8x32xf32> to vector<8x32xf32>
    %c101_429 = arith.constant 101 : index
    %836 = memref.load %arg2[%c101_429] : memref<108xf32, #tpu.memory_space<smem>>
    %837 = vector.broadcast %836 : f32 to vector<8x32xf32>
    %838 = arith.mulf %837, %835 : vector<8x32xf32>
    %839 = arith.addf %833, %838 : vector<8x32xf32>
    %c2_430 = arith.constant 2 : index
    %c0_431 = arith.constant 0 : index
    %c0_432 = arith.constant 0 : index
    %840 = vector.load %arg7[%c2_430, %c0_431, %c0_432] : memref<4x16x34xf32, #tpu.memory_space<vmem>>, vector<1x8x32xf32>
    %841 = vector.shape_cast %840 : vector<1x8x32xf32> to vector<8x32xf32>
    %c8_433 = arith.constant 8 : index
    %842 = memref.load %arg2[%c8_433] : memref<108xf32, #tpu.memory_space<smem>>
    %843 = vector.broadcast %842 : f32 to vector<8x32xf32>
    %844 = arith.mulf %843, %841 : vector<8x32xf32>
    %845 = arith.addf %815, %844 : vector<8x32xf32>
    %c2_434 = arith.constant 2 : index
    %c0_435 = arith.constant 0 : index
    %c1_436 = arith.constant 1 : index
    %846 = vector.load %arg7[%c2_434, %c0_435, %c1_436] : memref<4x16x34xf32, #tpu.memory_space<vmem>>, vector<1x8x32xf32>
    %847 = vector.shape_cast %846 : vector<1x8x32xf32> to vector<8x32xf32>
    %c20 = arith.constant 20 : index
    %848 = memref.load %arg2[%c20] : memref<108xf32, #tpu.memory_space<smem>>
    %849 = vector.broadcast %848 : f32 to vector<8x32xf32>
    %850 = arith.mulf %849, %847 : vector<8x32xf32>
    %851 = arith.addf %845, %850 : vector<8x32xf32>
    %c2_437 = arith.constant 2 : index
    %c0_438 = arith.constant 0 : index
    %c2_439 = arith.constant 2 : index
    %852 = vector.load %arg7[%c2_437, %c0_438, %c2_439] : memref<4x16x34xf32, #tpu.memory_space<vmem>>, vector<1x8x32xf32>
    %853 = vector.shape_cast %852 : vector<1x8x32xf32> to vector<8x32xf32>
    %c32 = arith.constant 32 : index
    %854 = memref.load %arg2[%c32] : memref<108xf32, #tpu.memory_space<smem>>
    %855 = vector.broadcast %854 : f32 to vector<8x32xf32>
    %856 = arith.mulf %855, %853 : vector<8x32xf32>
    %857 = arith.addf %851, %856 : vector<8x32xf32>
    %c2_440 = arith.constant 2 : index
    %c1_441 = arith.constant 1 : index
    %c0_442 = arith.constant 0 : index
    %858 = vector.load %arg7[%c2_440, %c1_441, %c0_442] : memref<4x16x34xf32, #tpu.memory_space<vmem>>, vector<1x8x32xf32>
    %859 = vector.shape_cast %858 : vector<1x8x32xf32> to vector<8x32xf32>
    %c44 = arith.constant 44 : index
    %860 = memref.load %arg2[%c44] : memref<108xf32, #tpu.memory_space<smem>>
    %c80 = arith.constant 80 : index
    %861 = memref.load %arg2[%c80] : memref<108xf32, #tpu.memory_space<smem>>
    %862 = arith.addf %860, %861 : f32
    %863 = vector.broadcast %862 : f32 to vector<8x32xf32>
    %864 = arith.mulf %863, %859 : vector<8x32xf32>
    %865 = arith.addf %857, %864 : vector<8x32xf32>
    %c8_443 = arith.constant 8 : index
    %866 = memref.load %arg2[%c8_443] : memref<108xf32, #tpu.memory_space<smem>>
    %c44_444 = arith.constant 44 : index
    %867 = memref.load %arg2[%c44_444] : memref<108xf32, #tpu.memory_space<smem>>
    %868 = arith.addf %866, %867 : f32
    %869 = vector.broadcast %868 : f32 to vector<8x32xf32>
    %870 = arith.mulf %869, %859 : vector<8x32xf32>
    %871 = arith.addf %839, %870 : vector<8x32xf32>
    %c2_445 = arith.constant 2 : index
    %c1_446 = arith.constant 1 : index
    %c1_447 = arith.constant 1 : index
    %872 = vector.load %arg7[%c2_445, %c1_446, %c1_447] : memref<4x16x34xf32, #tpu.memory_space<vmem>>, vector<1x8x32xf32>
    %873 = vector.shape_cast %872 : vector<1x8x32xf32> to vector<8x32xf32>
    %c56 = arith.constant 56 : index
    %874 = memref.load %arg2[%c56] : memref<108xf32, #tpu.memory_space<smem>>
    %c92 = arith.constant 92 : index
    %875 = memref.load %arg2[%c92] : memref<108xf32, #tpu.memory_space<smem>>
    %876 = arith.addf %874, %875 : f32
    %877 = vector.broadcast %876 : f32 to vector<8x32xf32>
    %878 = arith.mulf %877, %873 : vector<8x32xf32>
    %879 = arith.addf %865, %878 : vector<8x32xf32>
    %c20_448 = arith.constant 20 : index
    %880 = memref.load %arg2[%c20_448] : memref<108xf32, #tpu.memory_space<smem>>
    %c56_449 = arith.constant 56 : index
    %881 = memref.load %arg2[%c56_449] : memref<108xf32, #tpu.memory_space<smem>>
    %882 = arith.addf %880, %881 : f32
    %883 = vector.broadcast %882 : f32 to vector<8x32xf32>
    %884 = arith.mulf %883, %873 : vector<8x32xf32>
    %885 = arith.addf %871, %884 : vector<8x32xf32>
    %c2_450 = arith.constant 2 : index
    %c1_451 = arith.constant 1 : index
    %c2_452 = arith.constant 2 : index
    %886 = vector.load %arg7[%c2_450, %c1_451, %c2_452] : memref<4x16x34xf32, #tpu.memory_space<vmem>>, vector<1x8x32xf32>
    %887 = vector.shape_cast %886 : vector<1x8x32xf32> to vector<8x32xf32>
    %c68 = arith.constant 68 : index
    %888 = memref.load %arg2[%c68] : memref<108xf32, #tpu.memory_space<smem>>
    %c104 = arith.constant 104 : index
    %889 = memref.load %arg2[%c104] : memref<108xf32, #tpu.memory_space<smem>>
    %890 = arith.addf %888, %889 : f32
    %891 = vector.broadcast %890 : f32 to vector<8x32xf32>
    %892 = arith.mulf %891, %887 : vector<8x32xf32>
    %893 = arith.addf %879, %892 : vector<8x32xf32>
    %c32_453 = arith.constant 32 : index
    %894 = memref.load %arg2[%c32_453] : memref<108xf32, #tpu.memory_space<smem>>
    %c68_454 = arith.constant 68 : index
    %895 = memref.load %arg2[%c68_454] : memref<108xf32, #tpu.memory_space<smem>>
    %896 = arith.addf %894, %895 : f32
    %897 = vector.broadcast %896 : f32 to vector<8x32xf32>
    %898 = arith.mulf %897, %887 : vector<8x32xf32>
    %899 = arith.addf %885, %898 : vector<8x32xf32>
    %c2_455 = arith.constant 2 : index
    %c2_456 = arith.constant 2 : index
    %c0_457 = arith.constant 0 : index
    %900 = vector.load %arg7[%c2_455, %c2_456, %c0_457] : memref<4x16x34xf32, #tpu.memory_space<vmem>>, vector<1x8x32xf32>
    %901 = vector.shape_cast %900 : vector<1x8x32xf32> to vector<8x32xf32>
    %c80_458 = arith.constant 80 : index
    %902 = memref.load %arg2[%c80_458] : memref<108xf32, #tpu.memory_space<smem>>
    %903 = vector.broadcast %902 : f32 to vector<8x32xf32>
    %904 = arith.mulf %903, %901 : vector<8x32xf32>
    %905 = arith.addf %899, %904 : vector<8x32xf32>
    %c2_459 = arith.constant 2 : index
    %c2_460 = arith.constant 2 : index
    %c1_461 = arith.constant 1 : index
    %906 = vector.load %arg7[%c2_459, %c2_460, %c1_461] : memref<4x16x34xf32, #tpu.memory_space<vmem>>, vector<1x8x32xf32>
    %907 = vector.shape_cast %906 : vector<1x8x32xf32> to vector<8x32xf32>
    %c92_462 = arith.constant 92 : index
    %908 = memref.load %arg2[%c92_462] : memref<108xf32, #tpu.memory_space<smem>>
    %909 = vector.broadcast %908 : f32 to vector<8x32xf32>
    %910 = arith.mulf %909, %907 : vector<8x32xf32>
    %911 = arith.addf %905, %910 : vector<8x32xf32>
    %c2_463 = arith.constant 2 : index
    %c2_464 = arith.constant 2 : index
    %c2_465 = arith.constant 2 : index
    %912 = vector.load %arg7[%c2_463, %c2_464, %c2_465] : memref<4x16x34xf32, #tpu.memory_space<vmem>>, vector<1x8x32xf32>
    %913 = vector.shape_cast %912 : vector<1x8x32xf32> to vector<8x32xf32>
    %c104_466 = arith.constant 104 : index
    %914 = memref.load %arg2[%c104_466] : memref<108xf32, #tpu.memory_space<smem>>
    %915 = vector.broadcast %914 : f32 to vector<8x32xf32>
    %916 = arith.mulf %915, %913 : vector<8x32xf32>
    %917 = arith.addf %911, %916 : vector<8x32xf32>
    %c3_467 = arith.constant 3 : index
    %c0_468 = arith.constant 0 : index
    %c0_469 = arith.constant 0 : index
    %918 = vector.load %arg7[%c3_467, %c0_468, %c0_469] : memref<4x16x34xf32, #tpu.memory_space<vmem>>, vector<1x8x32xf32>
    %919 = vector.shape_cast %918 : vector<1x8x32xf32> to vector<8x32xf32>
    %c11 = arith.constant 11 : index
    %920 = memref.load %arg2[%c11] : memref<108xf32, #tpu.memory_space<smem>>
    %921 = vector.broadcast %920 : f32 to vector<8x32xf32>
    %922 = arith.mulf %921, %919 : vector<8x32xf32>
    %923 = arith.addf %893, %922 : vector<8x32xf32>
    %c3_470 = arith.constant 3 : index
    %c0_471 = arith.constant 0 : index
    %c1_472 = arith.constant 1 : index
    %924 = vector.load %arg7[%c3_470, %c0_471, %c1_472] : memref<4x16x34xf32, #tpu.memory_space<vmem>>, vector<1x8x32xf32>
    %925 = vector.shape_cast %924 : vector<1x8x32xf32> to vector<8x32xf32>
    %c23 = arith.constant 23 : index
    %926 = memref.load %arg2[%c23] : memref<108xf32, #tpu.memory_space<smem>>
    %927 = vector.broadcast %926 : f32 to vector<8x32xf32>
    %928 = arith.mulf %927, %925 : vector<8x32xf32>
    %929 = arith.addf %923, %928 : vector<8x32xf32>
    %c3_473 = arith.constant 3 : index
    %c0_474 = arith.constant 0 : index
    %c2_475 = arith.constant 2 : index
    %930 = vector.load %arg7[%c3_473, %c0_474, %c2_475] : memref<4x16x34xf32, #tpu.memory_space<vmem>>, vector<1x8x32xf32>
    %931 = vector.shape_cast %930 : vector<1x8x32xf32> to vector<8x32xf32>
    %c35 = arith.constant 35 : index
    %932 = memref.load %arg2[%c35] : memref<108xf32, #tpu.memory_space<smem>>
    %933 = vector.broadcast %932 : f32 to vector<8x32xf32>
    %934 = arith.mulf %933, %931 : vector<8x32xf32>
    %935 = arith.addf %929, %934 : vector<8x32xf32>
    %c3_476 = arith.constant 3 : index
    %c1_477 = arith.constant 1 : index
    %c0_478 = arith.constant 0 : index
    %936 = vector.load %arg7[%c3_476, %c1_477, %c0_478] : memref<4x16x34xf32, #tpu.memory_space<vmem>>, vector<1x8x32xf32>
    %937 = vector.shape_cast %936 : vector<1x8x32xf32> to vector<8x32xf32>
    %c47 = arith.constant 47 : index
    %938 = memref.load %arg2[%c47] : memref<108xf32, #tpu.memory_space<smem>>
    %c83 = arith.constant 83 : index
    %939 = memref.load %arg2[%c83] : memref<108xf32, #tpu.memory_space<smem>>
    %940 = arith.addf %938, %939 : f32
    %941 = vector.broadcast %940 : f32 to vector<8x32xf32>
    %942 = arith.mulf %941, %937 : vector<8x32xf32>
    %943 = arith.addf %935, %942 : vector<8x32xf32>
    %c11_479 = arith.constant 11 : index
    %944 = memref.load %arg2[%c11_479] : memref<108xf32, #tpu.memory_space<smem>>
    %c47_480 = arith.constant 47 : index
    %945 = memref.load %arg2[%c47_480] : memref<108xf32, #tpu.memory_space<smem>>
    %946 = arith.addf %944, %945 : f32
    %947 = vector.broadcast %946 : f32 to vector<8x32xf32>
    %948 = arith.mulf %947, %937 : vector<8x32xf32>
    %949 = arith.addf %917, %948 : vector<8x32xf32>
    %c3_481 = arith.constant 3 : index
    %c1_482 = arith.constant 1 : index
    %c1_483 = arith.constant 1 : index
    %950 = vector.load %arg7[%c3_481, %c1_482, %c1_483] : memref<4x16x34xf32, #tpu.memory_space<vmem>>, vector<1x8x32xf32>
    %951 = vector.shape_cast %950 : vector<1x8x32xf32> to vector<8x32xf32>
    %c59 = arith.constant 59 : index
    %952 = memref.load %arg2[%c59] : memref<108xf32, #tpu.memory_space<smem>>
    %c95 = arith.constant 95 : index
    %953 = memref.load %arg2[%c95] : memref<108xf32, #tpu.memory_space<smem>>
    %954 = arith.addf %952, %953 : f32
    %955 = vector.broadcast %954 : f32 to vector<8x32xf32>
    %956 = arith.mulf %955, %951 : vector<8x32xf32>
    %957 = arith.addf %943, %956 : vector<8x32xf32>
    %c23_484 = arith.constant 23 : index
    %958 = memref.load %arg2[%c23_484] : memref<108xf32, #tpu.memory_space<smem>>
    %c59_485 = arith.constant 59 : index
    %959 = memref.load %arg2[%c59_485] : memref<108xf32, #tpu.memory_space<smem>>
    %960 = arith.addf %958, %959 : f32
    %961 = vector.broadcast %960 : f32 to vector<8x32xf32>
    %962 = arith.mulf %961, %951 : vector<8x32xf32>
    %963 = arith.addf %949, %962 : vector<8x32xf32>
    %c3_486 = arith.constant 3 : index
    %c1_487 = arith.constant 1 : index
    %c2_488 = arith.constant 2 : index
    %964 = vector.load %arg7[%c3_486, %c1_487, %c2_488] : memref<4x16x34xf32, #tpu.memory_space<vmem>>, vector<1x8x32xf32>
    %965 = vector.shape_cast %964 : vector<1x8x32xf32> to vector<8x32xf32>
    %c71 = arith.constant 71 : index
    %966 = memref.load %arg2[%c71] : memref<108xf32, #tpu.memory_space<smem>>
    %c107 = arith.constant 107 : index
    %967 = memref.load %arg2[%c107] : memref<108xf32, #tpu.memory_space<smem>>
    %968 = arith.addf %966, %967 : f32
    %969 = vector.broadcast %968 : f32 to vector<8x32xf32>
    %970 = arith.mulf %969, %965 : vector<8x32xf32>
    %971 = arith.addf %957, %970 : vector<8x32xf32>
    %c35_489 = arith.constant 35 : index
    %972 = memref.load %arg2[%c35_489] : memref<108xf32, #tpu.memory_space<smem>>
    %c71_490 = arith.constant 71 : index
    %973 = memref.load %arg2[%c71_490] : memref<108xf32, #tpu.memory_space<smem>>
    %974 = arith.addf %972, %973 : f32
    %975 = vector.broadcast %974 : f32 to vector<8x32xf32>
    %976 = arith.mulf %975, %965 : vector<8x32xf32>
    %977 = arith.addf %963, %976 : vector<8x32xf32>
    %c3_491 = arith.constant 3 : index
    %c2_492 = arith.constant 2 : index
    %c0_493 = arith.constant 0 : index
    %978 = vector.load %arg7[%c3_491, %c2_492, %c0_493] : memref<4x16x34xf32, #tpu.memory_space<vmem>>, vector<1x8x32xf32>
    %979 = vector.shape_cast %978 : vector<1x8x32xf32> to vector<8x32xf32>
    %c83_494 = arith.constant 83 : index
    %980 = memref.load %arg2[%c83_494] : memref<108xf32, #tpu.memory_space<smem>>
    %981 = vector.broadcast %980 : f32 to vector<8x32xf32>
    %982 = arith.mulf %981, %979 : vector<8x32xf32>
    %983 = arith.addf %977, %982 : vector<8x32xf32>
    %c3_495 = arith.constant 3 : index
    %c2_496 = arith.constant 2 : index
    %c1_497 = arith.constant 1 : index
    %984 = vector.load %arg7[%c3_495, %c2_496, %c1_497] : memref<4x16x34xf32, #tpu.memory_space<vmem>>, vector<1x8x32xf32>
    %985 = vector.shape_cast %984 : vector<1x8x32xf32> to vector<8x32xf32>
    %c95_498 = arith.constant 95 : index
    %986 = memref.load %arg2[%c95_498] : memref<108xf32, #tpu.memory_space<smem>>
    %987 = vector.broadcast %986 : f32 to vector<8x32xf32>
    %988 = arith.mulf %987, %985 : vector<8x32xf32>
    %989 = arith.addf %983, %988 : vector<8x32xf32>
    %c3_499 = arith.constant 3 : index
    %c2_500 = arith.constant 2 : index
    %c2_501 = arith.constant 2 : index
    %990 = vector.load %arg7[%c3_499, %c2_500, %c2_501] : memref<4x16x34xf32, #tpu.memory_space<vmem>>, vector<1x8x32xf32>
    %991 = vector.shape_cast %990 : vector<1x8x32xf32> to vector<8x32xf32>
    %c107_502 = arith.constant 107 : index
    %992 = memref.load %arg2[%c107_502] : memref<108xf32, #tpu.memory_space<smem>>
    %993 = vector.broadcast %992 : f32 to vector<8x32xf32>
    %994 = arith.mulf %993, %991 : vector<8x32xf32>
    %995 = arith.addf %989, %994 : vector<8x32xf32>
    %996 = tpu.concatenate %971, %995 in 1 : vector<8x32xf32>, vector<8x32xf32> -> vector<8x64xf32>
    %c2_503 = arith.constant 2 : index
    %997 = memref.load %arg3[%c2_503] : memref<3xf32, #tpu.memory_space<smem>>
    %998 = vector.broadcast %997 : f32 to vector<8x64xf32>
    %999 = arith.addf %996, %998 : vector<8x64xf32>
    %c0_504 = arith.constant 0 : index
    %c2_505 = arith.constant 2 : index
    %c0_506 = arith.constant 0 : index
    %c0_507 = arith.constant 0 : index
    %1000 = vector.load %arg6[%c0_504, %c2_505, %c0_506, %c0_507] : memref<1x3x8x64xf32, #tpu.memory_space<vmem>>, vector<1x1x8x64xf32>
    %1001 = vector.shape_cast %1000 : vector<1x1x8x64xf32> to vector<8x64xf32>
    %1002 = vector.shape_cast %999 : vector<8x64xf32> to vector<1x1x8x64xf32>
    tpu.vector_store %arg6[%c0_504, %c2_505, %c0_506, %c0_507], %1002 {strides = array<i32>} : memref<1x3x8x64xf32, #tpu.memory_space<vmem>>, vector<1x1x8x64xf32>,
    return
  }
  func.func @transform_0(%arg0: i32, %arg1: i32) -> i32 {
    %c0_i32 = arith.constant 0 : i32
    %c0_i32_0 = arith.constant 0 : i32
    return %c0_i32 : i32
  }
  func.func @transform_1(%arg0: i32, %arg1: i32) -> i32 {
    %c0_i32 = arith.constant 0 : i32
    %c0_i32_0 = arith.constant 0 : i32
    return %c0_i32 : i32
  }
  func.func @transform_2(%arg0: i32, %arg1: i32) -> (i32, i32, i32, i32) {
    %c0_i32 = arith.constant 0 : i32
    %c0_i32_0 = arith.constant 0 : i32
    %c0_i32_1 = arith.constant 0 : i32
    return %arg0, %c0_i32, %arg1, %c0_i32_0 : i32, i32, i32, i32
  }
  func.func @transform_3(%arg0: i32, %arg1: i32) -> (i32, i32, i32, i32) {
    %c1_i32 = arith.constant 1 : i32
    %0 = arith.addi %arg1, %c1_i32 : i32
    %c1_i32_0 = arith.constant 1 : i32
    %1 = arith.muli %0, %c1_i32_0 : i32
    %c0_i32 = arith.constant 0 : i32
    %c0_i32_1 = arith.constant 0 : i32
    %c0_i32_2 = arith.constant 0 : i32
    return %arg0, %c0_i32, %1, %c0_i32_1 : i32, i32, i32, i32
  }
  func.func @transform_4(%arg0: i32, %arg1: i32) -> (i32, i32, i32, i32) {
    %c0_i32 = arith.constant 0 : i32
    %c0_i32_0 = arith.constant 0 : i32
    %c0_i32_1 = arith.constant 0 : i32
    return %arg0, %c0_i32, %arg1, %c0_i32_0 : i32, i32, i32, i32
  }
}

</mosaic_0001>

<bundles_post_ra>
// kernel: segmentation_head_forward.1
= control target key start
LH: loop header
LB: loop body
LE: loop exit
PB: predicated region body
PF: predicated region fallthrough
CT: control target
= control target key end

     0   :  { %s2980_s0 = inlined_call_operand.vmem [shape: f32[108], index: 0, kind: input, shape index: {}]   ;;  %s2981_s1 = inlined_call_operand.vmem [shape: f32[3], index: 1, kind: input, shape index: {}]   ;;  %s2982_s2 = inlined_call_operand.vmem [shape: f32[2,4,24,34], index: 2, kind: input, shape index: {}, may-alias: {2,3}]   ;;  %s2983_s3 = inlined_call_operand.vmem [shape: f32[2,4,24,34], index: 3, kind: input, shape index: {}, may-alias: {2,3}]   ;;  %s2984_s4 = inlined_call_operand.vmem [shape: f32[2,3,16,64], index: 4, kind: output, shape index: {}]  }
   0x1   :  { %3072 = sst [smem:[#allocation78_spill]] %s2980_s0 }
   0x2   :  { %3073 = sst [smem:[#allocation79_spill]] %s2981_s1 }
   0x3   :  { %3074 = sst [smem:[#allocation80_spill]] %s2982_s2 }
   0x4   :  { %3075 = sst [smem:[#allocation81_spill]] %s2983_s3 }
   0x5   :  { %3076 = sst [smem:[#allocation82_spill]] %s2984_s4 }
   0x6   :  { %9 = vsyncpa [#allocation4], 0 }
   0x7   :  { %10 = vsyncpa [#allocation6], 0  ;;  %s1997_s15 = smov 0   ;;  %s1999_s16 = smov 0  }
   0x8   :  { %s2001_s17 = smov 0   ;;  %s2003_s18 = smov 0  }
   0x9   :  { %s2005_s19 = smov 0   ;;  %s2007_s20 = smov 0  }
   0xa   :  { %s2009_s21 = smov 0   ;;  %s2011_s22 = smov 0  }
   0xb   :  { %s2013_s23 = smov 0  }
   0xc LB: > { %3077 = sst [smem:[#allocation12_spill]] %s1937_s16  ;;  %s1612_s24 = sadd.s32 4294967295, %s1965_s23   ;;  %s1965_s23 = sphi %s2013_s23, %s16_s23   ;;  %s1961_s22 = sphi %s2011_s22, %s3279_s22   ;;  %s1957_s21 = sphi %s2009_s21, %s3278_s21   ;;  %s1953_s20 = sphi %s2007_s20, %s3277_s20   ;;  %s1949_s19 = sphi %s2005_s19, %s3276_s19   ;;  %s1945_s18 = sphi %s2003_s18, %s3275_s18   ;;  %s1941_s17 = sphi %s2001_s17, %s3274_s17   ;;  %s1937_s16 = sphi %s1999_s16, %s3273_s16   ;;  %s1933_s15 = sphi %s1997_s15, %s3272_s15  }
   0xd   : > { %3078 = sst [smem:[#allocation13_spill]] %s1941_s17  ;;  %s25_s25 = sadd.s32 1, %s1957_s21 }
   0xe   : > { %3079 = sst [smem:[#allocation14_spill]] %s1945_s18  ;;  %p26_p0 = scmp.ge.s32.totalorder %s25_s25, 2 }
   0xf   : > { %3080 = sst [smem:[#allocation15_spill]] %s1949_s19  ;;  %s28_s26 = sadd.s32 1, %s1961_s22 }
  0x10   : > { %3081 = sst [smem:[#allocation16_spill]] %s1953_s20  ;;  %s79_s27 = sadd.s32 1, %s1945_s18 }
  0x11   : > { %3082 = sst [smem:[#allocation17_spill]] %s1957_s21  ;;  %p86_p1 = scmp.ne.s32.totalorder %s1945_s18, %s1941_s17 }
  0x12   : > { %3083 = sst [smem:[#allocation18_spill]] %s1961_s22  ;;  %s3281_s26 = smov (!%p26_p0, %s28_s26), %s1961_s22 }
  0x13   : > { %3084 = sst [smem:[#allocation19_spill]] %s1965_s23  ;;  %p87_p2 = scmp.eq.s32.totalorder %s1965_s23, 0 }
  0x14   : > { %s2048_s28 = scalar_select %p26_p0, 0, %s25_s25  }
  0x15   : > { %p30_p3 = scmp.ge.s32.totalorder %s3281_s26, 2  ;;  %p2060_p4 = por %p87_p2, %p86_p1 }
  0x16   : > { %3085 = sst [smem:[#allocation20_spill]] %s2048_s28  ;;  %s75_s29 = ssub.s32 %s1957_s21, %s2048_s28 }
  0x17   : > { %s103_s30 = sadd.s32 1, %s2048_s28  ;;  %s3283_s26 = smov (%p30_p3, %s3281_s26), 0 }
  0x18   : > { %s3086_s5 = scalar_select %p2060_p4, 1, 0 }
  0x19   : > { %s105_s6 = ssub.s32 %s25_s25, %s103_s30  ;;  %3087 = sst [smem:[#allocation21_spill]] %s3283_s26 }
  0x1a   : > { %s109_s7 = sadd.s32 1, %s1937_s16  ;;  %p116_p5 = scmp.ne.s32.totalorder %s1937_s16, %s1933_s15 }
  0x1b   : > { %s74_s8 = ssub.s32 %s1961_s22, %s3283_s26  ;;  %p148_p6 = scmp.eq.s32.totalorder %s1612_s24, 3 }
  0x1c   : > { %s76_s9 = sor.u32 %s75_s29, %s74_s8  ;;  %s106_s10 = sor.u32 %s105_s6, %s74_s8 }
  0x1d   : > { %p77_p7 = scmp.eq.s32.totalorder %s76_s9, 0  ;;  %p107_p8 = scmp.eq.s32.totalorder %s106_s10, 0 }
  0x1e   : > { %p2073_p9 = por %p116_p5, %p87_p2  ;;  %p2080_p10 = por %p148_p6, %p86_p1 }
  0x1f   : > { %s2085_s13 = scalar_select %p77_p7, %s1945_s18, %s79_s27  }
  0x20   : > { %s3088_s11 = scalar_select %p2073_p9, 1, 0 }
  0x21   : > { %s3089_s12 = scalar_select %p2080_p10, 1, 0 }
  0x22   : > { %3091 = sst [smem:[#allocation23_spill]] %s2085_s13  ;;  %p1614_p11 = scmp.ge.s32.totalorder %s1965_s23, 1 }
  0x23   : > { %3090 = sst [smem:[#allocation22_spill]] %s3089_s12  ;;  %p161_p12 = scmp.lt.s32.totalorder %s1965_s23, 5 }
  0x24   : > { %s2088_s14 = scalar_select %p107_p8, %s1937_s16, %s109_s7  }
  0x25   : > { %p2092_p13 = scmp.eq.s32.totalorder %s1612_s24, 0  ;;  %p2096_p0 = pnand %p1614_p11, %p161_p12 }
  0x26   : > { %3092 = sst [smem:[#allocation24_spill]] %s2088_s14  ;;  %s3095_s0 = sld [smem:[#allocation78_spill]] }
  0x27   : > { %s3093_s25 = scalar_select %p2092_p13, 1, 0 }
  0x28   : > { %s3094_s29 = scalar_select %p2096_p0, 1, 0 }
  0x29   : > { %p1762_p1 = pneg %p2096_p0  ;;  %s3096_s1 = sld [smem:[#allocation79_spill]] }
  0x2b   : > { %p2110_p2 = pnand %p2092_p13, %p1762_p1 }
  0x2c   : > { %s174_s8 = sshll.u32 %s3095_s0, 4  ;;  %s175_s8 = int_to_ptr.vmem [resolvable:$true] %s174_s8 }
  0x2d   : > { %s1857_s10 = scalar_lea.vmem %s175_s8, 16  ;;  %p1859_p5 = pneg %p2110_p2 }
  0x2e   : > { %p1858_p3 = scmp.ne.s32.totalorder %s175_s8, %s1857_s10  ;;  %p1865_p8 = scmp.lt.s32.totalorder %s175_s8, %s175_s8 }
  0x2f   : > { %s185_s9 = sshll.u32 %s3096_s1, 4  ;;  %p1866_p11 = scmp.lt.s32.totalorder %s1857_s10, %s1857_s10  ;;  %s186_s9 = int_to_ptr.vmem [resolvable:$true] %s185_s9 }
  0x30   : > { %p1860_p6 = pnand %p1859_p5, %p1858_p3 }
  0x31   : > { %p1867_p12 = por %p1866_p11, %p1865_p8 }
  0x32   : > { %p1861_p7 = pneg %p1860_p6 }
  0x34   : > { %p1868_p10 = pnand %p1867_p12, %p1861_p7 }
  0x36   : > { %1871 = shalt.err (!%p1868_p10)
}
  0x37   : > { %s1967_s30 = smov [#allocation3]   ;;  %s1872_s6 = scalar_lea.vmem %s186_s9, 16 }
  0x38   : > { %1765 = dma.vmem_to_smem (!%p2110_p2), %s175_s8, 16, %s1967_s30, [#allocation4]  }
  0x39   : > { %p1873_p1 = scmp.ne.s32.totalorder %s186_s9, %s1872_s6  ;;  %p1880_p9 = scmp.lt.s32.totalorder %s186_s9, %s186_s9 }
  0x3a   : > { %p1881_p4 = scmp.lt.s32.totalorder %s1872_s6, %s1872_s6 }
  0x3b   : > { %p1875_p13 = pnand %p1873_p1, %p1859_p5 }
  0x3c   : > { %p1882_p3 = por %p1881_p4, %p1880_p9 }
  0x3d   : > { %p1876_p0 = pneg %p1875_p13 }
  0x3f   : > { %p1883_p6 = pnand %p1882_p3, %p1876_p0 }
  0x41   : > { %1886 = shalt.err (!%p1883_p6)
}
  0x42   : > { %s1968_s27 = smov [#allocation5]   ;;  %p1617_p7 = scmp.ge.s32.totalorder %s1965_s23, 4 }
  0x43   : > { %1768 = dma.vmem_to_smem (!%p2110_p2), %s186_s9, 16, %s1968_s27, [#allocation6]  }
  0x44   : > { %192 = sbr.rel (%p1617_p7) target bundleno = 100 (0x64), region = 24  ;;  %p3098_p10 = scmp.ne.s32.totalorder (!%p1617_p7), %s3086_s5, 0 }
  0x4b   : > { %195 = sbr.rel (!%p3098_p10) target bundleno = 87 (0x57), region = 28  ;;  %s197_s8 = sand.u32 (%p3098_p10), 1, %s1945_s18  }
  0x4c   : > { %s1751_s7 = smul.u32 (%p3098_p10), 12, %s1961_s22  ;;  %s1618_s10 = sshll.u32 (%p3098_p10), %s197_s8, 5 }
  0x4d   : > { %s3099_s2 = sld [smem:[#allocation80_spill]] (%p3098_p10)  ;;  %s199_s9 = scalar_lea.vmem (%p3098_p10), [#allocation7], %s1618_s10 }
  0x4e   : > { %s201_s30 = sadd.s32 (%p3098_p10), %s1957_s21, %s1751_s7 }
  0x4f   : > { %s1619_s6 = sshll.u32 (%p3098_p10), %s201_s30, 3 }
  0x53   : > { %s203_s26 = scalar_lea.vmem %s3099_s2, %s1619_s6 }
  0x54   : > { %v237_v0 = vld [vmem:[%s203_s26] sm:$0xff]  ;;  %v239_v1 = vld [vmem:[%s203_s26 + $0x18] sm:$0xff]  ;;  %v241_v2 = vld [vmem:[%s203_s26 + $0x30] sm:$0xff] }
  0x55   : > { %238 = vst [vmem:[%s199_s9] sm:$0xff] %v237_v0  ;;  %240 = vst [vmem:[%s199_s9 + $0x8] sm:$0xff] %v239_v1  ;;  %v243_v3 = vld [vmem:[%s203_s26 + $0x48] sm:$0xff] }
  0x56   : > { %242 = vst [vmem:[%s199_s9 + $0x10] sm:$0xff] %v241_v2  ;;  %244 = vst [vmem:[%s199_s9 + $0x18] sm:$0xff] %v243_v3 }
  0x57 PF: > { %p3100_p4 = scmp.ne.s32.totalorder %s3088_s11, 0 }
  0x58   : > { %s252_s5 = sand.u32 (%p3100_p4), 1, %s1937_s16   ;;  %s1521_s24 = smul.u32 (%p3100_p4), 12, %s1961_s22 }
  0x59   : > { %250 = sbr.rel (!%p3100_p4) target bundleno = 100 (0x64), region = 66  ;;  %s1620_s0 = sshll.u32 (%p3100_p4), %s252_s5, 5 }
  0x5a   : > { %s1522_s1 = sadd.s32 (%p3100_p4), %s1957_s21, %s1521_s24  ;;  %s3101_s3 = sld [smem:[#allocation81_spill]] (%p3100_p4) }
  0x5b   : > { %s1621_s27 = sshll.u32 (%p3100_p4), %s1522_s1, 3  ;;  %s254_s26 = scalar_lea.vmem (%p3100_p4), [#allocation8], %s1620_s0 }
  0x60   : > { %s1524_s10 = scalar_lea.vmem %s3101_s3, %s1621_s27 }
  0x61   : > { %v1622_v4 = vld [vmem:[%s1524_s10 + $0x8] sm:$0xff]  ;;  %v1623_v5 = vld [vmem:[%s1524_s10 + $0x20] sm:$0xff]  ;;  %v1624_v6 = vld [vmem:[%s1524_s10 + $0x38] sm:$0xff] }
  0x62   : > { %294 = vst [vmem:[%s254_s26] sm:$0xff] %v1622_v4  ;;  %296 = vst [vmem:[%s254_s26 + $0x8] sm:$0xff] %v1623_v5  ;;  %v1625_v7 = vld [vmem:[%s1524_s10 + $0x50] sm:$0xff] }
  0x63   : > { %298 = vst [vmem:[%s254_s26 + $0x10] sm:$0xff] %v1624_v6  ;;  %300 = vst [vmem:[%s254_s26 + $0x18] sm:$0xff] %v1625_v7 }
  0x64 PF: > { %p3102_p9 = scmp.ne.s32.totalorder %s3094_s29, 0 }
  0x66   : > { %309 = sbr.rel (%p3102_p9) target bundleno = 486 (0x1e6), region = 104 }
  0x6d   : > { %p3103_p13 = scmp.ne.s32.totalorder %s3093_s25, 0 }
  0x6f   : > { %1924 = dma.done.wait (%p3103_p13), [#allocation4], 16  }
  0x70   : > { %1926 = vsyncadd (%p3103_p13), [#allocation4], 4294967280 }
  0x71   : > { %1928 = dma.done.wait (%p3103_p13), [#allocation6], 16  }
  0x72   : > { %1930 = vsyncadd (%p3103_p13), [#allocation6], 4294967280  ;;  %s2989_s11 = sand.u32 1, %s1941_s17   ;;  %s327_s30 = sand.u32 1, %s1933_s15  }
  0x73   : > { %s1629_s29 = sshll.u32 %s2989_s11, 5  ;;  %s1630_s6 = sshll.u32 %s327_s30, 5 }
  0x74   : > { %s322_s9 = scalar_lea.vmem [#allocation7], %s1629_s29  ;;  %s329_s5 = scalar_lea.vmem [#allocation8], %s1630_s6 }
  0x75   : > { %333 = sfence }
  0x76   : > { %v357_v8 = vld [vmem:[%s322_s9] sm:$0xff]  ;;  %vm358_vm0 = vcmask 277504   ;;  %s2151_s24 = sld [smem:[#allocation3 + $0x30]]  ;;  %s2155_s25 = sld [smem:[#allocation3 + $0x54]]  ;;  %v1631_v10 = vld [vmem:[%s322_s9 + $0x8] sm:$0xff]  ;;  %v1633_v12 = vld [vmem:[%s322_s9 + $0x10] sm:$0xff] }
  0x77   : > { %v360_v9 = vld [vmem:[%s329_s5] sm:$0xff]  ;;  %359 = vst.msk [vmem:[#allocation2] sm:$0xff] %vm358_vm0, %v357_v8  ;;  %s1637_s0 = sld [smem:[#allocation3 + $0xc]]  ;;  %v1632_v11 = vld [vmem:[%s329_s5 + $0x8] sm:$0xff]  ;;  %s2157_s15 = sld [smem:[#allocation3 + $0x18]]  ;;  %365 = vst.msk [vmem:[#allocation2 + $0x10] sm:$0xff] %vm358_vm0, %v1631_v10 }
  0x78   : > { %361 = vst.msk [vmem:[#allocation2 + $0x8] sm:$0xff] %vm358_vm0, %v360_v9  ;;  %368 = vst.msk [vmem:[#allocation2 + $0x18] sm:$0xff] %vm358_vm0, %v1632_v11  ;;  %v1634_v13 = vld [vmem:[%s329_s5 + $0x10] sm:$0xff]  ;;  %v1635_v14 = vld [vmem:[%s322_s9 + $0x18] sm:$0xff]  ;;  %s1643_s1 = sld [smem:[#allocation3 + $0x3c]]  ;;  %s2161_s27 = sld [smem:[#allocation3 + $0x60]] }
  0x79   : > { %372 = vst.msk [vmem:[#allocation2 + $0x20] sm:$0xff] %vm358_vm0, %v1633_v12  ;;  %375 = vst.msk [vmem:[#allocation2 + $0x28] sm:$0xff] %vm358_vm0, %v1634_v13  ;;  %v1636_v15 = vld [vmem:[%s329_s5 + $0x18] sm:$0xff]  ;;  %s2990_s30 = smov 127   ;;  %s2181_s29 = sld [smem:[#allocation3 + $0xf]]  ;;  %vm731_vm1 = vcmask 261120  }
  0x7a   : > { %379 = vst.msk [vmem:[#allocation2 + $0x30] sm:$0xff] %vm358_vm0, %v1635_v14  ;;  %382 = vst.msk [vmem:[#allocation2 + $0x38] sm:$0xff] %vm358_vm0, %v1636_v15  ;;  %s2185_s6 = sld [smem:[#allocation3 + $0x33]]  ;;  %s2187_s9 = sld [smem:[#allocation3 + $0x57]]  ;;  %vm736_vm2 = vcmask 523264  }
  0x7b   : > { %s2189_s5 = sld [smem:[#allocation3 + $0x1b]]  ;;  %s2261_s11 = sld [smem:[#allocation3 + $0x55]] }
  0x7c   : > { %s417_s8 = sadd.f32 %s2155_s25, %s2151_s24  ;;  %v455_v31 = vstv %s2155_s25  ;;  %s2274_s2 = sld [smem:[#allocation3 + $0x34]] }
  0x7d   : > { %v389_v16 = vstv %s1637_s0  ;;  %s425_s7 = sadd.f32 %s2151_s24, %s1637_s0  ;;  %v397_v19 = vstv %s2157_s15  ;;  %s2993_s24 = smov 126  }
  0x7e   : > { %v2171_v18 = vld [vmem:[#allocation2] sm:$0xff]  ;;  %v418_v20 = vstv %s417_s8  ;;  %s443_s10 = sadd.f32 %s1643_s1, %s2157_s15  ;;  %s2198_s0 = sld [smem:[#allocation3 + $0x3f]]  ;;  %v462_v32 = vstv %s2161_s27  ;;  %v2207_v35 = vld [vmem:[#allocation2 + $0x10] sm:$0xff] }
  0x7f   : > { %v2169_v17 = vld [vmem:[#allocation2 + $0x1] sm:$0xff]  ;;  %v390_v21 = vmul.f32 %v389_v16, %v2171_v18  ;;  %v426_v23 = vstv %s425_s7  ;;  %s435_s26 = sadd.f32 %s2161_s27, %s1643_s1  ;;  %v398_v24 = vmul.f32 %v397_v19, %v2171_v18  ;;  %s2200_s15 = sld [smem:[#allocation3 + $0x63]]  ;;  %v475_v36 = vstv %s2181_s29  ;;  %v2219_v40 = vld [vmem:[#allocation2 + $0x11] sm:$0xff] }
  0x80   : > { %v419_v22 = vmul.f32 %v418_v20, %v2169_v17  ;;  %v427_v25 = vmul.f32 %v426_v23, %v2169_v17  ;;  %v444_v27 = vstv %s443_s10  ;;  %v2195_v30 = vld [vmem:[#allocation2 + $0x2] sm:$0xff]  ;;  %s503_s25 = sadd.f32 %s2187_s9, %s2185_s6  ;;  %v476_v38 = vmul.f32 %v475_v36, %v2207_v35  ;;  %s2223_s8 = sld [smem:[#allocation3 + $0xd]]  ;;  %v2247_v49 = vld [vmem:[#allocation2 + $0x12] sm:$0xff] }
  0x81   : > { %392 = vrot.lane.b32.xlu0 %v390_v21, %s2990_s30  ;;  %v436_v26 = vstv %s435_s26  ;;  %v445_v29 = vmul.f32 %v444_v27, %v2169_v17  ;;  %v456_v33 = vmul.f32 %v455_v31, %v2195_v30  ;;  %v463_v34 = vmul.f32 %v462_v32, %v2195_v30  ;;  %s511_s1 = sadd.f32 %s2185_s6, %s2181_s29  ;;  %s2227_s10 = sld [smem:[#allocation3 + $0x31]]  ;;  %v2265_v54 = vld [vmem:[#allocation2 + $0x20] sm:$0xff] }
  0x82   : > { %421 = vrot.lane.b32.xlu1 %v419_v22, %s2990_s30  ;;  %v437_v28 = vmul.f32 %v436_v26, %v2169_v17  ;;  %v483_v37 = vstv %s2189_s5  ;;  %v504_v41 = vstv %s503_s25  ;;  %s2229_s26 = sld [smem:[#allocation3 + $0x12]]  ;;  %s2233_s29 = sld [smem:[#allocation3 + $0x19]]  ;;  %v541_v50 = vstv %s2187_s9  ;;  %v2441_v26 = vld [vmem:[#allocation2 + $0x21] sm:$0xff] }
  0x83   : > { %v484_v39 = vmul.f32 %v483_v37, %v2207_v35  ;;  %v512_v42 = vstv %s511_s1  ;;  %v505_v43 = vmul.f32 %v504_v41, %v2219_v40  ;;  %s2235_s6 = sld [smem:[#allocation3 + $0x3d]]  ;;  %s2250_s25 = sld [smem:[#allocation3 + $0x1a]]  ;;  %v542_v52 = vmul.f32 %v541_v50, %v2247_v49 }
  0x84   : > { %s529_s7 = sadd.f32 %s2198_s0, %s2189_s5  ;;  %v513_v44 = vmul.f32 %v512_v42, %v2219_v40  ;;  %s2239_s5 = sld [smem:[#allocation3 + $0xe]]  ;;  %v810_v0 = vstv %s2261_s11  ;;  %v2509_v42 = vld [vmem:[#allocation2 + $0x22] sm:$0xff] }
  0x85   : > { %400 = vrot.lane.b32.xlu0 %v398_v24, %s2993_s24  ;;  %s521_s27 = sadd.f32 %s2200_s15, %s2198_s0  ;;  %s2241_s0 = sld [smem:[#allocation3 + $0x32]]  ;;  %v548_v51 = vstv %s2200_s15  ;;  %v811_v2 = vmul.f32 %v810_v0, %v2195_v30 }
  0x86   : > { %429 = vrot.lane.b32.xlu1 %v427_v25, %s2990_s30  ;;  %3104 = sst [smem:[#allocation25_spill]] %s2223_s8  ;;  %v530_v46 = vstv %s529_s7  ;;  %s2252_s1 = sld [smem:[#allocation3 + $0x3e]]  ;;  %v549_v53 = vmul.f32 %v548_v51, %v2247_v49 }
  0x87   : > { %3105 = sst [smem:[#allocation26_spill]] %s2227_s10  ;;  %v522_v45 = vstv %s521_s27  ;;  %v531_v48 = vmul.f32 %v530_v46, %v2219_v40  ;;  %s2272_s15 = sld [smem:[#allocation3 + $0x10]] }
  0x88   : > { %3106 = sst [smem:[#allocation27_spill]] %s2229_s26  ;;  %v523_v47 = vmul.f32 %v522_v45, %v2219_v40  ;;  %v561_v55 = vstv %s2229_s26  ;;  %s2276_s3 = sld [smem:[#allocation3 + $0x1c]] }
  0x89   : > { %439 = vrot.lane.b32.xlu0 %v437_v28, %s2993_s24  ;;  %3107 = sst [smem:[#allocation28_spill]] %s2233_s29  ;;  %v562_v57 = vmul.f32 %v561_v55, %v2265_v54  ;;  %s2282_s22 = sld [smem:[#allocation3 + $0x11]] }
  0x8a   : > { %447 = vrot.lane.b32.xlu1 %v445_v29, %s2993_s24  ;;  %3108 = sst [smem:[#allocation29_spill]] %s2235_s6  ;;  %s2278_s28 = sld [smem:[#allocation3 + $0x40]] }
  0x8b   : > { %3109 = sst [smem:[#allocation30_spill]] %s2239_s5  ;;  %s2284_s21 = sld [smem:[#allocation3 + $0x35]] }
  0x8c   : > { %3110 = sst [smem:[#allocation31_spill]] %s2241_s0  ;;  %s3122_s13 = smov 126  }
  0x8d   : > { %458 = vrot.lane.b32.xlu0 %v456_v33, %s2990_s30  ;;  %3111 = sst [smem:[#allocation32_spill]] %s2250_s25  ;;  %s2290_s18 = sld [smem:[#allocation3 + $0x56]] }
  0x8e   : > { %465 = vrot.lane.b32.xlu1 %v463_v34, %s2993_s24  ;;  %3112 = sst [smem:[#allocation33_spill]] %s2252_s1  ;;  %s2294_s16 = sld [smem:[#allocation3 + $0x41]] }
  0x8f   : > { %s780_s27 = sadd.f32 %s2227_s10, %s2223_s8  ;;  %s2292_s14 = sld [smem:[#allocation3 + $0x1d]] }
  0x90   : > { %s798_s7 = sadd.f32 %s2235_s6, %s2233_s29  ;;  %s2298_s23 = sld [smem:[#allocation3 + $0x36]] }
  0x91   : > { %478 = vrot.lane.b32.xlu0 %v476_v38, %s2990_s30  ;;  %3113 = sst [smem:[#allocation34_spill]] %s2261_s11  ;;  %v781_v56 = vstv %s780_s27  ;;  %s2309_s19 = sld [smem:[#allocation3 + $0x64]] }
  0x92   : > { %486 = vrot.lane.b32.xlu1 %v484_v39, %s2993_s24  ;;  %s1134_s9 = sadd.f32 %s2241_s0, %s2239_s5  ;;  %v782_v58 = vmul.f32 %v781_v56, %v2169_v17  ;;  %v799_v60 = vstv %s798_s7  ;;  %s2304_s7 = sld [smem:[#allocation3 + $0x58]] }
  0x93   : > { %3115 = sst [smem:[#allocation36_spill]] %s2272_s15  ;;  %v800_v62 = vmul.f32 %v799_v60, %v2169_v17  ;;  %s2313_s12 = sld [smem:[#allocation3 + $0x59]]  ;;  %v1164_v3 = vstv %s2290_s18 }
  0x94   : > { %3116 = sst [smem:[#allocation37_spill]] %s2274_s2  ;;  %v1135_v59 = vstv %s1134_s9  ;;  %s2302_s9 = sld [smem:[#allocation3 + $0x62]]  ;;  %v1165_v5 = vmul.f32 %v1164_v3, %v2195_v30 }
  0x95   : > { %507 = vrot.lane.b32.xlu0 %v505_v43, %s2990_s30  ;;  %3117 = sst [smem:[#allocation38_spill]] %s2276_s3  ;;  %v1136_v61 = vmul.f32 %v1135_v59, %v2169_v17  ;;  %s2319_s17 = sld [smem:[#allocation3 + $0x65]] }
  0x96   : > { %515 = vrot.lane.b32.xlu1 %v513_v44, %s2990_s30  ;;  %s2270_s30 = sld [smem:[#allocation3 + $0x61]]  ;;  %3118 = sst [smem:[#allocation39_spill]] %s2278_s28 }
  0x97   : > { %3120 = sst [smem:[#allocation40_spill]] %s2282_s22  ;;  %s2333_s29 = sld [smem:[#allocation3 + $0x37]]  ;;  %v903_v22 = vstv %s2309_s19 }
  0x98   : > { %3121 = sst [smem:[#allocation41_spill]] %s2284_s21  ;;  %s2324_s20 = sld [smem:[#allocation3 + $0x14]]  ;;  %v896_v16 = vstv %s2304_s7  ;;  %v904_v24 = vmul.f32 %v903_v22, %v2247_v49 }
  0x99   : > { %525 = vrot.lane.b32.xlu0 %v523_v47, %s2993_s24  ;;  %s1152_s27 = sadd.f32 %s2252_s1, %s2250_s25  ;;  %s2335_s5 = sld [smem:[#allocation3 + $0x1f]]  ;;  %v897_v20 = vmul.f32 %v896_v16, %v2247_v49 }
  0x9a   : > { %533 = vrot.lane.b32.xlu1 %v531_v48, %s2993_s24  ;;  %s3119_s24 = smov 127   ;;  %3123 = sst [smem:[#allocation42_spill]] %s2290_s18  ;;  %v1171_v7 = vstv %s2302_s9 }
  0x9b   : > { %3124 = sst [smem:[#allocation43_spill]] %s2292_s14  ;;  %v1153_v63 = vstv %s1152_s27  ;;  %s2331_s27 = sld [smem:[#allocation3 + $0x13]]  ;;  %v1172_v9 = vmul.f32 %v1171_v7, %v2195_v30 }
  0x9c   : > { %3114 = sst [smem:[#allocation35_spill]] %s2270_s30  ;;  %v1154_v1 = vmul.f32 %v1153_v63, %v2169_v17  ;;  %v817_v4 = vstv %s2270_s30  ;;  %s2346_s25 = sld [smem:[#allocation3 + $0x48]] }
  0x9d   : > { %544 = vrot.lane.b32.xlu0 %v542_v52, %s3119_s24  ;;  %3125 = sst [smem:[#allocation44_spill]] %s2294_s16  ;;  %v818_v6 = vmul.f32 %v817_v4, %v2195_v30  ;;  %s2350_s8 = sld [smem:[#allocation3 + $0x43]] }
  0x9e   : > { %551 = vrot.lane.b32.xlu1 %v549_v53, %s3122_s13  ;;  %3126 = sst [smem:[#allocation45_spill]] %s2298_s23  ;;  %s3144_s23 = smov %s2333_s29 }
  0x9f   : > { %3127 = sst [smem:[#allocation46_spill]] %s2302_s9  ;;  %s3154_s10 = sld [smem:[#allocation27_spill]] }
  0xa0   : > { %3128 = sst [smem:[#allocation47_spill]] %s2304_s7  ;;  %s2378_s1 = sld [smem:[#allocation3 + $0x42]] }
  0xa1   : > { %564 = vrot.lane.b32.xlu0 %v562_v57, %s3119_s24  ;;  %s866_s4 = sadd.f32 %s2274_s2, %s2272_s15  ;;  %s2326_s15 = sld [smem:[#allocation3 + $0x38]]  ;;  %v2549_v57 = vld [vmem:[#allocation2 + $0x31] sm:$0xff] }
  0xa2   : > { %784 = vrot.lane.b32.xlu1 %v782_v58, %s3119_s24  ;;  %3129 = sst [smem:[#allocation48_spill]] %s2309_s19  ;;  %s2380_s0 = sld [smem:[#allocation3 + $0x5a]] }
  0xa3   : > { %3130 = sst [smem:[#allocation49_spill]] %s2313_s12  ;;  %v867_v8 = vstv %s866_s4  ;;  %s2356_s12 = sld [smem:[#allocation3 + $0x27]] }
  0xa4   : > { %3131 = sst [smem:[#allocation50_spill]] %s2319_s17  ;;  %s2341_s17 = sld [smem:[#allocation3 + $0x24]]  ;;  %v868_v10 = vmul.f32 %v867_v8, %v2219_v40 }
  0xa5   : > { %1138 = vrot.lane.b32.xlu0 %v1136_v61, %s3119_s24  ;;  %3132 = sst [smem:[#allocation51_spill]] %s2324_s20  ;;  %s3147_s9 = sld [smem:[#allocation49_spill]] }
  0xa6   : > { %802 = vrot.lane.b32.xlu1 %v800_v62, %s3122_s13  ;;  %3134 = sst [smem:[#allocation53_spill]] %s2331_s27  ;;  %s2362_s27 = sld [smem:[#allocation3 + $0x4b]] }
  0xa7   : > { %3133 = sst [smem:[#allocation52_spill]] %s2326_s15  ;;  %s3143_s26 = sld [smem:[#allocation53_spill]] }
  0xa8   : > { %3135 = sst [smem:[#allocation54_spill]] %s2333_s29  ;;  %s2397_s2 = sld [smem:[#allocation3 + $0x20]]  ;;  %v627_v43 = vstv %s2380_s0 }
  0xa9   : > { %3136 = sst [smem:[#allocation55_spill]] %s2335_s5  ;;  %1156 = vrot.lane.b32.xlu0 %v1154_v1, %s3122_s13  ;;  %s2369_s5 = sld [smem:[#allocation3 + $0x1e]]  ;;  %v628_v45 = vmul.f32 %v627_v43, %v2509_v42 }
  0xaa   : > { %3137 = sst [smem:[#allocation56_spill]] %s2341_s17  ;;  %813 = vrot.lane.b32.xlu1 %v811_v2, %s3119_s24  ;;  %s3150_s29 = sld [smem:[#allocation55_spill]] }
  0xab   : > { %3138 = sst [smem:[#allocation57_spill]] %s2346_s25  ;;  %v1250_v21 = vstv %s3147_s9  ;;  %s2437_s7 = sld [smem:[#allocation3 + $0x5e]] }
  0xac   : > { %3139 = sst [smem:[#allocation58_spill]] %s2350_s8  ;;  %v1251_v23 = vmul.f32 %v1250_v21, %v2247_v49  ;;  %s2446_s9 = sld [smem:[#allocation3 + $0x39]] }
  0xad   : > { %3140 = sst [smem:[#allocation59_spill]] %s2356_s12  ;;  %1167 = vrot.lane.b32.xlu0 %v1165_v5, %s3119_s24  ;;  %s2452_s11 = sld [smem:[#allocation3 + $0x5d]] }
  0xae   : > { %3141 = sst [smem:[#allocation60_spill]] %s2362_s27  ;;  %820 = vrot.lane.b32.xlu1 %v818_v6, %s3122_s13  ;;  %s2430_s27 = sld [smem:[#allocation3 + $0x3a]]  ;;  %v2571_v6 = vld [vmem:[#allocation2 + $0x32] sm:$0xff] }
  0xaf   : > { %s3142_s4 = sadd.f32 %s2284_s21, %s2282_s22  ;;  %s2386_s22 = sld [smem:[#allocation3 + $0x5b]] }
  0xb0   : > { %s3145_s30 = sadd.f32 %s2278_s28, %s2276_s3  ;;  %s2400_s3 = sld [smem:[#allocation3 + $0x44]] }
  0xb1   : > { %v1221_v11 = vstv %s3142_s4  ;;  %3146 = sst [smem:[#allocation53_spill]] %s2378_s1  ;;  %1174 = vrot.lane.b32.xlu0 %v1172_v9, %s3122_s13  ;;  %s3148_s4 = sld [smem:[#allocation50_spill]] }
  0xb2   : > { %v885_v12 = vstv %s3145_s30  ;;  %v1222_v13 = vmul.f32 %v1221_v11, %v2219_v40  ;;  %870 = vrot.lane.b32.xlu1 %v868_v10, %s3119_s24  ;;  %s3149_s30 = sadd.f32 %s2294_s16, %s2292_s14  ;;  %s2404_s28 = sld [smem:[#allocation3 + $0x66]]  ;;  %v1068_v10 = vstv %s2437_s7 }
  0xb3   : > { %v886_v14 = vmul.f32 %v885_v12, %v2219_v40  ;;  %s3153_s14 = sld [smem:[#allocation45_spill]]  ;;  %s2420_s21 = sld [smem:[#allocation3 + $0x68]]  ;;  %v713_v7 = vstv %s2452_s11  ;;  %v1069_v12 = vmul.f32 %v1068_v10, %v2571_v6 }
  0xb4   : > { %v1239_v15 = vstv %s3149_s30  ;;  %s2410_s30 = sld [smem:[#allocation3 + $0x5c]]  ;;  %s2426_s16 = sld [smem:[#allocation3 + $0x67]]  ;;  %v714_v9 = vmul.f32 %v713_v7, %v2571_v6 }
  0xb5   : > { %1224 = vrot.lane.b32.xlu0 %v1222_v13, %s3119_s24  ;;  %v1240_v19 = vmul.f32 %v1239_v15, %v2219_v40  ;;  %3155 = sst [smem:[#allocation27_spill]] %s2430_s27  ;;  %s2472_s18 = sld [smem:[#allocation3 + $0x3b]]  ;;  %v982_v46 = vstv %s2386_s22 }
  0xb6   : > { %3151 = sst [smem:[#allocation55_spill]] %s2400_s3  ;;  %888 = vrot.lane.b32.xlu1 %v886_v14, %s3122_s13  ;;  %s2476_s25 = sld [smem:[#allocation3 + $0x5f]]  ;;  %v983_v48 = vmul.f32 %v982_v46, %v2509_v42 }
  0xb7   : > { %v1257_v25 = vstv %s3148_s4  ;;  %3156 = sst [smem:[#allocation62_spill]] %s2437_s7  ;;  %s2456_s4 = sld [smem:[#allocation3 + $0x45]] }
  0xb8   : > { %3152 = sst [smem:[#allocation61_spill]] %s2404_s28  ;;  %v1258_v28 = vmul.f32 %v1257_v25, %v2247_v49  ;;  %s2484_s6 = sld [smem:[#allocation3 + $0x6b]]  ;;  %v634_v51 = vstv %s2404_s28 }
  0xb9   : > { %1242 = vrot.lane.b32.xlu0 %v1240_v19, %s3122_s13  ;;  %s3157_s19 = sadd.f32 %s3153_s14, %s3154_s10  ;;  %s2465_s10 = sld [smem:[#allocation3 + $0x69]]  ;;  %v635_v53 = vmul.f32 %v634_v51, %v2509_v42  ;;  %v1343_v56 = vstv %s2420_s21 }
  0xba   : > { %899 = vrot.lane.b32.xlu1 %v897_v20, %s3119_s24  ;;  %3158 = sst [smem:[#allocation63_spill]] %s2446_s9  ;;  %s2474_s14 = sld [smem:[#allocation3 + $0x46]]  ;;  %v1336_v47 = vstv %s2410_s30  ;;  %v989_v52 = vstv %s2426_s16  ;;  %v1344_v59 = vmul.f32 %v1343_v56, %v2509_v42 }
  0xbb   : > { %v598_v27 = vstv %s3157_s19  ;;  %3159 = sst [smem:[#allocation64_spill]] %s2452_s11  ;;  %s2491_s17 = sld [smem:[#allocation3 + $0x6a]]  ;;  %v1337_v50 = vmul.f32 %v1336_v47, %v2509_v42  ;;  %v990_v55 = vmul.f32 %v989_v52, %v2509_v42 }
  0xbc   : > { %v599_v29 = vmul.f32 %v598_v27, %v2441_v26  ;;  %s3161_s19 = sadd.f32 %s3144_s23, %s3143_s26  ;;  %s2547_s28 = sld [smem:[#allocation3 + $0x23]]  ;;  %v1422_v11 = vstv %s2476_s25 }
  0xbd   : > { %1253 = vrot.lane.b32.xlu0 %v1251_v23, %s3119_s24  ;;  %3160 = sst [smem:[#allocation65_spill]] %s2456_s4  ;;  %v1423_v13 = vmul.f32 %v1422_v11, %v2571_v6  ;;  %s2611_s7 = sld [smem:[#allocation3 + $0x3]] }
  0xbe   : > { %906 = vrot.lane.b32.xlu1 %v904_v24, %s3122_s13  ;;  %v953_v31 = vstv %s3161_s19  ;;  %s3163_s12 = sadd.f32 %s2326_s15, %s2324_s20  ;;  %s2482_s19 = sld [smem:[#allocation3 + $0x47]]  ;;  %v1429_v20 = vstv %s2484_s6 }
  0xbf   : > { %3162 = sst [smem:[#allocation66_spill]] %s2465_s10  ;;  %v954_v33 = vmul.f32 %v953_v31, %v2441_v26  ;;  %s2512_s15 = sld [smem:[#allocation3 + $0x15]]  ;;  %v720_v14 = vstv %s2465_s10  ;;  %v1430_v22 = vmul.f32 %v1429_v20, %v2571_v6 }
  0xc0   : > { %v1307_v32 = vstv %s3163_s12  ;;  %3164 = sst [smem:[#allocation67_spill]] %s2472_s18  ;;  %s2533_s20 = sld [smem:[#allocation3 + $0x21]]  ;;  %v721_v16 = vmul.f32 %v720_v14, %v2571_v6 }
  0xc1   : > { %3165 = sst [smem:[#allocation68_spill]] %s2474_s14  ;;  %1260 = vrot.lane.b32.xlu0 %v1258_v28, %s3122_s13  ;;  %v1308_v34 = vmul.f32 %v1307_v32, %v2441_v26  ;;  %v1075_v15 = vstv %s2491_s17  ;;  %s2600_s10 = sld [smem:[#allocation3 + $0x4a]] }
  0xc2   : > { %3166 = sst [smem:[#allocation69_spill]] %s2476_s25  ;;  %601 = vrot.lane.b32.xlu1 %v599_v29, %s3119_s24  ;;  %v1076_v19 = vmul.f32 %v1075_v15, %v2571_v6  ;;  %s3184_s25 = sld [smem:[#allocation34_spill]] }
  0xc3   : > { %3168 = sst [smem:[#allocation71_spill]] %s2484_s6  ;;  %s3185_s6 = sld [smem:[#allocation26_spill]] }
  0xc4   : > { %3167 = sst [smem:[#allocation70_spill]] %s2482_s19  ;;  %s2627_s11 = sld [smem:[#allocation3 + $0x4c]] }
  0xc5   : > { %s3169_s12 = sadd.f32 %s2378_s1, %s2369_s5  ;;  %956 = vrot.lane.b32.xlu0 %v954_v33, %s3119_s24 }
  0xc6   : > { %3170 = sst [smem:[#allocation72_spill]] %s2491_s17  ;;  %1310 = vrot.lane.b32.xlu1 %v1308_v34, %s3119_s24 }
  0xc7   : > { %v616_v36 = vstv %s3169_s12  ;;  %s3171_s23 = sadd.f32 %s2350_s8, %s3150_s29  ;;  %s3182_s17 = sld [smem:[#allocation32_spill]] }
  0xc8   : > { %v617_v38 = vmul.f32 %v616_v36, %v2441_v26  ;;  %s3172_s1 = sadd.f32 %s2400_s3, %s2397_s2  ;;  %s2538_s3 = sld [smem:[#allocation3 + $0x22]] }
  0xc9   : > { %v971_v37 = vstv %s3171_s23  ;;  %3173 = sst [smem:[#allocation73_spill]] %s2512_s15  ;;  %s2526_s23 = sld [smem:[#allocation3 + $0x17]] }
  0xca   : > { %v972_v39 = vmul.f32 %v971_v37, %v2441_v26  ;;  %v1325_v41 = vstv %s3172_s1  ;;  %619 = vrot.lane.b32.xlu0 %v617_v38, %s3122_s13  ;;  %s2523_s1 = sld [smem:[#allocation3 + $0x16]]  ;;  %3175 = sst [smem:[#allocation75_spill]] %s2533_s20 }
  0xcb   : > { %v1326_v44 = vmul.f32 %v1325_v41, %v2441_v26  ;;  %s683_s12 = sadd.f32 %s2446_s9, %s2512_s15 }
  0xcc   : > { %974 = vrot.lane.b32.xlu1 %v972_v39, %s3122_s13  ;;  %3177 = sst [smem:[#allocation77_spill]] %s2547_s28 }
  0xcd   : > { %v684_v58 = vstv %s683_s12  ;;  %s701_s15 = sadd.f32 %s2456_s4, %s2533_s20  ;;  %s3183_s4 = sld [smem:[#allocation57_spill]]  ;;  %v1106_v33 = vstv %s3182_s17 }
  0xce   : > { %1328 = vrot.lane.b32.xlu0 %v1326_v44, %s3122_s13  ;;  %3176 = sst [smem:[#allocation76_spill]] %s2538_s3  ;;  %v685_v60 = vmul.f32 %v684_v58, %v2549_v57  ;;  %v1107_v41 = vmul.f32 %v1106_v33, %v2171_v18  ;;  %s3194_s17 = sld [smem:[#allocation46_spill]] }
  0xcf   : > { %3174 = sst [smem:[#allocation74_spill]] %s2526_s23  ;;  %v702_v1 = vstv %s701_s15  ;;  %s2580_s15 = sld [smem:[#allocation3 + $0x25]] }
  0xd0   : > { %630 = vrot.lane.b32.xlu1 %v628_v45, %s3119_s24  ;;  %s1038_s8 = sadd.f32 %s2430_s27, %s2523_s1  ;;  %v703_v3 = vmul.f32 %v702_v1, %v2549_v57 }
  0xd1   : > { %s1392_s9 = sadd.f32 %s2472_s18, %s2526_s23  ;;  %s2598_s18 = sld [smem:[#allocation3 + $0x26]] }
  0xd2   : > { %985 = vrot.lane.b32.xlu0 %v983_v48, %s3119_s24  ;;  %v1039_v61 = vstv %s1038_s8  ;;  %s1056_s27 = sadd.f32 %s2474_s14, %s2538_s3  ;;  %s3178_s8 = sld [smem:[#allocation25_spill]] }
  0xd3   : > { %v1393_v62 = vstv %s1392_s9  ;;  %v1040_v63 = vmul.f32 %v1039_v61, %v2549_v57  ;;  %s1410_s12 = sadd.f32 %s2482_s19, %s2547_s28  ;;  %s2582_s9 = sld [smem:[#allocation3 + $0x49]]  ;;  %v452_v52 = vstv %s3183_s4 }
  0xd4   : > { %1339 = vrot.lane.b32.xlu1 %v1337_v50, %s3119_s24  ;;  %v1394_v0 = vmul.f32 %v1393_v62, %v2549_v57  ;;  %v1057_v2 = vstv %s1056_s27  ;;  %s3179_s27 = sld [smem:[#allocation30_spill]]  ;;  %s384_s19 = sld [smem:[#allocation3]]  ;;  %v453_v61 = vmul.f32 %v452_v52, %v2195_v30  ;;  %v916_v52 = vstv %s3143_s26 }
  0xd5   : > { %v1058_v4 = vmul.f32 %v1057_v2, %v2549_v57  ;;  %v1411_v5 = vstv %s1410_s12  ;;  %s3180_s12 = sld [smem:[#allocation56_spill]]  ;;  %s3181_s14 = sld [smem:[#allocation28_spill]] }
  0xd6   : > { %637 = vrot.lane.b32.xlu0 %v635_v53, %s3122_s13  ;;  %v1412_v8 = vmul.f32 %v1411_v5, %v2549_v57  ;;  %s3186_s28 = sld [smem:[#allocation42_spill]]  ;;  %s3187_s3 = sld [smem:[#allocation31_spill]] }
  0xd7   : > { %s3191_s20 = sadd.f32 %s3184_s25, %s3185_s6  ;;  %s2625_s23 = sld [smem:[#allocation3 + $0x28]] }
  0xd8   : > { %992 = vrot.lane.b32.xlu1 %v990_v55, %s3122_s13  ;;  %v744_v21 = vstv %s3178_s8  ;;  %3193 = sst [smem:[#allocation30_spill]] %s2627_s11  ;;  %v471_v55 = vstv %s2611_s7 }
  0xd9   : > { %v745_v23 = vmul.f32 %v744_v21, %v2171_v18  ;;  %v773_v37 = vstv %s3191_s20  ;;  %s3195_s20 = sld [smem:[#allocation33_spill]]  ;;  %v472_v1 = vmul.f32 %v471_v55, %v2207_v35 }
  0xda   : > { %1346 = vrot.lane.b32.xlu0 %v1344_v59, %s3122_s13  ;;  %v1098_v24 = vstv %s3179_s27  ;;  %v385_v25 = vstv %s384_s19  ;;  %s3188_s27 = sld [smem:[#allocation35_spill]]  ;;  %v774_v45 = vmul.f32 %v773_v37, %v2169_v17 }
  0xdb   : > { %s411_s8 = sadd.f32 %s3180_s12, %s384_s19  ;;  %v752_v27 = vstv %s3181_s14  ;;  %v1099_v28 = vmul.f32 %v1098_v24, %v2171_v18  ;;  %v386_v29 = vmul.f32 %v385_v25, %v2171_v18  ;;  %s3189_s19 = sld [smem:[#allocation29_spill]] }
  0xdc   : > { %687 = vrot.lane.b32.xlu1 %v685_v60, %s3119_s24  ;;  %v753_v31 = vmul.f32 %v752_v27, %v2171_v18  ;;  %s3190_s14 = sadd.f32 %s3183_s4, %s3180_s12  ;;  %s3198_s12 = sld [smem:[#allocation36_spill]] }
  0xdd   : > { %v412_v32 = vstv %s411_s8  ;;  %3192 = sst [smem:[#allocation25_spill]] %s2625_s23  ;;  %s3202_s4 = sld [smem:[#allocation38_spill]] }
  0xde   : > { %1042 = vrot.lane.b32.xlu0 %v1040_v63, %s3119_s24  ;;  %v408_v36 = vstv %s3190_s14  ;;  %v413_v39 = vmul.f32 %v412_v32, %v2169_v17  ;;  %s3196_s6 = sadd.f32 %s3186_s28, %s3187_s3  ;;  %s3199_s14 = sld [smem:[#allocation40_spill]] }
  0xdf   : > { %v409_v44 = vmul.f32 %v408_v36, %v2169_v17  ;;  %s3200_s3 = sld [smem:[#allocation59_spill]]  ;;  %s3201_s28 = sadd.f32 %s3194_s17, %s3195_s20 }
  0xe0   : > { %1396 = vrot.lane.b32.xlu1 %v1394_v0, %s3119_s24  ;;  %v1127_v46 = vstv %s3196_s6  ;;  %s3205_s20 = sld [smem:[#allocation47_spill]]  ;;  %s3206_s6 = sld [smem:[#allocation37_spill]] }
  0xe1   : > { %s3197_s25 = sadd.f32 %s3188_s27, %s3189_s19  ;;  %v1128_v18 = vmul.f32 %v1127_v46, %v2169_v17  ;;  %v1145_v59 = vstv %s3201_s28  ;;  %s3203_s27 = sld [smem:[#allocation60_spill]] }
  0xe2   : > { %705 = vrot.lane.b32.xlu0 %v703_v3, %s3122_s13  ;;  %v830_v62 = vstv %s3198_s12  ;;  %v1146_v3 = vmul.f32 %v1145_v59, %v2169_v17  ;;  %s3204_s19 = sld [smem:[#allocation43_spill]]  ;;  %s3210_s28 = sld [smem:[#allocation48_spill]] }
  0xe3   : > { %v791_v48 = vstv %s3197_s25  ;;  %v831_v5 = vmul.f32 %v830_v62, %v2207_v35  ;;  %v838_v10 = vstv %s3202_s4  ;;  %s2663_s25 = sld [smem:[#allocation3 + $0x6]]  ;;  %s3211_s4 = sld [smem:[#allocation39_spill]] }
  0xe4   : > { %1060 = vrot.lane.b32.xlu1 %v1058_v4, %s3122_s13  ;;  %v792_v58 = vmul.f32 %v791_v48, %v2169_v17  ;;  %v1184_v7 = vstv %s3199_s14  ;;  %s3209_s14 = sld [smem:[#allocation41_spill]]  ;;  %s2673_s8 = sld [smem:[#allocation3 + $0x1]] }
  0xe5   : > { %s497_s17 = sadd.f32 %s3200_s3, %s2611_s7  ;;  %v1185_v14 = vmul.f32 %v1184_v7, %v2207_v35  ;;  %s3208_s7 = sld [smem:[#allocation49_spill]] }
  0xe6   : > { %1414 = vrot.lane.b32.xlu0 %v1412_v8, %s3122_s13  ;;  %s3212_s11 = sadd.f32 %s3205_s20, %s3206_s6  ;;  %s2691_s20 = sld [smem:[#allocation3 + $0x2]] }
  0xe7   : > { %s3207_s12 = sadd.f32 %s3203_s27, %s3200_s3  ;;  %s3213_s3 = sld [smem:[#allocation50_spill]] }
  0xe8   : > { %716 = vrot.lane.b32.xlu1 %v714_v9, %s3119_s24  ;;  %v1192_v20 = vstv %s3204_s19  ;;  %s3214_s19 = sld [smem:[#allocation44_spill]] }
  0xe9   : > { %v494_v15 = vstv %s3207_s12  ;;  %v557_v37 = vstv %s2663_s25  ;;  %s3218_s12 = sld [smem:[#allocation51_spill]] }
  0xea   : > { %1071 = vrot.lane.b32.xlu0 %v1069_v12, %s3119_s24  ;;  %v495_v25 = vmul.f32 %v494_v15, %v2219_v40 }
  0xec   : > { %1425 = vrot.lane.b32.xlu1 %v1423_v13, %s3119_s24  ;;  %s1120_s26 = sadd.f32 %s2598_s18, %s2691_s20 }
  0xee   : > { %723 = vrot.lane.b32.xlu0 %v721_v16, %s3122_s13  ;;  %v839_v16 = vmul.f32 %v838_v10, %v2207_v35  ;;  %s3217_s6 = sadd.f32 %s3213_s3, %s3214_s19  ;;  %s3224_s3 = sld [smem:[#allocation61_spill]] }
  0xef   : > { %s3225_s19 = sld [smem:[#allocation53_spill]] }
  0xf0   : > { %1078 = vrot.lane.b32.xlu1 %v1076_v19, %s3122_s13  ;;  %v498_v19 = vstv %s497_s17  ;;  %s3216_s17 = sadd.f32 %s3210_s28, %s3211_s4  ;;  %v1231_v46 = vstv %s3217_s6  ;;  %s2729_s28 = sld [smem:[#allocation3 + $0x5]] }
  0xf1   : > { %s2731_s4 = sld [smem:[#allocation3 + $0x29]]  ;;  %s3229_s6 = sld [smem:[#allocation55_spill]] }
  0xf2   : > { %1432 = vrot.lane.b32.xlu0 %v1430_v22, %s3122_s13  ;;  %v859_v22 = vstv %s3212_s11  ;;  %s3215_s11 = sadd.f32 %s3208_s7, %s3209_s14  ;;  %v877_v36 = vstv %s3216_s17  ;;  %s3219_s14 = sld [smem:[#allocation45_spill]] }
  0xf3   : > { %v393_v34 = vpop.permute.xlu0 %392  ;;  %v860_v32 = vmul.f32 %v859_v22, %v2219_v40  ;;  %s766_s7 = sadd.f32 %s2580_s15, %s2673_s8 }
  0xf4   : > { %747 = vrot.lane.b32.xlu1 %v745_v23, %s3119_s24  ;;  %v422_v38 = vpop.permute.xlu1 %421  ;;  %v395_v43 = vadd.f32 %v393_v34, %v386_v29  ;;  %v1193_v29 = vmul.f32 %v1192_v20, %v2207_v35  ;;  %v1213_v33 = vstv %s3215_s11 }
  0xf5   : > { %v767_v59 = vstv %s766_s7 }
  0xf6   : > { %1101 = vrot.lane.b32.xlu0 %v1099_v28, %s3119_s24  ;;  %v499_v28 = vmul.f32 %v498_v19, %v2219_v40 }
  0xf7   : > { %v401_v47 = vpop.permute.xlu0 %400  ;;  %3221 = sst [smem:[#allocation56_spill]] %s2731_s4 }
  0xf8   : > { %755 = vrot.lane.b32.xlu1 %v753_v31, %s3122_s13  ;;  %v430_v50 = vpop.permute.xlu1 %429  ;;  %v403_v51 = vadd.f32 %v401_v47, %v395_v43  ;;  %v1214_v43 = vmul.f32 %v1213_v33, %v2219_v40  ;;  %v558_v47 = vmul.f32 %v557_v37, %v2265_v54  ;;  %s1206_s7 = sadd.f32 %s2731_s4, %s2729_s28 }
  0xf9   : > { %v432_v53 = vadd.f32 %v430_v50, %v413_v39  ;;  %v538_v39 = vstv %s3203_s27  ;;  %s2720_s27 = sld [smem:[#allocation3 + $0x4]] }
  0xfa   : > { %1109 = vrot.lane.b32.xlu0 %v1107_v41, %s3122_s13  ;;  %v410_v56 = vadd.f32 %v409_v44, %v403_v51  ;;  %v539_v51 = vmul.f32 %v538_v39, %v2247_v49 }
  0xfb   : > { %v440_v60 = vpop.permute.xlu0 %439 }
  0xfc   : > { %776 = vrot.lane.b32.xlu1 %v774_v45, %s3119_s24  ;;  %v448_v63 = vpop.permute.xlu1 %447  ;;  %v424_v0 = vadd.f32 %v422_v38, %v410_v56  ;;  %v878_v45 = vmul.f32 %v877_v36, %v2219_v40  ;;  %v1232_v56 = vmul.f32 %v1231_v46, %v2219_v40  ;;  %v1207_v46 = vstv %s1206_s7  ;;  %s3243_s7 = sld [smem:[#allocation27_spill]] }
  0xfd   : > { %v450_v2 = vadd.f32 %v448_v63, %v432_v53 }
  0xfe   : > { %1130 = vrot.lane.b32.xlu0 %v1128_v18, %s3119_s24  ;;  %v442_v4 = vadd.f32 %v440_v60, %v424_v0  ;;  %v569_v0 = vstv %s2369_s5  ;;  %s3220_s5 = sld [smem:[#allocation54_spill]] }
  0xff   : > { %v454_v8 = vadd.f32 %v453_v61, %v450_v2  ;;  %v459_v9 = vpop.permute.xlu0 %458  ;;  %v1270_v61 = vstv %s3218_s12  ;;  %v768_v2 = vmul.f32 %v767_v59, %v2169_v17  ;;  %s852_s17 = sadd.f32 %s2625_s23, %s2720_s27  ;;  %v1002_v59 = vstv %s2523_s1  ;;  %s2796_s1 = sld [smem:[#allocation3 + $0x2b]] }
 0x100   : > { %794 = vrot.lane.b32.xlu1 %v792_v58, %s3122_s13  ;;  %v466_v11 = vpop.permute.xlu1 %465  ;;  %v473_v12 = vadd.f32 %v472_v1, %v442_v4  ;;  %v917_v58 = vmul.f32 %v916_v52, %v2265_v54  ;;  %v570_v4 = vmul.f32 %v569_v0, %v2265_v54  ;;  %s3230_s12 = sadd.f32 %s3224_s3, %s3225_s19  ;;  %s2794_s3 = sld [smem:[#allocation3 + $0x7]] }
 0x101   : > { %v461_v13 = vadd.f32 %v459_v9, %v454_v8  ;;  %v1121_v8 = vstv %s1120_s26  ;;  %v1278_v9 = vstv %s2397_s2  ;;  %s3222_s2 = sld [smem:[#allocation52_spill]]  ;;  %v853_v37 = vstv %s852_s17  ;;  %s3232_s26 = sld [smem:[#allocation73_spill]] }
 0x102   : > { %1148 = vrot.lane.b32.xlu0 %v1146_v3, %s3122_s13  ;;  %v1271_v3 = vmul.f32 %v1270_v61, %v2265_v54  ;;  %v1122_v15 = vmul.f32 %v1121_v8, %v2169_v17  ;;  %v608_v33 = vstv %s3230_s12  ;;  %s3238_s19 = sld [smem:[#allocation76_spill]]  ;;  %s3242_s12 = sld [smem:[#allocation62_spill]] }
 0x103   : > { %v479_v21 = vpop.permute.xlu0 %478  ;;  %v468_v27 = vadd.f32 %v466_v11, %v461_v13  ;;  %v609_v39 = vmul.f32 %v608_v33, %v2441_v26  ;;  %s2801_s17 = sld [smem:[#allocation3 + $0x8]]  ;;  %s2828_s23 = sld [smem:[#allocation3 + $0x4e]] }
 0x104   : > { %833 = vrot.lane.b32.xlu1 %v831_v5, %s3119_s24  ;;  %v487_v23 = vpop.permute.xlu1 %486  ;;  %v481_v24 = vadd.f32 %v479_v21, %v473_v12  ;;  %v924_v5 = vstv %s3150_s29  ;;  %v807_v12 = vstv %s2582_s9  ;;  %s3223_s29 = sadd.f32 %s2380_s0, %s3219_s14  ;;  %s3227_s0 = sld [smem:[#allocation58_spill]] }
 0x105   : > { %v500_v41 = vadd.f32 %v499_v28, %v468_v27  ;;  %v808_v21 = vmul.f32 %v807_v12, %v2195_v30  ;;  %s3226_s11 = sadd.f32 %s2386_s22, %s3220_s5  ;;  %s2775_s5 = sld [smem:[#allocation3 + $0x4d]] }
 0x106   : > { %1187 = vrot.lane.b32.xlu0 %v1185_v14, %s3119_s24  ;;  %v489_v31 = vadd.f32 %v487_v23, %v481_v24  ;;  %v925_v14 = vmul.f32 %v924_v5, %v2265_v54  ;;  %v590_v19 = vstv %s3223_s29  ;;  %v1161_v23 = vstv %s2600_s10  ;;  %s3233_s14 = sadd.f32 %s2420_s21, %s3229_s6  ;;  %s3237_s21 = sld [smem:[#allocation75_spill]] }
 0x107   : > { %v508_v34 = vpop.permute.xlu0 %507  ;;  %v945_v22 = vstv %s3226_s11  ;;  %v591_v17 = vmul.f32 %v590_v19, %v2441_v26  ;;  %v1162_v28 = vmul.f32 %v1161_v23, %v2195_v30  ;;  %s3228_s22 = sadd.f32 %s2410_s30, %s3222_s2  ;;  %s3235_s2 = sld [smem:[#allocation30_spill]] }
 0x108   : > { %841 = vrot.lane.b32.xlu1 %v839_v16, %s3122_s13  ;;  %v516_v38 = vpop.permute.xlu1 %515  ;;  %v496_v35 = vadd.f32 %v495_v25, %v489_v31  ;;  %v1279_v16 = vmul.f32 %v1278_v9, %v2265_v54  ;;  %v946_v27 = vmul.f32 %v945_v22, %v2441_v26  ;;  %s2789_s29 = sld [smem:[#allocation3 + $0x2a]]  ;;  %s3239_s11 = sld [smem:[#allocation77_spill]] }
 0x109   : > { %v518_v48 = vadd.f32 %v516_v38, %v500_v41  ;;  %s3241_s6 = sld [smem:[#allocation63_spill]] }
 0x10a   : > { %1195 = vrot.lane.b32.xlu0 %v1193_v29, %s3122_s13  ;;  %v510_v44 = vadd.f32 %v508_v34, %v496_v35  ;;  %v1299_v29 = vstv %s3228_s22  ;;  %s3231_s30 = sadd.f32 %s2426_s16, %s3227_s0  ;;  %s3236_s16 = sld [smem:[#allocation74_spill]] }
 0x10b   : > { %v526_v50 = vpop.permute.xlu0 %525  ;;  %v1300_v35 = vmul.f32 %v1299_v29, %v2441_v26  ;;  %3234 = sst [smem:[#allocation28_spill]] %s2775_s5  ;;  %s2803_s0 = sld [smem:[#allocation3 + $0x2c]] }
 0x10c   : > { %862 = vrot.lane.b32.xlu1 %v860_v32, %s3119_s24  ;;  %v534_v53 = vpop.permute.xlu1 %533  ;;  %v528_v18 = vadd.f32 %v526_v50, %v510_v44  ;;  %v963_v41 = vstv %s3231_s30  ;;  %v854_v44 = vmul.f32 %v853_v37, %v2219_v40  ;;  %v655_v9 = vstv %s3237_s21  ;;  %s3240_s22 = sld [smem:[#allocation64_spill]]  ;;  %s938_s21 = sadd.f32 %s2796_s1, %s2794_s3 }
 0x10d   : > { %v536_v55 = vadd.f32 %v534_v53, %v518_v48  ;;  %v964_v50 = vmul.f32 %v963_v41, %v2441_v26  ;;  %v1208_v53 = vmul.f32 %v1207_v46, %v2219_v40  ;;  %v893_v0 = vstv %s3235_s2 }
 0x10e   : > { %1216 = vrot.lane.b32.xlu0 %v1214_v43, %s3119_s24  ;;  %v559_v60 = vadd.f32 %v558_v47, %v528_v18  ;;  %v2782_v18 = vld [vmem:[#allocation2 + $0x30] sm:$0xff]  ;;  %v894_v8 = vmul.f32 %v893_v0, %v2247_v49  ;;  %v1364_v23 = vstv %s3239_s11  ;;  %s583_s30 = sadd.f32 %s2789_s29, %s2663_s25  ;;  %s3248_s11 = sld [smem:[#allocation66_spill]]  ;;  %v939_v37 = vstv %s938_s21 }
 0x10f   : > { %v2711_v62 = vadd.f32 %v539_v51, %v536_v55  ;;  %v2713_v63 = vpop.permute.xlu0 %544  ;;  %v647_v55 = vstv %s3232_s26  ;;  %s2832_s25 = sld [smem:[#allocation3 + $0x4f]]  ;;  %v940_v46 = vmul.f32 %v939_v37, %v2441_v26  ;;  %s2878_s21 = sld [smem:[#allocation3 + $0x2e]] }
 0x110   : > { %880 = vrot.lane.b32.xlu1 %v878_v45, %s3122_s13  ;;  %v2718_v1 = vpop.permute.xlu1 %551  ;;  %v1317_v45 = vstv %s3233_s14  ;;  %s3245_s14 = sld [smem:[#allocation69_spill]]  ;;  %v584_v33 = vstv %s583_s30  ;;  %s3254_s30 = sld [smem:[#allocation71_spill]] }
 0x111   : > { %v1318_v52 = vmul.f32 %v1317_v45, %v2441_v26  ;;  %s1292_s4 = sadd.f32 %s2803_s0, %s2801_s17 }
 0x112   : > { %1234 = vrot.lane.b32.xlu0 %v1232_v56, %s3122_s13  ;;  %s3244_s26 = sadd.f32 %s3240_s22, %s3241_s6  ;;  %s3251_s6 = sld [smem:[#allocation72_spill]] }
 0x113   : > { %v565_v7 = vpop.permute.xlu0 %564 }
 0x114   : > { %919 = vrot.lane.b32.xlu1 %v917_v58, %s3119_s24  ;;  %v785_v10 = vpop.permute.xlu1 %784  ;;  %v2733_v11 = vadd.f32 %v565_v7, %v559_v60 }
 0x115   : > { %v787_v13 = vadd.f32 %v785_v10, %v768_v2  ;;  %v648_v2 = vmul.f32 %v2782_v18, %v647_v55  ;;  %v1247_v10 = vstv %s2775_s5  ;;  %s3249_s5 = sld [smem:[#allocation65_spill]] }
 0x116   : > { %1273 = vrot.lane.b32.xlu0 %v1271_v3, %s3119_s24  ;;  %v1003_v3 = vmul.f32 %v1002_v59, %v2782_v18  ;;  %v1248_v19 = vmul.f32 %v1247_v10, %v2247_v49  ;;  %v1365_v49 = vmul.f32 %v1364_v23, %v2782_v18  ;;  %v979_v59 = vstv %s2832_s25 }
 0x117   : > { %v1139_v20 = vpop.permute.xlu0 %1138 }
 0x118   : > { %572 = vrot.lane.b32.xlu1 %v570_v4, %s3122_s13  ;;  %v803_v24 = vpop.permute.xlu1 %802  ;;  %v1141_v54 = vadd.f32 %v1139_v20, %v1122_v15  ;;  %v1356_v4 = vstv %s3236_s16  ;;  %v1010_v20 = vstv %s3238_s19  ;;  %s3246_s16 = sld [smem:[#allocation67_spill]]  ;;  %s3247_s19 = sadd.f32 %s3242_s12, %s3243_s7 }
 0x119   : > { %v805_v25 = vadd.f32 %v803_v24, %v787_v13  ;;  %s3252_s12 = sld [smem:[#allocation68_spill]] }
 0x11a   : > { %927 = vrot.lane.b32.xlu0 %v925_v14, %s3122_s13  ;;  %v1357_v14 = vmul.f32 %v1356_v4, %v2782_v18  ;;  %v1031_v29 = vstv %s3247_s19  ;;  %s3255_s19 = sld [smem:[#allocation70_spill]] }
 0x11b   : > { %v809_v31 = vadd.f32 %v808_v21, %v805_v25  ;;  %v1157_v32 = vpop.permute.xlu0 %1156  ;;  %s3253_s7 = sadd.f32 %s3248_s11, %s3249_s5  ;;  %s2880_s11 = sld [smem:[#allocation3 + $0xb]] }
 0x11c   : > { %1281 = vrot.lane.b32.xlu1 %v1279_v16, %s3122_s13  ;;  %v814_v34 = vpop.permute.xlu1 %813  ;;  %v1159_v36 = vadd.f32 %v1157_v32, %v1141_v54  ;;  %v656_v16 = vmul.f32 %v2782_v18, %v655_v9 }
 0x11d   : > { %v816_v38 = vadd.f32 %v814_v34, %v809_v31  ;;  %v547_v31 = vadd.f32 %v2713_v63, %v2711_v62  ;;  %v1293_v62 = vstv %s1292_s4  ;;  %v694_v63 = vstv %s3253_s7  ;;  %s2890_s7 = sld [smem:[#allocation3 + $0x51]] }
 0x11e   : > { %593 = vrot.lane.b32.xlu0 %v591_v17, %s3119_s24  ;;  %v1163_v30 = vadd.f32 %v1162_v28, %v1159_v36  ;;  %v1011_v17 = vmul.f32 %v1010_v20, %v2782_v18  ;;  %v1032_v36 = vmul.f32 %v1031_v29, %v2549_v57  ;;  %s3250_s22 = sadd.f32 %s3245_s14, %s3246_s16  ;;  %s2869_s14 = sld [smem:[#allocation3 + $0x9]] }
 0x11f   : > { %v1168_v43 = vpop.permute.xlu0 %1167  ;;  %s3256_s4 = sadd.f32 %s3251_s6, %s3252_s12  ;;  %s2871_s16 = sld [smem:[#allocation3 + $0x2d]] }
 0x120   : > { %948 = vrot.lane.b32.xlu1 %v946_v27, %s3119_s24  ;;  %v821_v47 = vpop.permute.xlu1 %820  ;;  %v1170_v51 = vadd.f32 %v1168_v43, %v1163_v30  ;;  %v676_v27 = vstv %s3244_s26  ;;  %s2844_s26 = sld [smem:[#allocation3 + $0x50]]  ;;  %v585_v43 = vmul.f32 %v584_v33, %v2441_v26  ;;  %s3257_s5 = sadd.f32 %s3254_s30, %s3255_s19 }
 0x121   : > { %v823_v48 = vadd.f32 %v821_v47, %v816_v38  ;;  %v677_v34 = vmul.f32 %v676_v27, %v2549_v57  ;;  %v1385_v38 = vstv %s3250_s22  ;;  %s2882_s22 = sld [smem:[#allocation3 + $0x2f]]  ;;  %s2892_s30 = sld [smem:[#allocation3 + $0x52]] }
 0x122   : > { %1302 = vrot.lane.b32.xlu0 %v1300_v35, %s3119_s24  ;;  %v1386_v47 = vmul.f32 %v1385_v38, %v2549_v57  ;;  %v1403_v55 = vstv %s3257_s5  ;;  %s2895_s19 = sld [smem:[#allocation3 + $0x53]]  ;;  %s3259_s5 = sadd.f32 %s2600_s10, %s2598_s18 }
 0x123   : > { %v855_v56 = vadd.f32 %v854_v44, %v823_v48  ;;  %v1175_v58 = vpop.permute.xlu0 %1174  ;;  %s3262_s10 = sld [smem:[#allocation56_spill]] }
 0x124   : > { %611 = vrot.lane.b32.xlu1 %v609_v39, %s3122_s13  ;;  %v871_v60 = vpop.permute.xlu1 %870  ;;  %v1177_v61 = vadd.f32 %v1175_v58, %v1170_v51  ;;  %v554_v39 = vadd.f32 %v2718_v1, %v547_v31  ;;  %v695_v51 = vmul.f32 %v694_v63, %v2549_v57  ;;  %v1049_v1 = vstv %s3256_s4  ;;  %s1971_s4 = smov 32  }
 0x125   : > { %v873_v5 = vadd.f32 %v871_v60, %v855_v56 }
 0x126   : > { %966 = vrot.lane.b32.xlu0 %v964_v50, %s3122_s13  ;;  %v1209_v40 = vadd.f32 %v1208_v53, %v1177_v61  ;;  %v1294_v50 = vmul.f32 %v1293_v62, %v2441_v26  ;;  %v624_v53 = vstv %s2828_s23  ;;  %v586_v56 = vadd.f32 %v585_v43, %v554_v39 }
 0x127   : > { %v1225_v7 = vpop.permute.xlu0 %1224  ;;  %v1050_v61 = vmul.f32 %v1049_v1, %v2549_v57  ;;  %v625_v26 = vmul.f32 %v624_v53, %v2509_v42  ;;  %s1378_s12 = sadd.f32 %s2882_s22, %s2880_s11  ;;  %v710_v62 = vstv %s2890_s7  ;;  %v1065_v39 = vstv %s2892_s30 }
 0x128   : > { %1320 = vrot.lane.b32.xlu1 %v1318_v52, %s3122_s13  ;;  %v889_v12 = vpop.permute.xlu1 %888  ;;  %v1227_v15 = vadd.f32 %v1225_v7, %v1209_v40  ;;  %v1404_v40 = vmul.f32 %v1403_v55, %v2549_v57  ;;  %v980_v7 = vmul.f32 %v979_v59, %v2509_v42 }
 0x129   : > { %v891_v13 = vadd.f32 %v889_v12, %v873_v5  ;;  %v1333_v5 = vstv %s2844_s26  ;;  %v1379_v31 = vstv %s1378_s12 }
 0x12a   : > { %650 = vrot.lane.b32.xlu0 %v648_v2, %s3119_s24 }
 0x12b   : > { %v895_v21 = vadd.f32 %v894_v8, %v891_v13  ;;  %v1243_v22 = vpop.permute.xlu0 %1242 }
 0x12c   : > { %1005 = vrot.lane.b32.xlu1 %v1003_v3, %s3119_s24  ;;  %v900_v24 = vpop.permute.xlu1 %899  ;;  %v1245_v25 = vadd.f32 %v1243_v22, %v1227_v15 }
 0x12d   : > { %v902_v35 = vadd.f32 %v900_v24, %v895_v21 }
 0x12e   : > { %1359 = vrot.lane.b32.xlu0 %v1357_v14, %s3119_s24  ;;  %v1249_v54 = vadd.f32 %v1248_v19, %v1245_v25  ;;  %v1334_v14 = vmul.f32 %v1333_v5, %v2509_v42 }
 0x12f   : > { %v1254_v28 = vpop.permute.xlu0 %1253 }
 0x130   : > { %658 = vrot.lane.b32.xlu1 %v656_v16, %s3122_s13  ;;  %v907_v32 = vpop.permute.xlu1 %906  ;;  %v1256_v41 = vadd.f32 %v1254_v28, %v1249_v54 }
 0x131   : > { %v909_v45 = vadd.f32 %v907_v32, %v902_v35  ;;  %v1380_v35 = vmul.f32 %v1379_v31, %v2549_v57  ;;  %v826_v31 = vstv %s2720_s27 }
 0x132   : > { %1013 = vrot.lane.b32.xlu0 %v1011_v17, %s3122_s13 }
 0x133   : > { %v1261_v30 = vpop.permute.xlu0 %1260  ;;  %v941_v60 = vadd.f32 %v940_v46, %v909_v45  ;;  %v711_v45 = vmul.f32 %v710_v62, %v2571_v6 }
 0x134   : > { %1367 = vrot.lane.b32.xlu1 %v1365_v49, %s3122_s13  ;;  %v602_v44 = vpop.permute.xlu1 %601  ;;  %v1263_v48 = vadd.f32 %v1261_v30, %v1256_v41 }
 0x135   : > { %v604_v0 = vadd.f32 %v602_v44, %v586_v56 }
 0x136   : > { %679 = vrot.lane.b32.xlu0 %v677_v34, %s3119_s24  ;;  %v1295_v2 = vadd.f32 %v1294_v50, %v1263_v48  ;;  %v1419_v48 = vstv %s2895_s19  ;;  %v1066_v50 = vmul.f32 %v1065_v39, %v2571_v6 }
 0x137   : > { %v957_v52 = vpop.permute.xlu0 %956  ;;  %v1420_v55 = vmul.f32 %v1419_v48, %v2571_v6  ;;  %v1094_v6 = vstv %s2691_s20  ;;  %v1853_v48 = vld [vmem:[#allocation2 + $0x11] sm:$0xff]  ;;  %s579_s20 = sadd.f32 %s2828_s23, %s2789_s29 }
 0x138   : > { %1034 = vrot.lane.b32.xlu1 %v1032_v36, %s3119_s24  ;;  %v1311_v58 = vpop.permute.xlu1 %1310  ;;  %v959_v3 = vadd.f32 %v957_v52, %v941_v60  ;;  %s934_s23 = sadd.f32 %s2832_s25, %s2796_s1  ;;  %s3264_s1 = sld [smem:[#allocation13_spill]] }
 0x139   : > { %v1313_v12 = vadd.f32 %v1311_v58, %v1295_v2  ;;  %s665_s29 = sadd.f32 %s2890_s7, %s2871_s16  ;;  %s1746_s25 = sld [smem:[#allocation5 + $0x2]] }
 0x13a   : > { %1388 = vrot.lane.b32.xlu0 %v1386_v47, %s3119_s24  ;;  %s2876_s24 = sld [smem:[#allocation3 + $0xa]] }
 0x13c   : > { %697 = vrot.lane.b32.xlu1 %v695_v51, %s3122_s13  ;;  %v620_v4 = vpop.permute.xlu0 %619 }
 0x13d   : > { %v622_v9 = vadd.f32 %v620_v4, %v604_v0 }
 0x13e   : > { %v975_v8 = vpop.permute.xlu1 %974  ;;  %1052 = vrot.lane.b32.xlu0 %v1050_v61, %s3122_s13 }
 0x13f   : > { %v977_v10 = vadd.f32 %v975_v8, %v959_v3  ;;  %v626_v13 = vadd.f32 %v625_v26, %v622_v9  ;;  %v1850_v9 = vld [vmem:[#allocation2] sm:$0xff] }
 0x140   : > { %1406 = vrot.lane.b32.xlu1 %v1404_v40, %s3122_s13  ;;  %v1329_v15 = vpop.permute.xlu0 %1328  ;;  %s669_s13 = sadd.f32 %s2871_s16, %s2869_s14  ;;  %v740_v40 = vstv %s2673_s8 }
 0x141   : > { %v981_v16 = vadd.f32 %v980_v7, %v977_v10  ;;  %v1331_v20 = vadd.f32 %v1329_v15, %v1313_v12  ;;  %s1024_s6 = sadd.f32 %s2878_s21, %s2876_s24  ;;  %v741_v10 = vmul.f32 %v1850_v9, %v740_v40  ;;  %v580_v40 = vstv %s579_s20 }
 0x142   : > { %v631_v19 = vpop.permute.xlu1 %630  ;;  %v670_v24 = vstv %s669_s13  ;;  %s3258_s8 = sadd.f32 %s2582_s9, %s2580_s15  ;;  %s3260_s15 = sld [smem:[#allocation25_spill]] }
 0x143   : > { %v1335_v21 = vadd.f32 %v1334_v14, %v1331_v20  ;;  %v633_v25 = vadd.f32 %v631_v19, %v626_v13  ;;  %v671_v49 = vmul.f32 %v670_v24, %v2549_v57  ;;  %v1025_v27 = vstv %s1024_s6  ;;  %s3263_s9 = sld [smem:[#allocation28_spill]] }
 0x144   : > { %v986_v22 = vpop.permute.xlu0 %985  ;;  %v1026_v36 = vmul.f32 %v1025_v27, %v2549_v57  ;;  %v763_v19 = vstv %s3258_s8 }
 0x145   : > { %v988_v28 = vadd.f32 %v986_v22, %v981_v16  ;;  %v1095_v16 = vmul.f32 %v1850_v9, %v1094_v6  ;;  %v1851_v22 = vld [vmem:[#allocation2 + $0x1] sm:$0xff] }
 0x146   : > { %v1340_v42 = vpop.permute.xlu1 %1339 }
 0x147   : > { %v1342_v32 = vadd.f32 %v1340_v42, %v1335_v21  ;;  %v764_v42 = vmul.f32 %v1851_v22, %v763_v19 }
 0x148   : > { %v638_v23 = vpop.permute.xlu0 %637  ;;  %s3261_s18 = sadd.f32 %s3235_s2, %s3260_s15 }
 0x149   : > { %v640_v54 = vadd.f32 %v638_v23, %v633_v25  ;;  %v1117_v23 = vstv %s3259_s5  ;;  %s1202_s27 = sadd.f32 %s3263_s9, %s3262_s10 }
 0x14a   : > { %v993_v17 = vpop.permute.xlu1 %992  ;;  %s1020_s2 = sadd.f32 %s2892_s30, %s2878_s21 }
 0x14b   : > { %v995_v34 = vadd.f32 %v993_v17, %v988_v28  ;;  %v672_v37 = vadd.f32 %v671_v49, %v640_v54  ;;  %v1118_v54 = vmul.f32 %v1851_v22, %v1117_v23 }
 0x14c   : > { %v1347_v29 = vpop.permute.xlu0 %1346 }
 0x14d   : > { %v1349_v38 = vadd.f32 %v1347_v29, %v1342_v32  ;;  %v1027_v41 = vadd.f32 %v1026_v36, %v995_v34  ;;  %v1852_v36 = vld [vmem:[#allocation2 + $0x10] sm:$0xff] }
 0x14e   : > { %v688_v33 = vpop.permute.xlu1 %687 }
 0x14f   : > { %v690_v43 = vadd.f32 %v688_v33, %v672_v37  ;;  %v1381_v44 = vadd.f32 %v1380_v35, %v1349_v38  ;;  %v827_v37 = vmul.f32 %v1852_v36, %v826_v31  ;;  %v1180_v38 = vstv %s2729_s28  ;;  %s1288_s28 = sadd.f32 %s2844_s26, %s2803_s0  ;;  %s1708_s0 = sld [smem:[#allocation5 + $0x1]] }
 0x150   : > { %v1043_v30 = vpop.permute.xlu0 %1042  ;;  %s3265_s26 = sand.u32 1, %s3264_s1  }
 0x151   : > { %v1045_v46 = vadd.f32 %v1043_v30, %v1027_v41 }
 0x152   : > { %v1397_v63 = vpop.permute.xlu1 %1396 }
 0x153   : > { %v1399_v53 = vadd.f32 %v1397_v63, %v1381_v44  ;;  %v1181_v63 = vmul.f32 %v1852_v36, %v1180_v38 }
 0x154   : > { %v706_v47 = vpop.permute.xlu0 %705 }
 0x155   : > { %v708_v1 = vadd.f32 %v706_v47, %v690_v43 }
 0x156   : > { %v1061_v51 = vpop.permute.xlu1 %1060 }
 0x157   : > { %v1063_v52 = vadd.f32 %v1061_v51, %v1045_v46  ;;  %v712_v57 = vadd.f32 %v711_v45, %v708_v1  ;;  %v849_v45 = vstv %s3261_s18 }
 0x158   : > { %v1415_v56 = vpop.permute.xlu0 %1414 }
 0x159   : > { %v1067_v58 = vadd.f32 %v1066_v50, %v1063_v52  ;;  %v1417_v60 = vadd.f32 %v1415_v56, %v1399_v53  ;;  %v850_v50 = vmul.f32 %v1853_v48, %v849_v45 }
 0x15a   : > { %v717_v59 = vpop.permute.xlu1 %716 }
 0x15b   : > { %v1421_v61 = vadd.f32 %v1420_v55, %v1417_v60  ;;  %v719_v26 = vadd.f32 %v717_v59, %v712_v57  ;;  %v912_v57 = vstv %s2794_s3  ;;  %s1374_s3 = sadd.f32 %s2895_s19, %s2882_s22 }
 0x15c   : > { %v1072_v0 = vpop.permute.xlu0 %1071 }
 0x15d   : > { %v1074_v3 = vadd.f32 %v1072_v0, %v1067_v58  ;;  %v1854_v58 = vld [vmem:[#allocation2 + $0x20] sm:$0xff] }
 0x15e   : > { %v1426_v2 = vpop.permute.xlu1 %1425  ;;  %v913_v59 = vmul.f32 %v1854_v58, %v912_v57 }
 0x15f   : > { %v1428_v12 = vadd.f32 %v1426_v2, %v1421_v61 }
 0x160   : > { %v724_v4 = vpop.permute.xlu0 %723 }
 0x161   : > { %v726_v7 = vadd.f32 %v724_v4, %v719_v26 }
 0x162   : > { %v1079_v5 = vpop.permute.xlu1 %1078 }
 0x163   : > { %v1081_v8 = vadd.f32 %v1079_v5, %v1074_v3  ;;  %728 = vrot.lane.b32.xlu0 %v726_v7, %s1971_s4  ;;  %v1855_v3 = vld [vmem:[#allocation2 + $0x21] sm:$0xff] }
 0x164   : > { %v1433_v13 = vpop.permute.xlu0 %1432  ;;  %v581_v4 = vmul.f32 %v1855_v3, %v580_v40 }
 0x165   : > { %1083 = vrot.lane.b32.xlu1 %v1081_v8, %s1971_s4  ;;  %v1435_v15 = vadd.f32 %v1433_v13, %v1428_v12  ;;  %v1203_v13 = vstv %s1202_s27 }
 0x166   : > { %v748_v14 = vpop.permute.xlu1 %747 }
 0x167   : > { %v750_v20 = vadd.f32 %v748_v14, %v741_v10  ;;  %1437 = vrot.lane.b32.xlu0 %v1435_v15, %s1971_s4  ;;  %v1204_v15 = vmul.f32 %v1853_v48, %v1203_v13 }
 0x168   : > { %v1102_v21 = vpop.permute.xlu0 %1101 }
 0x169   : > { %v1104_v25 = vadd.f32 %v1102_v21, %v1095_v16 }
 0x16a   : > { %v756_v24 = vpop.permute.xlu1 %755 }
 0x16b   : > { %v758_v17 = vadd.f32 %v756_v24, %v750_v20 }
 0x16c   : > { %v1110_v27 = vpop.permute.xlu0 %1109 }
 0x16d   : > { %v765_v49 = vadd.f32 %v764_v42, %v758_v17  ;;  %v1112_v29 = vadd.f32 %v1110_v27, %v1104_v25  ;;  %v1266_v42 = vstv %s2801_s17  ;;  %v935_v27 = vstv %s934_s23  ;;  %s733_s17 = sld [smem:[#allocation5]] }
 0x16e   : > { %v777_v28 = vpop.permute.xlu1 %776  ;;  %v1267_v24 = vmul.f32 %v1854_v58, %v1266_v42 }
 0x16f   : > { %v779_v32 = vadd.f32 %v777_v28, %v765_v49  ;;  %v1119_v33 = vadd.f32 %v1118_v54, %v1112_v29 }
 0x170   : > { %v1131_v34 = vpop.permute.xlu0 %1130 }
 0x171   : > { %v1133_v30 = vadd.f32 %v1131_v34, %v1119_v33  ;;  %v936_v33 = vmul.f32 %v1855_v3, %v935_v27  ;;  %v1289_v34 = vstv %s1288_s28 }
 0x172   : > { %v795_v35 = vpop.permute.xlu1 %794 }
 0x173   : > { %v797_v62 = vadd.f32 %v795_v35, %v779_v32 }
 0x174   : > { %v1149_v41 = vpop.permute.xlu0 %1148 }
 0x175   : > { %v828_v39 = vadd.f32 %v827_v37, %v797_v62  ;;  %v1151_v44 = vadd.f32 %v1149_v41, %v1133_v30  ;;  %v1290_v37 = vmul.f32 %v1855_v3, %v1289_v34  ;;  %v1856_v3 = vld [vmem:[#allocation2 + $0x31] sm:$0xff] }
 0x176   : > { %v834_v43 = vpop.permute.xlu1 %833 }
 0x177   : > { %v836_v46 = vadd.f32 %v834_v43, %v828_v39  ;;  %v1182_v47 = vadd.f32 %v1181_v63, %v1151_v44  ;;  %v998_v39 = vstv %s2876_s24  ;;  %s3266_s24 = sld [smem:[#allocation22_spill]] }
 0x178   : > { %v1188_v56 = vpop.permute.xlu0 %1187 }
 0x179   : > { %v1190_v12 = vadd.f32 %v1188_v56, %v1182_v47  ;;  %v1352_v47 = vstv %s2880_s11 }
 0x17a   : > { %v842_v51 = vpop.permute.xlu1 %841 }
 0x17b   : > { %v844_v1 = vadd.f32 %v842_v51, %v836_v46  ;;  %v999_v46 = vmul.f32 %v998_v39, %v2782_v18 }
 0x17c   : > { %v1196_v2 = vpop.permute.xlu0 %1195 }
 0x17d   : > { %v851_v52 = vadd.f32 %v850_v50, %v844_v1  ;;  %v1198_v14 = vadd.f32 %v1196_v2, %v1190_v12  ;;  %v1353_v50 = vmul.f32 %v1352_v47, %v2782_v18  ;;  %v643_v1 = vstv %s2869_s14  ;;  %s1752_s14 = smul.u32 24, %s3265_s26  ;;  %p3267_p0 = scmp.ne.s32.totalorder %s3266_s24, 0 }
 0x17e   : > { %v863_v53 = vpop.permute.xlu1 %862  ;;  %v644_v56 = vmul.f32 %v2782_v18, %v643_v1  ;;  %s3268_s21 = sld [smem:[#allocation16_spill]] (%p3267_p0)  ;;  %s3269_s11 = sld [smem:[#allocation15_spill]] (%p3267_p0) }
 0x17f   : > { %v865_v55 = vadd.f32 %v863_v53, %v851_v52  ;;  %v1205_v20 = vadd.f32 %v1204_v15, %v1198_v14  ;;  %s355_s16 = scalar_lea.vmem [#allocation9], %s1752_s14  ;;  %s3270_s30 = sld [smem:[#allocation82_spill]] (%p3267_p0) }
 0x180   : > { %v1217_v8 = vpop.permute.xlu0 %1216 }
 0x181   : > { %v1219_v22 = vadd.f32 %v1217_v8, %v1205_v20 }
 0x182   : > { %v881_v60 = vpop.permute.xlu1 %880 }
 0x183   : > { %v883_v61 = vadd.f32 %v881_v60, %v865_v55  ;;  %v1021_v60 = vstv %s1020_s2 }
 0x184   : > { %v1235_v10 = vpop.permute.xlu0 %1234  ;;  %s1753_s22 = smul.u32 (%p3267_p0), 6, %s3268_s21 }
 0x185   : > { %v914_v0 = vadd.f32 %v913_v59, %v883_v61  ;;  %v1237_v23 = vadd.f32 %v1235_v10, %v1219_v22 }
 0x186   : > { %v920_v26 = vpop.permute.xlu1 %919  ;;  %s1454_s13 = sadd.s32 (%p3267_p0), %s3269_s11, %s1753_s22 }
 0x187   : > { %v1268_v54 = vadd.f32 %v1267_v24, %v1237_v23  ;;  %v922_v49 = vadd.f32 %v920_v26, %v914_v0  ;;  %v734_v23 = vstv %s733_s17  ;;  %s1748_s6 = sshll.u32 (%p3267_p0), %s1454_s13, 3 }
 0x188   : > { %v1274_v6 = vpop.permute.xlu0 %1273  ;;  %s1456_s19 = scalar_lea.vmem (%p3267_p0), %s3270_s30, %s1748_s6 }
 0x189   : > { %v1276_v29 = vadd.f32 %v1274_v6, %v1268_v54 }
 0x18a   : > { %v573_v5 = vpop.permute.xlu1 %572 }
 0x18b   : > { %v575_v7 = vadd.f32 %v573_v5, %v2733_v11  ;;  %v666_v5 = vstv %s665_s29 }
 0x18c   : > { %v928_v16 = vpop.permute.xlu0 %927  ;;  %v667_v18 = vmul.f32 %v1856_v3, %v666_v5 }
 0x18d   : > { %v582_v9 = vadd.f32 %v581_v4, %v575_v7  ;;  %v930_v32 = vadd.f32 %v928_v16, %v922_v49  ;;  %v1022_v4 = vmul.f32 %v1856_v3, %v1021_v60  ;;  %v1375_v7 = vstv %s1374_s3 }
 0x18e   : > { %v1282_v19 = vpop.permute.xlu1 %1281  ;;  %v1376_v12 = vmul.f32 %v1856_v3, %v1375_v7 }
 0x18f   : > { %v1284_v36 = vadd.f32 %v1282_v19, %v1276_v29  ;;  %v937_v38 = vadd.f32 %v936_v33, %v930_v32  ;;  %v1442_v32 = vstv %s1746_s25 }
 0x190   : > { %v594_v21 = vpop.permute.xlu0 %593 }
 0x191   : > { %v1291_v62 = vadd.f32 %v1290_v37, %v1284_v36  ;;  %v596_v53 = vadd.f32 %v594_v21, %v582_v9 }
 0x192   : > { %v949_v11 = vpop.permute.xlu1 %948 }
 0x193   : > { %v951_v63 = vadd.f32 %v949_v11, %v937_v38 }
 0x194   : > { %v1303_v25 = vpop.permute.xlu0 %1302 }
 0x195   : > { %v1305_v43 = vadd.f32 %v1303_v25, %v1291_v62  ;;  %v1088_v25 = vstv %s1708_s0 }
 0x196   : > { %v612_v17 = vpop.permute.xlu1 %611 }
 0x197   : > { %v614_v55 = vadd.f32 %v612_v17, %v596_v53 }
 0x198   : > { %v967_v28 = vpop.permute.xlu0 %966 }
 0x199   : > { %v969_v45 = vadd.f32 %v967_v28, %v951_v63  ;;  %v645_v0 = vadd.f32 %v644_v56, %v614_v55 }
 0x19a   : > { %v1321_v31 = vpop.permute.xlu1 %1320 }
 0x19b   : > { %v1323_v48 = vadd.f32 %v1321_v31, %v1305_v43  ;;  %v1000_v51 = vadd.f32 %v999_v46, %v969_v45 }
 0x19c   : > { %v651_v35 = vpop.permute.xlu0 %650 }
 0x19d   : > { %v1354_v58 = vadd.f32 %v1353_v50, %v1323_v48  ;;  %v653_v8 = vadd.f32 %v651_v35, %v645_v0 }
 0x19e   : > { %v1006_v30 = vpop.permute.xlu1 %1005 }
 0x19f   : > { %v1008_v59 = vadd.f32 %v1006_v30, %v1000_v51 }
 0x1a0   : > { %v1360_v41 = vpop.permute.xlu0 %1359 }
 0x1a1   : > { %v1362_v2 = vadd.f32 %v1360_v41, %v1354_v58 }
 0x1a2   : > { %v659_v44 = vpop.permute.xlu1 %658 }
 0x1a3   : > { %v661_v10 = vadd.f32 %v659_v44, %v653_v8 }
 0x1a4   : > { %v1014_v52 = vpop.permute.xlu0 %1013 }
 0x1a5   : > { %v1016_v40 = vadd.f32 %v1014_v52, %v1008_v59  ;;  %v668_v15 = vadd.f32 %v667_v18, %v661_v10 }
 0x1a6   : > { %v1368_v57 = vpop.permute.xlu1 %1367 }
 0x1a7   : > { %v1370_v6 = vadd.f32 %v1368_v57, %v1362_v2  ;;  %v1023_v13 = vadd.f32 %v1022_v4, %v1016_v40 }
 0x1a8   : > { %v680_v61 = vpop.permute.xlu0 %679 }
 0x1a9   : > { %v1377_v16 = vadd.f32 %v1376_v12, %v1370_v6  ;;  %v682_v21 = vadd.f32 %v680_v61, %v668_v15 }
 0x1aa   : > { %v1035_v26 = vpop.permute.xlu1 %1034 }
 0x1ab   : > { %v1037_v19 = vadd.f32 %v1035_v26, %v1023_v13 }
 0x1ac   : > { %v1389_v9 = vpop.permute.xlu0 %1388 }
 0x1ad   : > { %v1391_v42 = vadd.f32 %v1389_v9, %v1377_v16 }
 0x1ae   : > { %v698_v14 = vpop.permute.xlu1 %697 }
 0x1af   : > { %v700_v11 = vadd.f32 %v698_v14, %v682_v21 }
 0x1b0   : > { %v1053_v20 = vpop.permute.xlu0 %1052 }
 0x1b1   : > { %v1055_v24 = vadd.f32 %v1053_v20, %v1037_v19 }
 0x1b2   : > { %v1407_v22 = vpop.permute.xlu1 %1406 }
 0x1b3   : > { %v1409_v29 = vadd.f32 %v1407_v22, %v1391_v42 }
 0x1d5   : > { %v729_v17 = vpop.permute.xlu0 %728 }
 0x1d6   : > { %v732_v49 = vsel %vm731_vm1, %v700_v11, %v729_v17 }
 0x1d7   : > { %v1084_v54 = vpop.permute.xlu1 %1083  ;;  %v735_v28 = vadd.f32 %v734_v23, %v732_v49  ;;  %1452 = sbr.rel (!%p3267_p0) target bundleno = 486 (0x1e6), region = 124 }
 0x1d8   : > { %v1086_v27 = vsel %vm731_vm1, %v1055_v24, %v1084_v54 }
 0x1d9   : > { %v1089_v31 = vadd.f32 %v1088_v25, %v1086_v27  ;;  %737 = vst.msk [vmem:[%s355_s16] sm:$0xff] %vm736_vm2, %v735_v28  ;;  %v1438_v33 = vpop.permute.xlu0 %1437 }
 0x1da   : > { %v1440_v34 = vsel %vm731_vm1, %v1409_v29, %v1438_v33 }
 0x1db   : > { %1709 = vst.msk [vmem:[%s355_s16 + $0x8] sm:$0xff] %vm736_vm2, %v1089_v31  ;;  %v1443_v36 = vadd.f32 %v1442_v32, %v1440_v34 }
 0x1dd   : > { %1747 = vst.msk [vmem:[%s355_s16 + $0x10] sm:$0xff] %vm736_vm2, %v1443_v36 }
 0x1e0   : > { %v1488_v37 = vld [vmem:[%s355_s16] sm:$0xff] }
 0x1e1   : > { %1489 = vst [vmem:[%s1456_s19] sm:$0xff] %v1488_v37 }
 0x1e2   : > { %v1490_v38 = vld [vmem:[%s355_s16 + $0x8] sm:$0xff] }
 0x1e3   : > { %1491 = vst [vmem:[%s1456_s19 + $0x10] sm:$0xff] %v1490_v38 }
 0x1e4   : > { %v1492_v35 = vld [vmem:[%s355_s16 + $0x10] sm:$0xff] }
 0x1e5   : > { %1493 = vst [vmem:[%s1456_s19 + $0x20] sm:$0xff] %v1492_v35 }
 0x1e6 PF: > { %s3271_s4 = sld [smem:[#allocation19_spill]]  ;;  %s3272_s15 = sld [smem:[#allocation12_spill]] }
 0x1e7   : > { %s3273_s16 = sld [smem:[#allocation24_spill]]  ;;  %s3274_s17 = sld [smem:[#allocation14_spill]] }
 0x1e8   : > { %s3275_s18 = sld [smem:[#allocation23_spill]]  ;;  %s3276_s19 = sld [smem:[#allocation17_spill]] }
 0x1e9   : > { %s3277_s20 = sld [smem:[#allocation18_spill]]  ;;  %s3278_s21 = sld [smem:[#allocation20_spill]] }
 0x1ea   : > { %s3279_s22 = sld [smem:[#allocation21_spill]] }
 0x1ec   : > { %s16_s23 = sadd.s32 1, %s3271_s4  }
 0x1ed   : > { %p13_p2 = scmp.ge.s32.totalorder %s16_s23, 6  }
 0x1ef   :  { %15 = sbr.rel (!%p13_p2) target bundleno = 12 (0xc), region = 213 }
 0x1f6   :  { %1509 = vsyncpa [#allocation4], 1 }
 0x1f7   :  { %1511 = vsyncpa [#allocation4 + $0x1], 1 }
 0x1f8   :  { %1512 = vsyncpa [#allocation6], 1 }

</bundles_post_ra>
